<compile_context>
chip_gen: v6e
topology: v6e:2x2x1
jax: 0.10.0
libtpu: 0.0.40
codegen_flags: <defaults>
</compile_context>

<pallas_src>
import functools
import math

import numpy as np
import jax
import jax.numpy as jnp
from jax.experimental import pallas as pl
from jax.experimental.pallas import tpu as pltpu

LN_EPS = 1e-12  # HF VideoMAE layer_norm_eps


# ----------------------------------------------------------------------------
# In-kernel math helpers (all f32)
# ----------------------------------------------------------------------------
def _ln(x, g, b, eps):
    """Row-wise LayerNorm, biased variance (matches torch.nn.LayerNorm)."""
    mu = jnp.mean(x, axis=-1, keepdims=True)
    var = jnp.mean(jnp.square(x - mu), axis=-1, keepdims=True)
    return (x - mu) * jax.lax.rsqrt(var + eps) * g + b


def _erf(x):
    # Abramowitz & Stegun 7.1.26 (|err| <= 1.5e-7): only exp/mul/add/select,
    # which are guaranteed to lower on Mosaic.
    ax = jnp.abs(x)
    t = 1.0 / (1.0 + 0.3275911 * ax)
    poly = t * (0.254829592 + t * (-0.284496736 + t * (1.421413741
             + t * (-1.453152027 + t * 1.061405429))))
    y = 1.0 - poly * jnp.exp(-(ax * ax))
    return jnp.where(x >= 0.0, y, -y)


def _gelu_exact(x):
    """Exact (erf-based) GELU as used by HF VideoMAE."""
    return 0.5 * x * (1.0 + _erf(x * (1.0 / math.sqrt(2.0))))


# ----------------------------------------------------------------------------
# Pipelining / VMEM helpers
# ----------------------------------------------------------------------------
def _probe_buffered_one():
    """True iff this JAX supports single-buffering via pipeline_mode=pl.Buffered(1)."""
    try:
        def _k(x_ref, o_ref):
            o_ref[...] = x_ref[...] + 1.0
        out = pl.pallas_call(
            _k,
            out_shape=jax.ShapeDtypeStruct((8, 128), jnp.float32),
            grid=(2,),
            in_specs=[pl.BlockSpec((8, 128), lambda i: (0, 0),
                                   pipeline_mode=pl.Buffered(1))],
            out_specs=pl.BlockSpec((8, 128), lambda i: (0, 0)),
        )(jnp.zeros((8, 128), jnp.float32))
        jax.block_until_ready(out)
        return True
    except Exception:
        return False


_BUFFERED_ONE = _probe_buffered_one()


def _wspec(shape, index_map):
    """BlockSpec for a grid-invariant (weight) operand: single-buffer if supported.

    The index_map is constant over the batch grid, so double-buffering only
    wastes VMEM (critical on v7x's 64 MiB / v5e's 16 MiB scoped default).
    """
    if _BUFFERED_ONE:
        return pl.BlockSpec(shape, index_map, pipeline_mode=pl.Buffered(1))
    return pl.BlockSpec(shape, index_map)


def _pad(n, m):
    return ((n + m - 1) // m) * m


def _cparams(est_bytes):
    """Batch-parallel grid + scoped-VMEM limit sized from actual buffers (2x headroom),
    clamped to <=56 MiB so it always fits v7x's 64 MiB physical VMEM."""
    limit = int(min(56 << 20, max(32 << 20, 2 * int(est_bytes))))
    return pltpu.CompilerParams(dimension_semantics=("parallel",),
                                vmem_limit_bytes=limit)


# ----------------------------------------------------------------------------
# Patch embedding kernel (visible tokens only, bf16 activations)
# ----------------------------------------------------------------------------
def _patch_embed_kernel(x_ref, w_ref, b_ref, pos_ref, o_ref):
    """(Nvis, Cin) @ (Cin, D) + bias + gathered sinusoid pos, per batch element."""
    y = jnp.dot(x_ref[0], w_ref[...], preferred_element_type=jnp.float32)
    o_ref[...] = (y + b_ref[...] + pos_ref[0])[None].astype(o_ref.dtype)


def pallas_patch_embed(patches_bf16, w, b, pos):
    B, N, Cin = patches_bf16.shape
    D = w.shape[1]
    est = (2 * Cin * _pad(D, 128) + 4 * _pad(D, 128)                 # weights (x1)
           + 2 * (2 * _pad(N, 16) * _pad(Cin, 128)                    # patches bf16 (x2)
                  + 4 * _pad(N, 8) * _pad(D, 128) * 2)                # pos + out f32 (x2)
           + 4 * _pad(N, 8) * _pad(D, 128))                           # live result
    return pl.pallas_call(
        _patch_embed_kernel,
        out_shape=jax.ShapeDtypeStruct((B, N, D), jnp.float32),
        grid=(B,),
        in_specs=[
            pl.BlockSpec((1, N, Cin), lambda i: (i, 0, 0)),
            _wspec((Cin, D), lambda i: (0, 0)),
            _wspec((1, D), lambda i: (0, 0)),
            pl.BlockSpec((1, N, D), lambda i: (i, 0, 0)),
        ],
        out_specs=pl.BlockSpec((1, N, D), lambda i: (i, 0, 0)),
        compiler_params=_cparams(est),
    )(patches_bf16, w, b, pos)


# ----------------------------------------------------------------------------
# Fused transformer block kernel (VideoMAELayer)
# ----------------------------------------------------------------------------
def _block_kernel(x_ref, ln1g_ref, ln1b_ref, wqkv_ref, bqkv_ref, wo_ref, bo_ref,
                  ln2g_ref, ln2b_ref, wi_ref, bi_ref, wo2_ref, bo2_ref, o_ref,
                  qkv_scr, attn_scr, *, heads, eps):
    """One full pre-LN ViT block for one batch element."""
    x = x_ref[0]                                   # (S, D) f32 residual stream
    S, D = x.shape
    Dh = D // heads
    scale = 1.0 / math.sqrt(Dh)

    # --- LN1 + fused (D, 3D) QKV projection (bf16 MXU, f32 accumulation) ---
    h1 = _ln(x, ln1g_ref[...], ln1b_ref[...], eps)
    qkv = jnp.dot(h1.astype(jnp.bfloat16), wqkv_ref[...],
                  preferred_element_type=jnp.float32) + bqkv_ref[...]   # (S, 3D)

    # Stage per-head Q/K/V slices into a head-major bf16 VMEM scratch so the
    # attention loop below is a lax.fori_loop with leading-dim dynamic indexing
    # (no dynamic lane slices, one head live at a time).  1/sqrt(Dh) is folded
    # into Q here, saving S*S score multiplies per head.
    for hh in range(heads):
        qkv_scr[hh] = (qkv[:, hh * Dh:(hh + 1) * Dh] * scale).astype(jnp.bfloat16)
        qkv_scr[heads + hh] = qkv[:, D + hh * Dh:D + (hh + 1) * Dh].astype(jnp.bfloat16)
        qkv_scr[2 * heads + hh] = qkv[:, 2 * D + hh * Dh:2 * D + (hh + 1) * Dh].astype(jnp.bfloat16)

    attn_scr[...] = jnp.zeros_like(attn_scr)

    def head_body(h, carry):
        q = qkv_scr[h]                               # (S, Dh) bf16, pre-scaled
        k = qkv_scr[heads + h]
        v = qkv_scr[2 * heads + h]
        s = jax.lax.dot_general(q, k, (((1,), (1,)), ((), ())),
                                preferred_element_type=jnp.float32)     # (S, S)
        m = jnp.max(s, axis=-1, keepdims=True)
        p = jnp.exp(s - m)
        p = p * pl.reciprocal(jnp.sum(p, axis=-1, keepdims=True), approx=True)
        ctx = jnp.dot(p.astype(jnp.bfloat16), v,
                      preferred_element_type=jnp.float32)               # (S, Dh)
        # Fold the output projection per head: result stays lane-dense (full D)
        # and the N-way lane concatenate disappears.
        attn_scr[...] += jnp.dot(ctx.astype(jnp.bfloat16), wo_ref[h],
                                 preferred_element_type=jnp.float32)    # (S, D)
        return carry

    jax.lax.fori_loop(0, heads, head_body, 0)

    x = x + attn_scr[...] + bo_ref[...]            # residual 1

    # --- LN2 + MLP with exact GELU fused in the epilogue ---
    h2 = _ln(x, ln2g_ref[...], ln2b_ref[...], eps)
    inter = _gelu_exact(jnp.dot(h2.astype(jnp.bfloat16), wi_ref[...],
                                preferred_element_type=jnp.float32) + bi_ref[...])
    out = jnp.dot(inter.astype(jnp.bfloat16), wo2_ref[...],
                  preferred_element_type=jnp.float32) + bo2_ref[...]
    o_ref[...] = (x + out)[None].astype(o_ref.dtype)                    # residual 2


def _block_vmem_estimate(S, D, Dm, heads):
    Dh = D // heads
    Sp = _pad(S, 8)
    wb = 2 * (D * _pad(3 * D, 128) + heads * Dh * _pad(D, 128)
              + D * _pad(Dm, 128) + Dm * _pad(D, 128))                   # bf16 weights
    wb += 4 * (_pad(3 * D, 128) + 6 * _pad(D, 128) + _pad(Dm, 128))      # biases / LN
    act = 2 * 2 * 4 * Sp * _pad(D, 128)                                  # x in + out
    scr = 2 * 3 * heads * _pad(S, 16) * _pad(Dh, 128) + 4 * Sp * _pad(D, 128)
    live = 4 * Sp * (_pad(3 * D, 128) + _pad(Dm, 128)) + 2 * 4 * Sp * _pad(S, 128)
    return wb + act + scr + live


def pallas_block(x, p, heads, eps=LN_EPS):
    """x: (B, S, D) f32 -> (B, S, D) f32. One pallas_call per transformer block."""
    B, S, D = x.shape
    Dm = p["wi"].shape[1]
    Dh = D // heads
    est = _block_vmem_estimate(S, D, Dm, heads)
    return pl.pallas_call(
        functools.partial(_block_kernel, heads=heads, eps=eps),
        out_shape=jax.ShapeDtypeStruct((B, S, D), jnp.float32),
        grid=(B,),
        in_specs=[
            pl.BlockSpec((1, S, D), lambda i: (i, 0, 0)),     # x (per-batch)
            _wspec((1, D), lambda i: (0, 0)),                 # ln1_g
            _wspec((1, D), lambda i: (0, 0)),                 # ln1_b
            _wspec((D, 3 * D), lambda i: (0, 0)),             # wqkv (bf16)
            _wspec((1, 3 * D), lambda i: (0, 0)),             # bqkv
            _wspec((heads, Dh, D), lambda i: (0, 0, 0)),      # wo, head-major (bf16)
            _wspec((1, D), lambda i: (0, 0)),                 # bo
            _wspec((1, D), lambda i: (0, 0)),                 # ln2_g
            _wspec((1, D), lambda i: (0, 0)),                 # ln2_b
            _wspec((D, Dm), lambda i: (0, 0)),                # wi (bf16)
            _wspec((1, Dm), lambda i: (0, 0)),                # bi
            _wspec((Dm, D), lambda i: (0, 0)),                # wo2 (bf16)
            _wspec((1, D), lambda i: (0, 0)),                 # bo2
        ],
        out_specs=pl.BlockSpec((1, S, D), lambda i: (i, 0, 0)),
        scratch_shapes=[pltpu.VMEM((3 * heads, S, Dh), jnp.bfloat16),   # staged q/k/v
                        pltpu.VMEM((S, D), jnp.float32)],               # attn accumulator
        compiler_params=_cparams(est),
    )(x.astype(jnp.float32), p["ln1_g"], p["ln1_b"], p["wqkv"], p["bqkv"],
      p["wo"], p["bo"], p["ln2_g"], p["ln2_b"], p["wi"], p["bi"],
      p["wo2"], p["bo2"])


# ----------------------------------------------------------------------------
# Encoder -> decoder projection kernel
# ----------------------------------------------------------------------------
def _enc2dec_kernel(x_ref, w_ref, pos_ref, o_ref):
    """Encoder->decoder projection (no bias) + decoder pos add, per batch."""
    y = jnp.dot(x_ref[0], w_ref[...], preferred_element_type=jnp.float32)
    o_ref[...] = (y + pos_ref[0])[None].astype(o_ref.dtype)


def pallas_enc2dec(x_vis_bf16, w, pos_vis):
    B, Nv, D = x_vis_bf16.shape
    Dd = w.shape[1]
    est = (2 * D * _pad(Dd, 128)
           + 2 * (2 * _pad(Nv, 16) * _pad(D, 128) + 4 * _pad(Nv, 8) * _pad(Dd, 128) * 2)
           + 4 * _pad(Nv, 8) * _pad(Dd, 128))
    return pl.pallas_call(
        _enc2dec_kernel,
        out_shape=jax.ShapeDtypeStruct((B, Nv, Dd), jnp.float32),
        grid=(B,),
        in_specs=[
            pl.BlockSpec((1, Nv, D), lambda i: (i, 0, 0)),
            _wspec((D, Dd), lambda i: (0, 0)),
            pl.BlockSpec((1, Nv, Dd), lambda i: (i, 0, 0)),
        ],
        out_specs=pl.BlockSpec((1, Nv, Dd), lambda i: (i, 0, 0)),
        compiler_params=_cparams(est),
    )(x_vis_bf16, w, pos_vis.astype(jnp.float32))


# ----------------------------------------------------------------------------
# Decoder norm + head + SSE loss kernel
# ----------------------------------------------------------------------------
def _head_loss_kernel(x_ref, g_ref, b_ref, w_ref, hb_ref, lab_ref, o_ref, *, eps):
    """Decoder LayerNorm + head matmul + SSE vs labels, per batch element."""
    h = _ln(x_ref[0], g_ref[...], b_ref[...], eps)
    logits = jnp.dot(h.astype(jnp.bfloat16), w_ref[...],
                     preferred_element_type=jnp.float32) + hb_ref[...]
    d = logits - lab_ref[0]
    ss = jnp.sum(d * d, axis=-1, keepdims=True)     # (M, 1)
    tot = jnp.sum(ss, axis=0, keepdims=True)        # (1, 1)
    o_ref[...] = tot[None]                          # (1, 1, 1)


def pallas_head_loss(x_mask, g, b, w, hb, labels, eps=LN_EPS):
    """Returns per-batch sum of squared errors, shape (B, 1, 1)."""
    B, M, Dd = x_mask.shape
    L = w.shape[1]
    est = (2 * Dd * _pad(L, 128) + 4 * _pad(L, 128) + 8 * _pad(Dd, 128)
           + 2 * (4 * _pad(M, 8) * _pad(Dd, 128) + 4 * _pad(M, 8) * _pad(L, 128))
           + 4 * _pad(M, 8) * _pad(L, 128))
    return pl.pallas_call(
        functools.partial(_head_loss_kernel, eps=eps),
        out_shape=jax.ShapeDtypeStruct((B, 1, 1), jnp.float32),
        grid=(B,),
        in_specs=[
            pl.BlockSpec((1, M, Dd), lambda i: (i, 0, 0)),
            _wspec((1, Dd), lambda i: (0, 0)),
            _wspec((1, Dd), lambda i: (0, 0)),
            _wspec((Dd, L), lambda i: (0, 0)),
            _wspec((1, L), lambda i: (0, 0)),
            pl.BlockSpec((1, M, L), lambda i: (i, 0, 0)),
        ],
        out_specs=pl.BlockSpec((1, 1, 1), lambda i: (i, 0, 0)),
        compiler_params=_cparams(est),
    )(x_mask.astype(jnp.float32), g, b, w, hb, labels.astype(jnp.float32))


# ----------------------------------------------------------------------------
# Model (VideoMAE-for-pretraining, small synthetic config)
# ----------------------------------------------------------------------------
def sinusoid_table(n_position, d_hid):
    """HF get_sinusoid_encoding_table (fixed, non-learned). Returns (n, d) f32."""
    pos = np.arange(n_position, dtype=np.float64)[:, None]
    dim = np.arange(d_hid, dtype=np.float64)[None, :]
    angle = pos / np.power(10000.0, 2.0 * (dim // 2) / d_hid)
    table = np.zeros((n_position, d_hid), dtype=np.float64)
    table[:, 0::2] = np.sin(angle[:, 0::2])
    table[:, 1::2] = np.cos(angle[:, 1::2])
    return jnp.asarray(table, dtype=jnp.float32)


def _init_layer(nrm, d, d_mlp, heads):
    dh = d // heads
    return dict(
        ln1_g=jnp.ones((1, d), jnp.float32), ln1_b=jnp.zeros((1, d), jnp.float32),
        # Q/K/V fused into a single (d, 3d) bf16 weight; the key third of bqkv
        # must stay zero (VideoMAE key projection has no bias).
        wqkv=nrm((d, 3 * d)).astype(jnp.bfloat16),
        bqkv=jnp.zeros((1, 3 * d), jnp.float32),
        # out-projection stored head-major (heads, dh, d) so the kernel's
        # fori_loop indexes it along the leading dim.
        wo=nrm((heads, dh, d)).astype(jnp.bfloat16),
        bo=jnp.zeros((1, d), jnp.float32),
        ln2_g=jnp.ones((1, d), jnp.float32), ln2_b=jnp.zeros((1, d), jnp.float32),
        wi=nrm((d, d_mlp)).astype(jnp.bfloat16), bi=jnp.zeros((1, d_mlp), jnp.float32),
        wo2=nrm((d_mlp, d)).astype(jnp.bfloat16), bo2=jnp.zeros((1, d), jnp.float32),
    )


def init_params(key, cfg):
    keys = iter(jax.random.split(key, 256))

    def nrm(shape):
        return 0.02 * jax.random.normal(next(keys), shape, jnp.float32)

    ts, ps, C = cfg["tubelet_size"], cfg["patch_size"], cfg["num_channels"]
    seq = (cfg["num_frames"] // ts) * (cfg["image_size"] // ps) ** 2
    c_in = C * ts * ps * ps
    dec_labels = ts * ps * ps * C
    return dict(
        patch_w=nrm((c_in, cfg["hidden"])).astype(jnp.bfloat16),
        patch_b=jnp.zeros((1, cfg["hidden"]), jnp.float32),
        # fixed sinusoid tables, hoisted out of the forward pass
        pos_enc=sinusoid_table(seq, cfg["hidden"]),
        pos_dec=sinusoid_table(seq, cfg["dec_hidden"]),
        enc_layers=[_init_layer(nrm, cfg["hidden"], cfg["mlp"], cfg["heads"])
                    for _ in range(cfg["layers"])],
        enc2dec_w=nrm((cfg["hidden"], cfg["dec_hidden"])).astype(jnp.bfloat16),  # no bias
        mask_token=nrm((1, 1, cfg["dec_hidden"])),
        dec_layers=[_init_layer(nrm, cfg["dec_hidden"], cfg["dec_mlp"], cfg["dec_heads"])
                    for _ in range(cfg["dec_layers"])],
        dec_norm_g=jnp.ones((1, cfg["dec_hidden"]), jnp.float32),
        dec_norm_b=jnp.zeros((1, cfg["dec_hidden"]), jnp.float32),
        head_w=nrm((cfg["dec_hidden"], dec_labels)).astype(jnp.bfloat16),
        head_b=jnp.zeros((1, dec_labels), jnp.float32),
    )


def videomae_pretrain_forward(params, cfg, videos, vis_idx, mask_idx):
    """Mirrors VIDEOMAE_PRETRAIN.forward: returns ([], [], [], interloss)."""
    B, T, C, H, W = videos.shape
    ts, ps = cfg["tubelet_size"], cfg["patch_size"]
    seq = (T // ts) * (H // ps) * (W // ps)
    bidx = jnp.arange(B)[:, None]

    # --- patch embedding: Conv3d(kernel=stride=(ts,ps,ps)) as flatten + fused matmul+pos ---
    x = jnp.transpose(videos, (0, 2, 1, 3, 4))                       # (B,C,T,H,W)
    x = x.reshape(B, C, T // ts, ts, H // ps, ps, W // ps, ps)
    x = jnp.transpose(x, (0, 2, 4, 6, 1, 3, 5, 7))                   # (B,T',H',W',C,ts,ps,ps)
    patches = x.reshape(B, seq, C * ts * ps * ps)

    # Embed ONLY the visible tokens (the mask throws the rest away) and feed the
    # MXU kernel bf16 activations (halves the activation DMA).
    patches_vis = patches[bidx, vis_idx].astype(jnp.bfloat16)        # (B, Nvis, Cin)
    pos_vis_enc = params["pos_enc"][vis_idx]                         # (B, Nvis, D)
    x_vis = pallas_patch_embed(patches_vis, params["patch_w"],
                               params["patch_b"], pos_vis_enc)       # (B, Nvis, D)

    for lp in params["enc_layers"]:
        x_vis = pallas_block(x_vis, lp, cfg["heads"])
    # use_mean_pooling=True default -> no final encoder LayerNorm

    # --- encoder -> decoder projection (no bias) fused with +pos_vis ---
    pos_vis = params["pos_dec"][vis_idx]                             # (B, Nvis, Dd)
    pos_mask = params["pos_dec"][mask_idx]                           # (B, Nmask, Dd)
    n_mask = mask_idx.shape[1]

    x_dec = pallas_enc2dec(x_vis.astype(jnp.bfloat16),
                           params["enc2dec_w"], pos_vis)             # (B, Nvis, Dd)
    x_full = jnp.concatenate([x_dec, params["mask_token"] + pos_mask], axis=1)

    for lp in params["dec_layers"]:
        x_full = pallas_block(x_full, lp, cfg["dec_heads"])

    x_mask = x_full[:, -n_mask:]                                     # (B, Nmask, Dd)

    # --- target construction (torch.no_grad block in HF, norm_pix_loss=True) ---
    imnet_mean = jnp.asarray([0.485, 0.456, 0.406], jnp.float32)[None, None, :, None, None]
    imnet_std = jnp.asarray([0.229, 0.224, 0.225], jnp.float32)[None, None, :, None, None]
    frames = videos * imnet_std + imnet_mean
    f = frames.reshape(B, T // ts, ts, C, H // ps, ps, W // ps, ps)
    f = jnp.transpose(f, (0, 1, 4, 6, 2, 5, 7, 3))                   # (B,T',H',W',ts,ps,ps,C)
    f = f.reshape(B, seq, ts * ps * ps, C)
    mu = jnp.mean(f, axis=-2, keepdims=True)
    var = jnp.var(f, axis=-2, keepdims=True, ddof=1)                 # unbiased, like torch
    f_norm = (f - mu) / (jnp.sqrt(var) + 1e-6)
    videos_patch = f_norm.reshape(B, seq, ts * ps * ps * C)
    labels = videos_patch[bidx, mask_idx]                            # (B, Nmask, dec_labels)

    # --- fused LayerNorm + decoder head + per-batch SSE; mean taken outside ---
    sse = pallas_head_loss(x_mask, params["dec_norm_g"], params["dec_norm_b"],
                           params["head_w"], params["head_b"], labels)  # (B,1,1)
    interloss = jnp.sum(sse) / jnp.float32(B * n_mask * labels.shape[-1])
    return ([], [], [], interloss)


# ----------------------------------------------------------------------------
# Driver
# ----------------------------------------------------------------------------
if __name__ == "__main__":
    # Small synthetic VideoMAE config (num_frames=16 is hard-coded in the
    # reference module's seq_length formula).
    cfg = dict(
        image_size=16, patch_size=8, tubelet_size=2, num_frames=16, num_channels=3,
        hidden=32, heads=4, layers=2, mlp=64,
        dec_hidden=16, dec_heads=2, dec_layers=1, dec_mlp=32,
    )
    mae_mask_ratio = 0.75
    B = 2

    key = jax.random.PRNGKey(0)
    k_params, k_videos = jax.random.split(key)
    params = init_params(k_params, cfg)

    videos = jax.random.normal(
        k_videos,
        (B, cfg["num_frames"], cfg["num_channels"], cfg["image_size"], cfg["image_size"]),
        jnp.float32)

    # Replicate the module's random masking (True = masked, HF convention;
    # note the reference sets `mask_num` positions to *visible*).
    num_patches_per_frame = (cfg["image_size"] // cfg["patch_size"]) ** 2
    seq_length = 16 // cfg["tubelet_size"] * num_patches_per_frame
    mask_num = math.ceil(seq_length * mae_mask_ratio)
    rng = np.random.default_rng(0)
    masks = []
    for _ in range(B):
        m = np.ones(seq_length, dtype=bool)
        sel = rng.choice(seq_length, mask_num, replace=False)
        m[sel] = False
        masks.append(m)
    bool_masked_pos = np.stack(masks)                                 # (B, seq)
    vis_idx = jnp.asarray(np.stack([np.where(~m)[0] for m in bool_masked_pos]), jnp.int32)
    mask_idx = jnp.asarray(np.stack([np.where(m)[0] for m in bool_masked_pos]), jnp.int32)

    fwd = jax.jit(functools.partial(videomae_pretrain_forward, params, cfg))
    _, _, _, loss = fwd(videos, vis_idx, mask_idx)
    loss = jax.block_until_ready(loss)
    assert np.isfinite(float(loss)), f"loss is not finite: {loss}"
    print("KERNEL_OK")
</pallas_src>

<mosaic_0001>
module attributes {stable_mosaic.version = 11 : i64} {
  func.func @_k(%arg0: i32, %arg1: memref<8x128xf32, #tpu.memory_space<vmem>>, %arg2: memref<8x128xf32, #tpu.memory_space<vmem>>) attributes {dimension_semantics = [#tpu.dimension_semantics<arbitrary>], iteration_bounds = array<i64: 2>, scalar_prefetch = 0 : i64, scratch_operands = 0 : i64, tpu.core_type = #tpu.core_type<tc>, window_params = [{pipeline_mode = #tpu.pipeline_mode<synchronous>, transform_indices = @transform_0, window_bounds = array<i64: 8, 128>}, {pipeline_mode = #tpu.pipeline_mode<synchronous>, transform_indices = @transform_1, window_bounds = array<i64: 8, 128>}]} {
    %c0 = arith.constant 0 : index
    %c0_0 = arith.constant 0 : index
    %0 = vector.load %arg1[%c0, %c0_0] : memref<8x128xf32, #tpu.memory_space<vmem>>, vector<8x128xf32>
    %cst = arith.constant 1.000000e+00 : f32
    %1 = vector.broadcast %cst : f32 to vector<8x128xf32>
    %2 = arith.addf %0, %1 : vector<8x128xf32>
    %c0_1 = arith.constant 0 : index
    %c0_2 = arith.constant 0 : index
    %3 = vector.load %arg2[%c0_1, %c0_2] : memref<8x128xf32, #tpu.memory_space<vmem>>, vector<8x128xf32>
    tpu.vector_store %arg2[%c0_1, %c0_2], %2 {strides = array<i32>} : memref<8x128xf32, #tpu.memory_space<vmem>>, vector<8x128xf32>,
    return
  }
  func.func @transform_0(%arg0: i32) -> (i32, i32) {
    %c0_i32 = arith.constant 0 : i32
    %c0_i32_0 = arith.constant 0 : i32
    %c0_i32_1 = arith.constant 0 : i32
    return %c0_i32, %c0_i32_0 : i32, i32
  }
  func.func @transform_1(%arg0: i32) -> (i32, i32) {
    %c0_i32 = arith.constant 0 : i32
    %c0_i32_0 = arith.constant 0 : i32
    %c0_i32_1 = arith.constant 0 : i32
    return %c0_i32, %c0_i32_0 : i32, i32
  }
}

module attributes {stable_mosaic.version = 11 : i64} {
  func.func @_patch_embed_kernel(%arg0: i32, %arg1: memref<1x24x384xbf16, #tpu.memory_space<vmem>>, %arg2: memref<384x32xbf16, #tpu.memory_space<vmem>>, %arg3: memref<1x32xf32, #tpu.memory_space<vmem>>, %arg4: memref<1x24x32xf32, #tpu.memory_space<vmem>>, %arg5: memref<1x24x32xf32, #tpu.memory_space<vmem>>) attributes {dimension_semantics = [#tpu.dimension_semantics<parallel>], iteration_bounds = array<i64: 2>, scalar_prefetch = 0 : i64, scratch_operands = 0 : i64, tpu.core_type = #tpu.core_type<tc>, window_params = [{transform_indices = @transform_0, window_bounds = array<i64: 1, 24, 384>}, {pipeline_mode = #tpu.pipeline_mode<synchronous>, transform_indices = @transform_1, window_bounds = array<i64: 384, 32>}, {pipeline_mode = #tpu.pipeline_mode<synchronous>, transform_indices = @transform_2, window_bounds = array<i64: 1, 32>}, {transform_indices = @transform_3, window_bounds = array<i64: 1, 24, 32>}, {transform_indices = @transform_4, window_bounds = array<i64: 1, 24, 32>}]} {
    %c0 = arith.constant 0 : index
    %c0_0 = arith.constant 0 : index
    %c0_1 = arith.constant 0 : index
    %0 = vector.load %arg1[%c0, %c0_0, %c0_1] : memref<1x24x384xbf16, #tpu.memory_space<vmem>>, vector<1x24x384xbf16>
    %1 = vector.shape_cast %0 : vector<1x24x384xbf16> to vector<24x384xbf16>
    %c0_2 = arith.constant 0 : index
    %c0_3 = arith.constant 0 : index
    %2 = vector.load %arg2[%c0_2, %c0_3] : memref<384x32xbf16, #tpu.memory_space<vmem>>, vector<384x32xbf16>
    %cst = arith.constant dense<0.000000e+00> : vector<24x32xf32>
    %3 = tpu.matmul %1, %2, %cst {dimension_numbers = #tpu.dot_dimension_numbers<[1], [0], [0], [1], [0, 0, 1, 1], [], []>} : vector<24x384xbf16>, vector<384x32xbf16>, vector<24x32xf32> -> vector<24x32xf32>
    %c0_4 = arith.constant 0 : index
    %c0_5 = arith.constant 0 : index
    %4 = vector.load %arg3[%c0_4, %c0_5] : memref<1x32xf32, #tpu.memory_space<vmem>>, vector<1x32xf32>
    %5 = vector.broadcast %4 : vector<1x32xf32> to vector<24x32xf32>
    %6 = arith.addf %3, %5 : vector<24x32xf32>
    %c0_6 = arith.constant 0 : index
    %c0_7 = arith.constant 0 : index
    %c0_8 = arith.constant 0 : index
    %7 = vector.load %arg4[%c0_6, %c0_7, %c0_8] : memref<1x24x32xf32, #tpu.memory_space<vmem>>, vector<1x24x32xf32>
    %8 = vector.shape_cast %7 : vector<1x24x32xf32> to vector<24x32xf32>
    %9 = arith.addf %6, %8 : vector<24x32xf32>
    %10 = vector.shape_cast %9 : vector<24x32xf32> to vector<1x24x32xf32>
    %c0_9 = arith.constant 0 : index
    %c0_10 = arith.constant 0 : index
    %c0_11 = arith.constant 0 : index
    %11 = vector.load %arg5[%c0_9, %c0_10, %c0_11] : memref<1x24x32xf32, #tpu.memory_space<vmem>>, vector<1x24x32xf32>
    tpu.vector_store %arg5[%c0_9, %c0_10, %c0_11], %10 {strides = array<i32>} : memref<1x24x32xf32, #tpu.memory_space<vmem>>, vector<1x24x32xf32>,
    return
  }
  func.func @transform_0(%arg0: i32) -> (i32, i32, i32) {
    %c0_i32 = arith.constant 0 : i32
    %c0_i32_0 = arith.constant 0 : i32
    %c0_i32_1 = arith.constant 0 : i32
    return %arg0, %c0_i32, %c0_i32_0 : i32, i32, i32
  }
  func.func @transform_1(%arg0: i32) -> (i32, i32) {
    %c0_i32 = arith.constant 0 : i32
    %c0_i32_0 = arith.constant 0 : i32
    %c0_i32_1 = arith.constant 0 : i32
    return %c0_i32, %c0_i32_0 : i32, i32
  }
  func.func @transform_2(%arg0: i32) -> (i32, i32) {
    %c0_i32 = arith.constant 0 : i32
    %c0_i32_0 = arith.constant 0 : i32
    %c0_i32_1 = arith.constant 0 : i32
    return %c0_i32, %c0_i32_0 : i32, i32
  }
  func.func @transform_3(%arg0: i32) -> (i32, i32, i32) {
    %c0_i32 = arith.constant 0 : i32
    %c0_i32_0 = arith.constant 0 : i32
    %c0_i32_1 = arith.constant 0 : i32
    return %arg0, %c0_i32, %c0_i32_0 : i32, i32, i32
  }
  func.func @transform_4(%arg0: i32) -> (i32, i32, i32) {
    %c0_i32 = arith.constant 0 : i32
    %c0_i32_0 = arith.constant 0 : i32
    %c0_i32_1 = arith.constant 0 : i32
    return %arg0, %c0_i32, %c0_i32_0 : i32, i32, i32
  }
}

module attributes {stable_mosaic.version = 11 : i64} {
  func.func @_block_kernel(%arg0: i32, %arg1: memref<1x24x32xf32, #tpu.memory_space<vmem>>, %arg2: memref<1x32xf32, #tpu.memory_space<vmem>>, %arg3: memref<1x32xf32, #tpu.memory_space<vmem>>, %arg4: memref<32x96xbf16, #tpu.memory_space<vmem>>, %arg5: memref<1x96xf32, #tpu.memory_space<vmem>>, %arg6: memref<4x8x32xbf16, #tpu.memory_space<vmem>>, %arg7: memref<1x32xf32, #tpu.memory_space<vmem>>, %arg8: memref<1x32xf32, #tpu.memory_space<vmem>>, %arg9: memref<1x32xf32, #tpu.memory_space<vmem>>, %arg10: memref<32x64xbf16, #tpu.memory_space<vmem>>, %arg11: memref<1x64xf32, #tpu.memory_space<vmem>>, %arg12: memref<64x32xbf16, #tpu.memory_space<vmem>>, %arg13: memref<1x32xf32, #tpu.memory_space<vmem>>, %arg14: memref<1x24x32xf32, #tpu.memory_space<vmem>>, %arg15: memref<12x24x8xbf16, #tpu.memory_space<vmem>>, %arg16: memref<24x32xf32, #tpu.memory_space<vmem>>) attributes {dimension_semantics = [#tpu.dimension_semantics<parallel>], iteration_bounds = array<i64: 2>, scalar_prefetch = 0 : i64, scratch_operands = 2 : i64, tpu.core_type = #tpu.core_type<tc>, window_params = [{transform_indices = @transform_0, window_bounds = array<i64: 1, 24, 32>}, {pipeline_mode = #tpu.pipeline_mode<synchronous>, transform_indices = @transform_1, window_bounds = array<i64: 1, 32>}, {pipeline_mode = #tpu.pipeline_mode<synchronous>, transform_indices = @transform_2, window_bounds = array<i64: 1, 32>}, {pipeline_mode = #tpu.pipeline_mode<synchronous>, transform_indices = @transform_3, window_bounds = array<i64: 32, 96>}, {pipeline_mode = #tpu.pipeline_mode<synchronous>, transform_indices = @transform_4, window_bounds = array<i64: 1, 96>}, {pipeline_mode = #tpu.pipeline_mode<synchronous>, transform_indices = @transform_5, window_bounds = array<i64: 4, 8, 32>}, {pipeline_mode = #tpu.pipeline_mode<synchronous>, transform_indices = @transform_6, window_bounds = array<i64: 1, 32>}, {pipeline_mode = #tpu.pipeline_mode<synchronous>, transform_indices = @transform_7, window_bounds = array<i64: 1, 32>}, {pipeline_mode = #tpu.pipeline_mode<synchronous>, transform_indices = @transform_8, window_bounds = array<i64: 1, 32>}, {pipeline_mode = #tpu.pipeline_mode<synchronous>, transform_indices = @transform_9, window_bounds = array<i64: 32, 64>}, {pipeline_mode = #tpu.pipeline_mode<synchronous>, transform_indices = @transform_10, window_bounds = array<i64: 1, 64>}, {pipeline_mode = #tpu.pipeline_mode<synchronous>, transform_indices = @transform_11, window_bounds = array<i64: 64, 32>}, {pipeline_mode = #tpu.pipeline_mode<synchronous>, transform_indices = @transform_12, window_bounds = array<i64: 1, 32>}, {transform_indices = @transform_13, window_bounds = array<i64: 1, 24, 32>}]} {
    %c0 = arith.constant 0 : index
    %c0_0 = arith.constant 0 : index
    %c0_1 = arith.constant 0 : index
    %0 = vector.load %arg1[%c0, %c0_0, %c0_1] : memref<1x24x32xf32, #tpu.memory_space<vmem>>, vector<1x24x32xf32>
    %1 = vector.shape_cast %0 : vector<1x24x32xf32> to vector<24x32xf32>
    %c0_2 = arith.constant 0 : index
    %c0_3 = arith.constant 0 : index
    %2 = vector.load %arg2[%c0_2, %c0_3] : memref<1x32xf32, #tpu.memory_space<vmem>>, vector<1x32xf32>
    %c0_4 = arith.constant 0 : index
    %c0_5 = arith.constant 0 : index
    %3 = vector.load %arg3[%c0_4, %c0_5] : memref<1x32xf32, #tpu.memory_space<vmem>>, vector<1x32xf32>
    %cst = arith.constant dense<0.000000e+00> : vector<24xf32>
    %4 = vector.multi_reduction <add>, %1, %cst [1] : vector<24x32xf32> to vector<24xf32>
    %5 = vector.shape_cast %4 : vector<24xf32> to vector<24x1xf32>
    %cst_6 = arith.constant 3.200000e+01 : f32
    %6 = vector.broadcast %cst_6 : f32 to vector<24x1xf32>
    %7 = arith.divf %5, %6 : vector<24x1xf32>
    %8 = vector.broadcast %7 : vector<24x1xf32> to vector<24x32xf32>
    %9 = arith.subf %1, %8 : vector<24x32xf32>
    %10 = arith.mulf %9, %9 : vector<24x32xf32>
    %cst_7 = arith.constant dense<0.000000e+00> : vector<24xf32>
    %11 = vector.multi_reduction <add>, %10, %cst_7 [1] : vector<24x32xf32> to vector<24xf32>
    %12 = vector.shape_cast %11 : vector<24xf32> to vector<24x1xf32>
    %cst_8 = arith.constant 3.200000e+01 : f32
    %13 = vector.broadcast %cst_8 : f32 to vector<24x1xf32>
    %14 = arith.divf %12, %13 : vector<24x1xf32>
    %15 = vector.broadcast %7 : vector<24x1xf32> to vector<24x32xf32>
    %16 = arith.subf %1, %15 : vector<24x32xf32>
    %cst_9 = arith.constant 9.99999996E-13 : f32
    %17 = vector.broadcast %cst_9 : f32 to vector<24x1xf32>
    %18 = arith.addf %14, %17 : vector<24x1xf32>
    %19 = math.rsqrt %18 : vector<24x1xf32>
    %20 = vector.broadcast %19 : vector<24x1xf32> to vector<24x32xf32>
    %21 = arith.mulf %16, %20 : vector<24x32xf32>
    %22 = vector.broadcast %2 : vector<1x32xf32> to vector<24x32xf32>
    %23 = arith.mulf %21, %22 : vector<24x32xf32>
    %24 = vector.broadcast %3 : vector<1x32xf32> to vector<24x32xf32>
    %25 = arith.addf %23, %24 : vector<24x32xf32>
    %26 = arith.truncf %25 : vector<24x32xf32> to vector<24x32xbf16>
    %c0_10 = arith.constant 0 : index
    %c0_11 = arith.constant 0 : index
    %27 = vector.load %arg4[%c0_10, %c0_11] : memref<32x96xbf16, #tpu.memory_space<vmem>>, vector<32x96xbf16>
    %cst_12 = arith.constant dense<0.000000e+00> : vector<24x96xf32>
    %28 = tpu.matmul %26, %27, %cst_12 {dimension_numbers = #tpu.dot_dimension_numbers<[1], [0], [0], [1], [0, 0, 1, 1], [], []>} : vector<24x32xbf16>, vector<32x96xbf16>, vector<24x96xf32> -> vector<24x96xf32>
    %c0_13 = arith.constant 0 : index
    %c0_14 = arith.constant 0 : index
    %29 = vector.load %arg5[%c0_13, %c0_14] : memref<1x96xf32, #tpu.memory_space<vmem>>, vector<1x96xf32>
    %30 = vector.broadcast %29 : vector<1x96xf32> to vector<24x96xf32>
    %31 = arith.addf %28, %30 : vector<24x96xf32>
    %32 = vector.extract_strided_slice %31 {offsets = [0, 0], sizes = [24, 8], strides = [1, 1]} : vector<24x96xf32> to vector<24x8xf32>
    %cst_15 = arith.constant 0.353553385 : f32
    %33 = vector.broadcast %cst_15 : f32 to vector<24x8xf32>
    %34 = arith.mulf %32, %33 : vector<24x8xf32>
    %35 = arith.truncf %34 : vector<24x8xf32> to vector<24x8xbf16>
    %c0_16 = arith.constant 0 : index
    %c0_17 = arith.constant 0 : index
    %c0_18 = arith.constant 0 : index
    %36 = vector.load %arg15[%c0_16, %c0_17, %c0_18] : memref<12x24x8xbf16, #tpu.memory_space<vmem>>, vector<1x24x8xbf16>
    %37 = vector.shape_cast %36 : vector<1x24x8xbf16> to vector<24x8xbf16>
    %38 = vector.shape_cast %35 : vector<24x8xbf16> to vector<1x24x8xbf16>
    tpu.vector_store %arg15[%c0_16, %c0_17, %c0_18], %38 {strides = array<i32>} : memref<12x24x8xbf16, #tpu.memory_space<vmem>>, vector<1x24x8xbf16>,
    %39 = vector.extract_strided_slice %31 {offsets = [0, 32], sizes = [24, 8], strides = [1, 1]} : vector<24x96xf32> to vector<24x8xf32>
    %40 = arith.truncf %39 : vector<24x8xf32> to vector<24x8xbf16>
    %c4 = arith.constant 4 : index
    %c0_19 = arith.constant 0 : index
    %c0_20 = arith.constant 0 : index
    %41 = vector.load %arg15[%c4, %c0_19, %c0_20] : memref<12x24x8xbf16, #tpu.memory_space<vmem>>, vector<1x24x8xbf16>
    %42 = vector.shape_cast %41 : vector<1x24x8xbf16> to vector<24x8xbf16>
    %43 = vector.shape_cast %40 : vector<24x8xbf16> to vector<1x24x8xbf16>
    tpu.vector_store %arg15[%c4, %c0_19, %c0_20], %43 {strides = array<i32>} : memref<12x24x8xbf16, #tpu.memory_space<vmem>>, vector<1x24x8xbf16>,
    %44 = vector.extract_strided_slice %31 {offsets = [0, 64], sizes = [24, 8], strides = [1, 1]} : vector<24x96xf32> to vector<24x8xf32>
    %45 = arith.truncf %44 : vector<24x8xf32> to vector<24x8xbf16>
    %c8 = arith.constant 8 : index
    %c0_21 = arith.constant 0 : index
    %c0_22 = arith.constant 0 : index
    %46 = vector.load %arg15[%c8, %c0_21, %c0_22] : memref<12x24x8xbf16, #tpu.memory_space<vmem>>, vector<1x24x8xbf16>
    %47 = vector.shape_cast %46 : vector<1x24x8xbf16> to vector<24x8xbf16>
    %48 = vector.shape_cast %45 : vector<24x8xbf16> to vector<1x24x8xbf16>
    tpu.vector_store %arg15[%c8, %c0_21, %c0_22], %48 {strides = array<i32>} : memref<12x24x8xbf16, #tpu.memory_space<vmem>>, vector<1x24x8xbf16>,
    %49 = vector.extract_strided_slice %31 {offsets = [0, 8], sizes = [24, 8], strides = [1, 1]} : vector<24x96xf32> to vector<24x8xf32>
    %cst_23 = arith.constant 0.353553385 : f32
    %50 = vector.broadcast %cst_23 : f32 to vector<24x8xf32>
    %51 = arith.mulf %49, %50 : vector<24x8xf32>
    %52 = arith.truncf %51 : vector<24x8xf32> to vector<24x8xbf16>
    %c1 = arith.constant 1 : index
    %c0_24 = arith.constant 0 : index
    %c0_25 = arith.constant 0 : index
    %53 = vector.load %arg15[%c1, %c0_24, %c0_25] : memref<12x24x8xbf16, #tpu.memory_space<vmem>>, vector<1x24x8xbf16>
    %54 = vector.shape_cast %53 : vector<1x24x8xbf16> to vector<24x8xbf16>
    %55 = vector.shape_cast %52 : vector<24x8xbf16> to vector<1x24x8xbf16>
    tpu.vector_store %arg15[%c1, %c0_24, %c0_25], %55 {strides = array<i32>} : memref<12x24x8xbf16, #tpu.memory_space<vmem>>, vector<1x24x8xbf16>,
    %56 = vector.extract_strided_slice %31 {offsets = [0, 40], sizes = [24, 8], strides = [1, 1]} : vector<24x96xf32> to vector<24x8xf32>
    %57 = arith.truncf %56 : vector<24x8xf32> to vector<24x8xbf16>
    %c5 = arith.constant 5 : index
    %c0_26 = arith.constant 0 : index
    %c0_27 = arith.constant 0 : index
    %58 = vector.load %arg15[%c5, %c0_26, %c0_27] : memref<12x24x8xbf16, #tpu.memory_space<vmem>>, vector<1x24x8xbf16>
    %59 = vector.shape_cast %58 : vector<1x24x8xbf16> to vector<24x8xbf16>
    %60 = vector.shape_cast %57 : vector<24x8xbf16> to vector<1x24x8xbf16>
    tpu.vector_store %arg15[%c5, %c0_26, %c0_27], %60 {strides = array<i32>} : memref<12x24x8xbf16, #tpu.memory_space<vmem>>, vector<1x24x8xbf16>,
    %61 = vector.extract_strided_slice %31 {offsets = [0, 72], sizes = [24, 8], strides = [1, 1]} : vector<24x96xf32> to vector<24x8xf32>
    %62 = arith.truncf %61 : vector<24x8xf32> to vector<24x8xbf16>
    %c9 = arith.constant 9 : index
    %c0_28 = arith.constant 0 : index
    %c0_29 = arith.constant 0 : index
    %63 = vector.load %arg15[%c9, %c0_28, %c0_29] : memref<12x24x8xbf16, #tpu.memory_space<vmem>>, vector<1x24x8xbf16>
    %64 = vector.shape_cast %63 : vector<1x24x8xbf16> to vector<24x8xbf16>
    %65 = vector.shape_cast %62 : vector<24x8xbf16> to vector<1x24x8xbf16>
    tpu.vector_store %arg15[%c9, %c0_28, %c0_29], %65 {strides = array<i32>} : memref<12x24x8xbf16, #tpu.memory_space<vmem>>, vector<1x24x8xbf16>,
    %66 = vector.extract_strided_slice %31 {offsets = [0, 16], sizes = [24, 8], strides = [1, 1]} : vector<24x96xf32> to vector<24x8xf32>
    %cst_30 = arith.constant 0.353553385 : f32
    %67 = vector.broadcast %cst_30 : f32 to vector<24x8xf32>
    %68 = arith.mulf %66, %67 : vector<24x8xf32>
    %69 = arith.truncf %68 : vector<24x8xf32> to vector<24x8xbf16>
    %c2 = arith.constant 2 : index
    %c0_31 = arith.constant 0 : index
    %c0_32 = arith.constant 0 : index
    %70 = vector.load %arg15[%c2, %c0_31, %c0_32] : memref<12x24x8xbf16, #tpu.memory_space<vmem>>, vector<1x24x8xbf16>
    %71 = vector.shape_cast %70 : vector<1x24x8xbf16> to vector<24x8xbf16>
    %72 = vector.shape_cast %69 : vector<24x8xbf16> to vector<1x24x8xbf16>
    tpu.vector_store %arg15[%c2, %c0_31, %c0_32], %72 {strides = array<i32>} : memref<12x24x8xbf16, #tpu.memory_space<vmem>>, vector<1x24x8xbf16>,
    %73 = vector.extract_strided_slice %31 {offsets = [0, 48], sizes = [24, 8], strides = [1, 1]} : vector<24x96xf32> to vector<24x8xf32>
    %74 = arith.truncf %73 : vector<24x8xf32> to vector<24x8xbf16>
    %c6 = arith.constant 6 : index
    %c0_33 = arith.constant 0 : index
    %c0_34 = arith.constant 0 : index
    %75 = vector.load %arg15[%c6, %c0_33, %c0_34] : memref<12x24x8xbf16, #tpu.memory_space<vmem>>, vector<1x24x8xbf16>
    %76 = vector.shape_cast %75 : vector<1x24x8xbf16> to vector<24x8xbf16>
    %77 = vector.shape_cast %74 : vector<24x8xbf16> to vector<1x24x8xbf16>
    tpu.vector_store %arg15[%c6, %c0_33, %c0_34], %77 {strides = array<i32>} : memref<12x24x8xbf16, #tpu.memory_space<vmem>>, vector<1x24x8xbf16>,
    %78 = vector.extract_strided_slice %31 {offsets = [0, 80], sizes = [24, 8], strides = [1, 1]} : vector<24x96xf32> to vector<24x8xf32>
    %79 = arith.truncf %78 : vector<24x8xf32> to vector<24x8xbf16>
    %c10 = arith.constant 10 : index
    %c0_35 = arith.constant 0 : index
    %c0_36 = arith.constant 0 : index
    %80 = vector.load %arg15[%c10, %c0_35, %c0_36] : memref<12x24x8xbf16, #tpu.memory_space<vmem>>, vector<1x24x8xbf16>
    %81 = vector.shape_cast %80 : vector<1x24x8xbf16> to vector<24x8xbf16>
    %82 = vector.shape_cast %79 : vector<24x8xbf16> to vector<1x24x8xbf16>
    tpu.vector_store %arg15[%c10, %c0_35, %c0_36], %82 {strides = array<i32>} : memref<12x24x8xbf16, #tpu.memory_space<vmem>>, vector<1x24x8xbf16>,
    %83 = vector.extract_strided_slice %31 {offsets = [0, 24], sizes = [24, 8], strides = [1, 1]} : vector<24x96xf32> to vector<24x8xf32>
    %cst_37 = arith.constant 0.353553385 : f32
    %84 = vector.broadcast %cst_37 : f32 to vector<24x8xf32>
    %85 = arith.mulf %83, %84 : vector<24x8xf32>
    %86 = arith.truncf %85 : vector<24x8xf32> to vector<24x8xbf16>
    %c3 = arith.constant 3 : index
    %c0_38 = arith.constant 0 : index
    %c0_39 = arith.constant 0 : index
    %87 = vector.load %arg15[%c3, %c0_38, %c0_39] : memref<12x24x8xbf16, #tpu.memory_space<vmem>>, vector<1x24x8xbf16>
    %88 = vector.shape_cast %87 : vector<1x24x8xbf16> to vector<24x8xbf16>
    %89 = vector.shape_cast %86 : vector<24x8xbf16> to vector<1x24x8xbf16>
    tpu.vector_store %arg15[%c3, %c0_38, %c0_39], %89 {strides = array<i32>} : memref<12x24x8xbf16, #tpu.memory_space<vmem>>, vector<1x24x8xbf16>,
    %90 = vector.extract_strided_slice %31 {offsets = [0, 56], sizes = [24, 8], strides = [1, 1]} : vector<24x96xf32> to vector<24x8xf32>
    %91 = arith.truncf %90 : vector<24x8xf32> to vector<24x8xbf16>
    %c7 = arith.constant 7 : index
    %c0_40 = arith.constant 0 : index
    %c0_41 = arith.constant 0 : index
    %92 = vector.load %arg15[%c7, %c0_40, %c0_41] : memref<12x24x8xbf16, #tpu.memory_space<vmem>>, vector<1x24x8xbf16>
    %93 = vector.shape_cast %92 : vector<1x24x8xbf16> to vector<24x8xbf16>
    %94 = vector.shape_cast %91 : vector<24x8xbf16> to vector<1x24x8xbf16>
    tpu.vector_store %arg15[%c7, %c0_40, %c0_41], %94 {strides = array<i32>} : memref<12x24x8xbf16, #tpu.memory_space<vmem>>, vector<1x24x8xbf16>,
    %95 = vector.extract_strided_slice %31 {offsets = [0, 88], sizes = [24, 8], strides = [1, 1]} : vector<24x96xf32> to vector<24x8xf32>
    %96 = arith.truncf %95 : vector<24x8xf32> to vector<24x8xbf16>
    %c11 = arith.constant 11 : index
    %c0_42 = arith.constant 0 : index
    %c0_43 = arith.constant 0 : index
    %97 = vector.load %arg15[%c11, %c0_42, %c0_43] : memref<12x24x8xbf16, #tpu.memory_space<vmem>>, vector<1x24x8xbf16>
    %98 = vector.shape_cast %97 : vector<1x24x8xbf16> to vector<24x8xbf16>
    %99 = vector.shape_cast %96 : vector<24x8xbf16> to vector<1x24x8xbf16>
    tpu.vector_store %arg15[%c11, %c0_42, %c0_43], %99 {strides = array<i32>} : memref<12x24x8xbf16, #tpu.memory_space<vmem>>, vector<1x24x8xbf16>,
    %cst_44 = arith.constant 0.000000e+00 : f32
    %100 = vector.broadcast %cst_44 : f32 to vector<24x32xf32>
    %c0_45 = arith.constant 0 : index
    %c0_46 = arith.constant 0 : index
    %101 = vector.load %arg16[%c0_45, %c0_46] : memref<24x32xf32, #tpu.memory_space<vmem>>, vector<24x32xf32>
    tpu.vector_store %arg16[%c0_45, %c0_46], %100 {strides = array<i32>} : memref<24x32xf32, #tpu.memory_space<vmem>>, vector<24x32xf32>,
    %c0_i32 = arith.constant 0 : i32
    %c4_i32 = arith.constant 4 : i32
    %102 = arith.addi %c0_i32, %c4_i32 : i32
    %c1_i32 = arith.constant 1 : i32
    scf.for %arg17 = %c0_i32 to %102 step %c1_i32  : i32 {
      %187 = arith.index_cast %arg17 : i32 to index
      %c0_89 = arith.constant 0 : index
      %c0_90 = arith.constant 0 : index
      %188 = vector.load %arg15[%187, %c0_89, %c0_90] : memref<12x24x8xbf16, #tpu.memory_space<vmem>>, vector<1x24x8xbf16>
      %189 = vector.shape_cast %188 : vector<1x24x8xbf16> to vector<24x8xbf16>
      %c4_i32_91 = arith.constant 4 : i32
      %190 = arith.addi %c4_i32_91, %arg17 : i32
      %191 = arith.index_cast %190 : i32 to index
      %c0_92 = arith.constant 0 : index
      %c0_93 = arith.constant 0 : index
      %192 = vector.load %arg15[%191, %c0_92, %c0_93] : memref<12x24x8xbf16, #tpu.memory_space<vmem>>, vector<1x24x8xbf16>
      %193 = vector.shape_cast %192 : vector<1x24x8xbf16> to vector<24x8xbf16>
      %c8_i32 = arith.constant 8 : i32
      %194 = arith.addi %c8_i32, %arg17 : i32
      %195 = arith.index_cast %194 : i32 to index
      %c0_94 = arith.constant 0 : index
      %c0_95 = arith.constant 0 : index
      %196 = vector.load %arg15[%195, %c0_94, %c0_95] : memref<12x24x8xbf16, #tpu.memory_space<vmem>>, vector<1x24x8xbf16>
      %197 = vector.shape_cast %196 : vector<1x24x8xbf16> to vector<24x8xbf16>
      %cst_96 = arith.constant dense<0.000000e+00> : vector<24x24xf32>
      %198 = tpu.matmul %189, %193, %cst_96 {dimension_numbers = #tpu.dot_dimension_numbers<[1], [1], [0], [0], [0, 0, 1, 0], [], []>} : vector<24x8xbf16>, vector<24x8xbf16>, vector<24x24xf32> -> vector<24x24xf32>
      %cst_97 = arith.constant dense<0xFF800000> : vector<24xf32>
      %199 = vector.multi_reduction <maximumf>, %198, %cst_97 [1] : vector<24x24xf32> to vector<24xf32>
      %200 = vector.shape_cast %199 : vector<24xf32> to vector<24x1xf32>
      %201 = vector.broadcast %200 : vector<24x1xf32> to vector<24x24xf32>
      %202 = arith.subf %198, %201 : vector<24x24xf32>
      %203 = math.exp %202 : vector<24x24xf32>
      %cst_98 = arith.constant dense<0.000000e+00> : vector<24xf32>
      %204 = vector.multi_reduction <add>, %203, %cst_98 [1] : vector<24x24xf32> to vector<24xf32>
      %205 = vector.shape_cast %204 : vector<24xf32> to vector<24x1xf32>
      %206 = tpu.reciprocal %205 {approx = true} : vector<24x1xf32> -> vector<24x1xf32>
      %207 = vector.broadcast %206 : vector<24x1xf32> to vector<24x24xf32>
      %208 = arith.mulf %203, %207 : vector<24x24xf32>
      %209 = arith.truncf %208 : vector<24x24xf32> to vector<24x24xbf16>
      %cst_99 = arith.constant dense<0.000000e+00> : vector<24x8xf32>
      %210 = tpu.matmul %209, %197, %cst_99 {dimension_numbers = #tpu.dot_dimension_numbers<[1], [0], [0], [1], [0, 0, 1, 1], [], []>} : vector<24x24xbf16>, vector<24x8xbf16>, vector<24x8xf32> -> vector<24x8xf32>
      %c0_100 = arith.constant 0 : index
      %c0_101 = arith.constant 0 : index
      %211 = vector.load %arg16[%c0_100, %c0_101] : memref<24x32xf32, #tpu.memory_space<vmem>>, vector<24x32xf32>
      %212 = arith.truncf %210 : vector<24x8xf32> to vector<24x8xbf16>
      %213 = arith.index_cast %arg17 : i32 to index
      %c0_102 = arith.constant 0 : index
      %c0_103 = arith.constant 0 : index
      %214 = vector.load %arg6[%213, %c0_102, %c0_103] : memref<4x8x32xbf16, #tpu.memory_space<vmem>>, vector<1x8x32xbf16>
      %215 = vector.shape_cast %214 : vector<1x8x32xbf16> to vector<8x32xbf16>
      %cst_104 = arith.constant dense<0.000000e+00> : vector<24x32xf32>
      %216 = tpu.matmul %212, %215, %cst_104 {dimension_numbers = #tpu.dot_dimension_numbers<[1], [0], [0], [1], [0, 0, 1, 1], [], []>} : vector<24x8xbf16>, vector<8x32xbf16>, vector<24x32xf32> -> vector<24x32xf32>
      %217 = arith.addf %211, %216 : vector<24x32xf32>
      %c0_105 = arith.constant 0 : index
      %c0_106 = arith.constant 0 : index
      %218 = vector.load %arg16[%c0_105, %c0_106] : memref<24x32xf32, #tpu.memory_space<vmem>>, vector<24x32xf32>
      tpu.vector_store %arg16[%c0_105, %c0_106], %217 {strides = array<i32>} : memref<24x32xf32, #tpu.memory_space<vmem>>, vector<24x32xf32>,
    }
    %c4_i32_47 = arith.constant 4 : i32
    %c0_48 = arith.constant 0 : index
    %c0_49 = arith.constant 0 : index
    %103 = vector.load %arg16[%c0_48, %c0_49] : memref<24x32xf32, #tpu.memory_space<vmem>>, vector<24x32xf32>
    %104 = arith.addf %1, %103 : vector<24x32xf32>
    %c0_50 = arith.constant 0 : index
    %c0_51 = arith.constant 0 : index
    %105 = vector.load %arg7[%c0_50, %c0_51] : memref<1x32xf32, #tpu.memory_space<vmem>>, vector<1x32xf32>
    %106 = vector.broadcast %105 : vector<1x32xf32> to vector<24x32xf32>
    %107 = arith.addf %104, %106 : vector<24x32xf32>
    %c0_52 = arith.constant 0 : index
    %c0_53 = arith.constant 0 : index
    %108 = vector.load %arg8[%c0_52, %c0_53] : memref<1x32xf32, #tpu.memory_space<vmem>>, vector<1x32xf32>
    %c0_54 = arith.constant 0 : index
    %c0_55 = arith.constant 0 : index
    %109 = vector.load %arg9[%c0_54, %c0_55] : memref<1x32xf32, #tpu.memory_space<vmem>>, vector<1x32xf32>
    %cst_56 = arith.constant dense<0.000000e+00> : vector<24xf32>
    %110 = vector.multi_reduction <add>, %107, %cst_56 [1] : vector<24x32xf32> to vector<24xf32>
    %111 = vector.shape_cast %110 : vector<24xf32> to vector<24x1xf32>
    %cst_57 = arith.constant 3.200000e+01 : f32
    %112 = vector.broadcast %cst_57 : f32 to vector<24x1xf32>
    %113 = arith.divf %111, %112 : vector<24x1xf32>
    %114 = vector.broadcast %113 : vector<24x1xf32> to vector<24x32xf32>
    %115 = arith.subf %107, %114 : vector<24x32xf32>
    %116 = arith.mulf %115, %115 : vector<24x32xf32>
    %cst_58 = arith.constant dense<0.000000e+00> : vector<24xf32>
    %117 = vector.multi_reduction <add>, %116, %cst_58 [1] : vector<24x32xf32> to vector<24xf32>
    %118 = vector.shape_cast %117 : vector<24xf32> to vector<24x1xf32>
    %cst_59 = arith.constant 3.200000e+01 : f32
    %119 = vector.broadcast %cst_59 : f32 to vector<24x1xf32>
    %120 = arith.divf %118, %119 : vector<24x1xf32>
    %121 = vector.broadcast %113 : vector<24x1xf32> to vector<24x32xf32>
    %122 = arith.subf %107, %121 : vector<24x32xf32>
    %cst_60 = arith.constant 9.99999996E-13 : f32
    %123 = vector.broadcast %cst_60 : f32 to vector<24x1xf32>
    %124 = arith.addf %120, %123 : vector<24x1xf32>
    %125 = math.rsqrt %124 : vector<24x1xf32>
    %126 = vector.broadcast %125 : vector<24x1xf32> to vector<24x32xf32>
    %127 = arith.mulf %122, %126 : vector<24x32xf32>
    %128 = vector.broadcast %108 : vector<1x32xf32> to vector<24x32xf32>
    %129 = arith.mulf %127, %128 : vector<24x32xf32>
    %130 = vector.broadcast %109 : vector<1x32xf32> to vector<24x32xf32>
    %131 = arith.addf %129, %130 : vector<24x32xf32>
    %132 = arith.truncf %131 : vector<24x32xf32> to vector<24x32xbf16>
    %c0_61 = arith.constant 0 : index
    %c0_62 = arith.constant 0 : index
    %133 = vector.load %arg10[%c0_61, %c0_62] : memref<32x64xbf16, #tpu.memory_space<vmem>>, vector<32x64xbf16>
    %cst_63 = arith.constant dense<0.000000e+00> : vector<24x64xf32>
    %134 = tpu.matmul %132, %133, %cst_63 {dimension_numbers = #tpu.dot_dimension_numbers<[1], [0], [0], [1], [0, 0, 1, 1], [], []>} : vector<24x32xbf16>, vector<32x64xbf16>, vector<24x64xf32> -> vector<24x64xf32>
    %c0_64 = arith.constant 0 : index
    %c0_65 = arith.constant 0 : index
    %135 = vector.load %arg11[%c0_64, %c0_65] : memref<1x64xf32, #tpu.memory_space<vmem>>, vector<1x64xf32>
    %136 = vector.broadcast %135 : vector<1x64xf32> to vector<24x64xf32>
    %137 = arith.addf %134, %136 : vector<24x64xf32>
    %cst_66 = arith.constant 5.000000e-01 : f32
    %138 = vector.broadcast %cst_66 : f32 to vector<24x64xf32>
    %139 = arith.mulf %138, %137 : vector<24x64xf32>
    %cst_67 = arith.constant 0.707106769 : f32
    %140 = vector.broadcast %cst_67 : f32 to vector<24x64xf32>
    %141 = arith.mulf %137, %140 : vector<24x64xf32>
    %142 = math.absf %141 : vector<24x64xf32>
    %cst_68 = arith.constant 0.327591091 : f32
    %143 = vector.broadcast %cst_68 : f32 to vector<24x64xf32>
    %144 = arith.mulf %143, %142 : vector<24x64xf32>
    %cst_69 = arith.constant 1.000000e+00 : f32
    %145 = vector.broadcast %cst_69 : f32 to vector<24x64xf32>
    %146 = arith.addf %145, %144 : vector<24x64xf32>
    %cst_70 = arith.constant 1.000000e+00 : f32
    %147 = vector.broadcast %cst_70 : f32 to vector<24x64xf32>
    %148 = arith.divf %147, %146 : vector<24x64xf32>
    %cst_71 = arith.constant 1.06140542 : f32
    %149 = vector.broadcast %cst_71 : f32 to vector<24x64xf32>
    %150 = arith.mulf %148, %149 : vector<24x64xf32>
    %cst_72 = arith.constant -1.45315206 : f32
    %151 = vector.broadcast %cst_72 : f32 to vector<24x64xf32>
    %152 = arith.addf %151, %150 : vector<24x64xf32>
    %153 = arith.mulf %148, %152 : vector<24x64xf32>
    %cst_73 = arith.constant 1.42141378 : f32
    %154 = vector.broadcast %cst_73 : f32 to vector<24x64xf32>
    %155 = arith.addf %154, %153 : vector<24x64xf32>
    %156 = arith.mulf %148, %155 : vector<24x64xf32>
    %cst_74 = arith.constant -0.284496725 : f32
    %157 = vector.broadcast %cst_74 : f32 to vector<24x64xf32>
    %158 = arith.addf %157, %156 : vector<24x64xf32>
    %159 = arith.mulf %148, %158 : vector<24x64xf32>
    %cst_75 = arith.constant 0.254829586 : f32
    %160 = vector.broadcast %cst_75 : f32 to vector<24x64xf32>
    %161 = arith.addf %160, %159 : vector<24x64xf32>
    %162 = arith.mulf %148, %161 : vector<24x64xf32>
    %163 = arith.mulf %142, %142 : vector<24x64xf32>
    %cst_76 = arith.constant 0.000000e+00 : f32
    %164 = vector.broadcast %cst_76 : f32 to vector<24x64xf32>
    %165 = arith.subf %164, %163 : vector<24x64xf32>
    %166 = math.exp %165 : vector<24x64xf32>
    %167 = arith.mulf %162, %166 : vector<24x64xf32>
    %cst_77 = arith.constant 1.000000e+00 : f32
    %168 = vector.broadcast %cst_77 : f32 to vector<24x64xf32>
    %169 = arith.subf %168, %167 : vector<24x64xf32>
    %cst_78 = arith.constant 0.000000e+00 : f32
    %170 = vector.broadcast %cst_78 : f32 to vector<24x64xf32>
    %171 = arith.cmpf oge, %141, %170 : vector<24x64xf32>
    %cst_79 = arith.constant 0.000000e+00 : f32
    %172 = vector.broadcast %cst_79 : f32 to vector<24x64xf32>
    %173 = arith.subf %172, %169 : vector<24x64xf32>
    %174 = arith.select %171, %169, %173 : vector<24x64xi1>, vector<24x64xf32>
    %cst_80 = arith.constant 1.000000e+00 : f32
    %175 = vector.broadcast %cst_80 : f32 to vector<24x64xf32>
    %176 = arith.addf %175, %174 : vector<24x64xf32>
    %177 = arith.mulf %139, %176 : vector<24x64xf32>
    %178 = arith.truncf %177 : vector<24x64xf32> to vector<24x64xbf16>
    %c0_81 = arith.constant 0 : index
    %c0_82 = arith.constant 0 : index
    %179 = vector.load %arg12[%c0_81, %c0_82] : memref<64x32xbf16, #tpu.memory_space<vmem>>, vector<64x32xbf16>
    %cst_83 = arith.constant dense<0.000000e+00> : vector<24x32xf32>
    %180 = tpu.matmul %178, %179, %cst_83 {dimension_numbers = #tpu.dot_dimension_numbers<[1], [0], [0], [1], [0, 0, 1, 1], [], []>} : vector<24x64xbf16>, vector<64x32xbf16>, vector<24x32xf32> -> vector<24x32xf32>
    %c0_84 = arith.constant 0 : index
    %c0_85 = arith.constant 0 : index
    %181 = vector.load %arg13[%c0_84, %c0_85] : memref<1x32xf32, #tpu.memory_space<vmem>>, vector<1x32xf32>
    %182 = vector.broadcast %181 : vector<1x32xf32> to vector<24x32xf32>
    %183 = arith.addf %180, %182 : vector<24x32xf32>
    %184 = arith.addf %107, %183 : vector<24x32xf32>
    %185 = vector.shape_cast %184 : vector<24x32xf32> to vector<1x24x32xf32>
    %c0_86 = arith.constant 0 : index
    %c0_87 = arith.constant 0 : index
    %c0_88 = arith.constant 0 : index
    %186 = vector.load %arg14[%c0_86, %c0_87, %c0_88] : memref<1x24x32xf32, #tpu.memory_space<vmem>>, vector<1x24x32xf32>
    tpu.vector_store %arg14[%c0_86, %c0_87, %c0_88], %185 {strides = array<i32>} : memref<1x24x32xf32, #tpu.memory_space<vmem>>, vector<1x24x32xf32>,
    return
  }
  func.func @transform_0(%arg0: i32) -> (i32, i32, i32) {
    %c0_i32 = arith.constant 0 : i32
    %c0_i32_0 = arith.constant 0 : i32
    %c0_i32_1 = arith.constant 0 : i32
    return %arg0, %c0_i32, %c0_i32_0 : i32, i32, i32
  }
  func.func @transform_1(%arg0: i32) -> (i32, i32) {
    %c0_i32 = arith.constant 0 : i32
    %c0_i32_0 = arith.constant 0 : i32
    %c0_i32_1 = arith.constant 0 : i32
    return %c0_i32, %c0_i32_0 : i32, i32
  }
  func.func @transform_2(%arg0: i32) -> (i32, i32) {
    %c0_i32 = arith.constant 0 : i32
    %c0_i32_0 = arith.constant 0 : i32
    %c0_i32_1 = arith.constant 0 : i32
    return %c0_i32, %c0_i32_0 : i32, i32
  }
  func.func @transform_3(%arg0: i32) -> (i32, i32) {
    %c0_i32 = arith.constant 0 : i32
    %c0_i32_0 = arith.constant 0 : i32
    %c0_i32_1 = arith.constant 0 : i32
    return %c0_i32, %c0_i32_0 : i32, i32
  }
  func.func @transform_4(%arg0: i32) -> (i32, i32) {
    %c0_i32 = arith.constant 0 : i32
    %c0_i32_0 = arith.constant 0 : i32
    %c0_i32_1 = arith.constant 0 : i32
    return %c0_i32, %c0_i32_0 : i32, i32
  }
  func.func @transform_5(%arg0: i32) -> (i32, i32, i32) {
    %c0_i32 = arith.constant 0 : i32
    %c0_i32_0 = arith.constant 0 : i32
    %c0_i32_1 = arith.constant 0 : i32
    %c0_i32_2 = arith.constant 0 : i32
    return %c0_i32, %c0_i32_0, %c0_i32_1 : i32, i32, i32
  }
  func.func @transform_6(%arg0: i32) -> (i32, i32) {
    %c0_i32 = arith.constant 0 : i32
    %c0_i32_0 = arith.constant 0 : i32
    %c0_i32_1 = arith.constant 0 : i32
    return %c0_i32, %c0_i32_0 : i32, i32
  }
  func.func @transform_7(%arg0: i32) -> (i32, i32) {
    %c0_i32 = arith.constant 0 : i32
    %c0_i32_0 = arith.constant 0 : i32
    %c0_i32_1 = arith.constant 0 : i32
    return %c0_i32, %c0_i32_0 : i32, i32
  }
  func.func @transform_8(%arg0: i32) -> (i32, i32) {
    %c0_i32 = arith.constant 0 : i32
    %c0_i32_0 = arith.constant 0 : i32
    %c0_i32_1 = arith.constant 0 : i32
    return %c0_i32, %c0_i32_0 : i32, i32
  }
  func.func @transform_9(%arg0: i32) -> (i32, i32) {
    %c0_i32 = arith.constant 0 : i32
    %c0_i32_0 = arith.constant 0 : i32
    %c0_i32_1 = arith.constant 0 : i32
    return %c0_i32, %c0_i32_0 : i32, i32
  }
  func.func @transform_10(%arg0: i32) -> (i32, i32) {
    %c0_i32 = arith.constant 0 : i32
    %c0_i32_0 = arith.constant 0 : i32
    %c0_i32_1 = arith.constant 0 : i32
    return %c0_i32, %c0_i32_0 : i32, i32
  }
  func.func @transform_11(%arg0: i32) -> (i32, i32) {
    %c0_i32 = arith.constant 0 : i32
    %c0_i32_0 = arith.constant 0 : i32
    %c0_i32_1 = arith.constant 0 : i32
    return %c0_i32, %c0_i32_0 : i32, i32
  }
  func.func @transform_12(%arg0: i32) -> (i32, i32) {
    %c0_i32 = arith.constant 0 : i32
    %c0_i32_0 = arith.constant 0 : i32
    %c0_i32_1 = arith.constant 0 : i32
    return %c0_i32, %c0_i32_0 : i32, i32
  }
  func.func @transform_13(%arg0: i32) -> (i32, i32, i32) {
    %c0_i32 = arith.constant 0 : i32
    %c0_i32_0 = arith.constant 0 : i32
    %c0_i32_1 = arith.constant 0 : i32
    return %arg0, %c0_i32, %c0_i32_0 : i32, i32, i32
  }
}

module attributes {stable_mosaic.version = 11 : i64} {
  func.func @_enc2dec_kernel(%arg0: i32, %arg1: memref<1x24x32xbf16, #tpu.memory_space<vmem>>, %arg2: memref<32x16xbf16, #tpu.memory_space<vmem>>, %arg3: memref<1x24x16xf32, #tpu.memory_space<vmem>>, %arg4: memref<1x24x16xf32, #tpu.memory_space<vmem>>) attributes {dimension_semantics = [#tpu.dimension_semantics<parallel>], iteration_bounds = array<i64: 2>, scalar_prefetch = 0 : i64, scratch_operands = 0 : i64, tpu.core_type = #tpu.core_type<tc>, window_params = [{transform_indices = @transform_0, window_bounds = array<i64: 1, 24, 32>}, {pipeline_mode = #tpu.pipeline_mode<synchronous>, transform_indices = @transform_1, window_bounds = array<i64: 32, 16>}, {transform_indices = @transform_2, window_bounds = array<i64: 1, 24, 16>}, {transform_indices = @transform_3, window_bounds = array<i64: 1, 24, 16>}]} {
    %c0 = arith.constant 0 : index
    %c0_0 = arith.constant 0 : index
    %c0_1 = arith.constant 0 : index
    %0 = vector.load %arg1[%c0, %c0_0, %c0_1] : memref<1x24x32xbf16, #tpu.memory_space<vmem>>, vector<1x24x32xbf16>
    %1 = vector.shape_cast %0 : vector<1x24x32xbf16> to vector<24x32xbf16>
    %c0_2 = arith.constant 0 : index
    %c0_3 = arith.constant 0 : index
    %2 = vector.load %arg2[%c0_2, %c0_3] : memref<32x16xbf16, #tpu.memory_space<vmem>>, vector<32x16xbf16>
    %cst = arith.constant dense<0.000000e+00> : vector<24x16xf32>
    %3 = tpu.matmul %1, %2, %cst {dimension_numbers = #tpu.dot_dimension_numbers<[1], [0], [0], [1], [0, 0, 1, 1], [], []>} : vector<24x32xbf16>, vector<32x16xbf16>, vector<24x16xf32> -> vector<24x16xf32>
    %c0_4 = arith.constant 0 : index
    %c0_5 = arith.constant 0 : index
    %c0_6 = arith.constant 0 : index
    %4 = vector.load %arg3[%c0_4, %c0_5, %c0_6] : memref<1x24x16xf32, #tpu.memory_space<vmem>>, vector<1x24x16xf32>
    %5 = vector.shape_cast %4 : vector<1x24x16xf32> to vector<24x16xf32>
    %6 = arith.addf %3, %5 : vector<24x16xf32>
    %7 = vector.shape_cast %6 : vector<24x16xf32> to vector<1x24x16xf32>
    %c0_7 = arith.constant 0 : index
    %c0_8 = arith.constant 0 : index
    %c0_9 = arith.constant 0 : index
    %8 = vector.load %arg4[%c0_7, %c0_8, %c0_9] : memref<1x24x16xf32, #tpu.memory_space<vmem>>, vector<1x24x16xf32>
    tpu.vector_store %arg4[%c0_7, %c0_8, %c0_9], %7 {strides = array<i32>} : memref<1x24x16xf32, #tpu.memory_space<vmem>>, vector<1x24x16xf32>,
    return
  }
  func.func @transform_0(%arg0: i32) -> (i32, i32, i32) {
    %c0_i32 = arith.constant 0 : i32
    %c0_i32_0 = arith.constant 0 : i32
    %c0_i32_1 = arith.constant 0 : i32
    return %arg0, %c0_i32, %c0_i32_0 : i32, i32, i32
  }
  func.func @transform_1(%arg0: i32) -> (i32, i32) {
    %c0_i32 = arith.constant 0 : i32
    %c0_i32_0 = arith.constant 0 : i32
    %c0_i32_1 = arith.constant 0 : i32
    return %c0_i32, %c0_i32_0 : i32, i32
  }
  func.func @transform_2(%arg0: i32) -> (i32, i32, i32) {
    %c0_i32 = arith.constant 0 : i32
    %c0_i32_0 = arith.constant 0 : i32
    %c0_i32_1 = arith.constant 0 : i32
    return %arg0, %c0_i32, %c0_i32_0 : i32, i32, i32
  }
  func.func @transform_3(%arg0: i32) -> (i32, i32, i32) {
    %c0_i32 = arith.constant 0 : i32
    %c0_i32_0 = arith.constant 0 : i32
    %c0_i32_1 = arith.constant 0 : i32
    return %arg0, %c0_i32, %c0_i32_0 : i32, i32, i32
  }
}

module attributes {stable_mosaic.version = 11 : i64} {
  func.func @_block_kernel(%arg0: i32, %arg1: memref<1x32x16xf32, #tpu.memory_space<vmem>>, %arg2: memref<1x16xf32, #tpu.memory_space<vmem>>, %arg3: memref<1x16xf32, #tpu.memory_space<vmem>>, %arg4: memref<16x48xbf16, #tpu.memory_space<vmem>>, %arg5: memref<1x48xf32, #tpu.memory_space<vmem>>, %arg6: memref<2x8x16xbf16, #tpu.memory_space<vmem>>, %arg7: memref<1x16xf32, #tpu.memory_space<vmem>>, %arg8: memref<1x16xf32, #tpu.memory_space<vmem>>, %arg9: memref<1x16xf32, #tpu.memory_space<vmem>>, %arg10: memref<16x32xbf16, #tpu.memory_space<vmem>>, %arg11: memref<1x32xf32, #tpu.memory_space<vmem>>, %arg12: memref<32x16xbf16, #tpu.memory_space<vmem>>, %arg13: memref<1x16xf32, #tpu.memory_space<vmem>>, %arg14: memref<1x32x16xf32, #tpu.memory_space<vmem>>, %arg15: memref<6x32x8xbf16, #tpu.memory_space<vmem>>, %arg16: memref<32x16xf32, #tpu.memory_space<vmem>>) attributes {dimension_semantics = [#tpu.dimension_semantics<parallel>], iteration_bounds = array<i64: 2>, scalar_prefetch = 0 : i64, scratch_operands = 2 : i64, tpu.core_type = #tpu.core_type<tc>, window_params = [{transform_indices = @transform_0, window_bounds = array<i64: 1, 32, 16>}, {pipeline_mode = #tpu.pipeline_mode<synchronous>, transform_indices = @transform_1, window_bounds = array<i64: 1, 16>}, {pipeline_mode = #tpu.pipeline_mode<synchronous>, transform_indices = @transform_2, window_bounds = array<i64: 1, 16>}, {pipeline_mode = #tpu.pipeline_mode<synchronous>, transform_indices = @transform_3, window_bounds = array<i64: 16, 48>}, {pipeline_mode = #tpu.pipeline_mode<synchronous>, transform_indices = @transform_4, window_bounds = array<i64: 1, 48>}, {pipeline_mode = #tpu.pipeline_mode<synchronous>, transform_indices = @transform_5, window_bounds = array<i64: 2, 8, 16>}, {pipeline_mode = #tpu.pipeline_mode<synchronous>, transform_indices = @transform_6, window_bounds = array<i64: 1, 16>}, {pipeline_mode = #tpu.pipeline_mode<synchronous>, transform_indices = @transform_7, window_bounds = array<i64: 1, 16>}, {pipeline_mode = #tpu.pipeline_mode<synchronous>, transform_indices = @transform_8, window_bounds = array<i64: 1, 16>}, {pipeline_mode = #tpu.pipeline_mode<synchronous>, transform_indices = @transform_9, window_bounds = array<i64: 16, 32>}, {pipeline_mode = #tpu.pipeline_mode<synchronous>, transform_indices = @transform_10, window_bounds = array<i64: 1, 32>}, {pipeline_mode = #tpu.pipeline_mode<synchronous>, transform_indices = @transform_11, window_bounds = array<i64: 32, 16>}, {pipeline_mode = #tpu.pipeline_mode<synchronous>, transform_indices = @transform_12, window_bounds = array<i64: 1, 16>}, {transform_indices = @transform_13, window_bounds = array<i64: 1, 32, 16>}]} {
    %c0 = arith.constant 0 : index
    %c0_0 = arith.constant 0 : index
    %c0_1 = arith.constant 0 : index
    %0 = vector.load %arg1[%c0, %c0_0, %c0_1] : memref<1x32x16xf32, #tpu.memory_space<vmem>>, vector<1x32x16xf32>
    %1 = vector.shape_cast %0 : vector<1x32x16xf32> to vector<32x16xf32>
    %c0_2 = arith.constant 0 : index
    %c0_3 = arith.constant 0 : index
    %2 = vector.load %arg2[%c0_2, %c0_3] : memref<1x16xf32, #tpu.memory_space<vmem>>, vector<1x16xf32>
    %c0_4 = arith.constant 0 : index
    %c0_5 = arith.constant 0 : index
    %3 = vector.load %arg3[%c0_4, %c0_5] : memref<1x16xf32, #tpu.memory_space<vmem>>, vector<1x16xf32>
    %cst = arith.constant dense<0.000000e+00> : vector<32xf32>
    %4 = vector.multi_reduction <add>, %1, %cst [1] : vector<32x16xf32> to vector<32xf32>
    %5 = vector.shape_cast %4 : vector<32xf32> to vector<32x1xf32>
    %cst_6 = arith.constant 1.600000e+01 : f32
    %6 = vector.broadcast %cst_6 : f32 to vector<32x1xf32>
    %7 = arith.divf %5, %6 : vector<32x1xf32>
    %8 = vector.broadcast %7 : vector<32x1xf32> to vector<32x16xf32>
    %9 = arith.subf %1, %8 : vector<32x16xf32>
    %10 = arith.mulf %9, %9 : vector<32x16xf32>
    %cst_7 = arith.constant dense<0.000000e+00> : vector<32xf32>
    %11 = vector.multi_reduction <add>, %10, %cst_7 [1] : vector<32x16xf32> to vector<32xf32>
    %12 = vector.shape_cast %11 : vector<32xf32> to vector<32x1xf32>
    %cst_8 = arith.constant 1.600000e+01 : f32
    %13 = vector.broadcast %cst_8 : f32 to vector<32x1xf32>
    %14 = arith.divf %12, %13 : vector<32x1xf32>
    %15 = vector.broadcast %7 : vector<32x1xf32> to vector<32x16xf32>
    %16 = arith.subf %1, %15 : vector<32x16xf32>
    %cst_9 = arith.constant 9.99999996E-13 : f32
    %17 = vector.broadcast %cst_9 : f32 to vector<32x1xf32>
    %18 = arith.addf %14, %17 : vector<32x1xf32>
    %19 = math.rsqrt %18 : vector<32x1xf32>
    %20 = vector.broadcast %19 : vector<32x1xf32> to vector<32x16xf32>
    %21 = arith.mulf %16, %20 : vector<32x16xf32>
    %22 = vector.broadcast %2 : vector<1x16xf32> to vector<32x16xf32>
    %23 = arith.mulf %21, %22 : vector<32x16xf32>
    %24 = vector.broadcast %3 : vector<1x16xf32> to vector<32x16xf32>
    %25 = arith.addf %23, %24 : vector<32x16xf32>
    %26 = arith.truncf %25 : vector<32x16xf32> to vector<32x16xbf16>
    %c0_10 = arith.constant 0 : index
    %c0_11 = arith.constant 0 : index
    %27 = vector.load %arg4[%c0_10, %c0_11] : memref<16x48xbf16, #tpu.memory_space<vmem>>, vector<16x48xbf16>
    %cst_12 = arith.constant dense<0.000000e+00> : vector<32x48xf32>
    %28 = tpu.matmul %26, %27, %cst_12 {dimension_numbers = #tpu.dot_dimension_numbers<[1], [0], [0], [1], [0, 0, 1, 1], [], []>} : vector<32x16xbf16>, vector<16x48xbf16>, vector<32x48xf32> -> vector<32x48xf32>
    %c0_13 = arith.constant 0 : index
    %c0_14 = arith.constant 0 : index
    %29 = vector.load %arg5[%c0_13, %c0_14] : memref<1x48xf32, #tpu.memory_space<vmem>>, vector<1x48xf32>
    %30 = vector.broadcast %29 : vector<1x48xf32> to vector<32x48xf32>
    %31 = arith.addf %28, %30 : vector<32x48xf32>
    %32 = vector.extract_strided_slice %31 {offsets = [0, 0], sizes = [32, 8], strides = [1, 1]} : vector<32x48xf32> to vector<32x8xf32>
    %cst_15 = arith.constant 0.353553385 : f32
    %33 = vector.broadcast %cst_15 : f32 to vector<32x8xf32>
    %34 = arith.mulf %32, %33 : vector<32x8xf32>
    %35 = arith.truncf %34 : vector<32x8xf32> to vector<32x8xbf16>
    %c0_16 = arith.constant 0 : index
    %c0_17 = arith.constant 0 : index
    %c0_18 = arith.constant 0 : index
    %36 = vector.load %arg15[%c0_16, %c0_17, %c0_18] : memref<6x32x8xbf16, #tpu.memory_space<vmem>>, vector<1x32x8xbf16>
    %37 = vector.shape_cast %36 : vector<1x32x8xbf16> to vector<32x8xbf16>
    %38 = vector.shape_cast %35 : vector<32x8xbf16> to vector<1x32x8xbf16>
    tpu.vector_store %arg15[%c0_16, %c0_17, %c0_18], %38 {strides = array<i32>} : memref<6x32x8xbf16, #tpu.memory_space<vmem>>, vector<1x32x8xbf16>,
    %39 = vector.extract_strided_slice %31 {offsets = [0, 16], sizes = [32, 8], strides = [1, 1]} : vector<32x48xf32> to vector<32x8xf32>
    %40 = arith.truncf %39 : vector<32x8xf32> to vector<32x8xbf16>
    %c2 = arith.constant 2 : index
    %c0_19 = arith.constant 0 : index
    %c0_20 = arith.constant 0 : index
    %41 = vector.load %arg15[%c2, %c0_19, %c0_20] : memref<6x32x8xbf16, #tpu.memory_space<vmem>>, vector<1x32x8xbf16>
    %42 = vector.shape_cast %41 : vector<1x32x8xbf16> to vector<32x8xbf16>
    %43 = vector.shape_cast %40 : vector<32x8xbf16> to vector<1x32x8xbf16>
    tpu.vector_store %arg15[%c2, %c0_19, %c0_20], %43 {strides = array<i32>} : memref<6x32x8xbf16, #tpu.memory_space<vmem>>, vector<1x32x8xbf16>,
    %44 = vector.extract_strided_slice %31 {offsets = [0, 32], sizes = [32, 8], strides = [1, 1]} : vector<32x48xf32> to vector<32x8xf32>
    %45 = arith.truncf %44 : vector<32x8xf32> to vector<32x8xbf16>
    %c4 = arith.constant 4 : index
    %c0_21 = arith.constant 0 : index
    %c0_22 = arith.constant 0 : index
    %46 = vector.load %arg15[%c4, %c0_21, %c0_22] : memref<6x32x8xbf16, #tpu.memory_space<vmem>>, vector<1x32x8xbf16>
    %47 = vector.shape_cast %46 : vector<1x32x8xbf16> to vector<32x8xbf16>
    %48 = vector.shape_cast %45 : vector<32x8xbf16> to vector<1x32x8xbf16>
    tpu.vector_store %arg15[%c4, %c0_21, %c0_22], %48 {strides = array<i32>} : memref<6x32x8xbf16, #tpu.memory_space<vmem>>, vector<1x32x8xbf16>,
    %49 = vector.extract_strided_slice %31 {offsets = [0, 8], sizes = [32, 8], strides = [1, 1]} : vector<32x48xf32> to vector<32x8xf32>
    %cst_23 = arith.constant 0.353553385 : f32
    %50 = vector.broadcast %cst_23 : f32 to vector<32x8xf32>
    %51 = arith.mulf %49, %50 : vector<32x8xf32>
    %52 = arith.truncf %51 : vector<32x8xf32> to vector<32x8xbf16>
    %c1 = arith.constant 1 : index
    %c0_24 = arith.constant 0 : index
    %c0_25 = arith.constant 0 : index
    %53 = vector.load %arg15[%c1, %c0_24, %c0_25] : memref<6x32x8xbf16, #tpu.memory_space<vmem>>, vector<1x32x8xbf16>
    %54 = vector.shape_cast %53 : vector<1x32x8xbf16> to vector<32x8xbf16>
    %55 = vector.shape_cast %52 : vector<32x8xbf16> to vector<1x32x8xbf16>
    tpu.vector_store %arg15[%c1, %c0_24, %c0_25], %55 {strides = array<i32>} : memref<6x32x8xbf16, #tpu.memory_space<vmem>>, vector<1x32x8xbf16>,
    %56 = vector.extract_strided_slice %31 {offsets = [0, 24], sizes = [32, 8], strides = [1, 1]} : vector<32x48xf32> to vector<32x8xf32>
    %57 = arith.truncf %56 : vector<32x8xf32> to vector<32x8xbf16>
    %c3 = arith.constant 3 : index
    %c0_26 = arith.constant 0 : index
    %c0_27 = arith.constant 0 : index
    %58 = vector.load %arg15[%c3, %c0_26, %c0_27] : memref<6x32x8xbf16, #tpu.memory_space<vmem>>, vector<1x32x8xbf16>
    %59 = vector.shape_cast %58 : vector<1x32x8xbf16> to vector<32x8xbf16>
    %60 = vector.shape_cast %57 : vector<32x8xbf16> to vector<1x32x8xbf16>
    tpu.vector_store %arg15[%c3, %c0_26, %c0_27], %60 {strides = array<i32>} : memref<6x32x8xbf16, #tpu.memory_space<vmem>>, vector<1x32x8xbf16>,
    %61 = vector.extract_strided_slice %31 {offsets = [0, 40], sizes = [32, 8], strides = [1, 1]} : vector<32x48xf32> to vector<32x8xf32>
    %62 = arith.truncf %61 : vector<32x8xf32> to vector<32x8xbf16>
    %c5 = arith.constant 5 : index
    %c0_28 = arith.constant 0 : index
    %c0_29 = arith.constant 0 : index
    %63 = vector.load %arg15[%c5, %c0_28, %c0_29] : memref<6x32x8xbf16, #tpu.memory_space<vmem>>, vector<1x32x8xbf16>
    %64 = vector.shape_cast %63 : vector<1x32x8xbf16> to vector<32x8xbf16>
    %65 = vector.shape_cast %62 : vector<32x8xbf16> to vector<1x32x8xbf16>
    tpu.vector_store %arg15[%c5, %c0_28, %c0_29], %65 {strides = array<i32>} : memref<6x32x8xbf16, #tpu.memory_space<vmem>>, vector<1x32x8xbf16>,
    %cst_30 = arith.constant 0.000000e+00 : f32
    %66 = vector.broadcast %cst_30 : f32 to vector<32x16xf32>
    %c0_31 = arith.constant 0 : index
    %c0_32 = arith.constant 0 : index
    %67 = vector.load %arg16[%c0_31, %c0_32] : memref<32x16xf32, #tpu.memory_space<vmem>>, vector<32x16xf32>
    tpu.vector_store %arg16[%c0_31, %c0_32], %66 {strides = array<i32>} : memref<32x16xf32, #tpu.memory_space<vmem>>, vector<32x16xf32>,
    %c0_i32 = arith.constant 0 : i32
    %c2_i32 = arith.constant 2 : i32
    %68 = arith.addi %c0_i32, %c2_i32 : i32
    %c1_i32 = arith.constant 1 : i32
    scf.for %arg17 = %c0_i32 to %68 step %c1_i32  : i32 {
      %153 = arith.index_cast %arg17 : i32 to index
      %c0_75 = arith.constant 0 : index
      %c0_76 = arith.constant 0 : index
      %154 = vector.load %arg15[%153, %c0_75, %c0_76] : memref<6x32x8xbf16, #tpu.memory_space<vmem>>, vector<1x32x8xbf16>
      %155 = vector.shape_cast %154 : vector<1x32x8xbf16> to vector<32x8xbf16>
      %c2_i32_77 = arith.constant 2 : i32
      %156 = arith.addi %c2_i32_77, %arg17 : i32
      %157 = arith.index_cast %156 : i32 to index
      %c0_78 = arith.constant 0 : index
      %c0_79 = arith.constant 0 : index
      %158 = vector.load %arg15[%157, %c0_78, %c0_79] : memref<6x32x8xbf16, #tpu.memory_space<vmem>>, vector<1x32x8xbf16>
      %159 = vector.shape_cast %158 : vector<1x32x8xbf16> to vector<32x8xbf16>
      %c4_i32 = arith.constant 4 : i32
      %160 = arith.addi %c4_i32, %arg17 : i32
      %161 = arith.index_cast %160 : i32 to index
      %c0_80 = arith.constant 0 : index
      %c0_81 = arith.constant 0 : index
      %162 = vector.load %arg15[%161, %c0_80, %c0_81] : memref<6x32x8xbf16, #tpu.memory_space<vmem>>, vector<1x32x8xbf16>
      %163 = vector.shape_cast %162 : vector<1x32x8xbf16> to vector<32x8xbf16>
      %cst_82 = arith.constant dense<0.000000e+00> : vector<32x32xf32>
      %164 = tpu.matmul %155, %159, %cst_82 {dimension_numbers = #tpu.dot_dimension_numbers<[1], [1], [0], [0], [0, 0, 1, 0], [], []>} : vector<32x8xbf16>, vector<32x8xbf16>, vector<32x32xf32> -> vector<32x32xf32>
      %cst_83 = arith.constant dense<0xFF800000> : vector<32xf32>
      %165 = vector.multi_reduction <maximumf>, %164, %cst_83 [1] : vector<32x32xf32> to vector<32xf32>
      %166 = vector.shape_cast %165 : vector<32xf32> to vector<32x1xf32>
      %167 = vector.broadcast %166 : vector<32x1xf32> to vector<32x32xf32>
      %168 = arith.subf %164, %167 : vector<32x32xf32>
      %169 = math.exp %168 : vector<32x32xf32>
      %cst_84 = arith.constant dense<0.000000e+00> : vector<32xf32>
      %170 = vector.multi_reduction <add>, %169, %cst_84 [1] : vector<32x32xf32> to vector<32xf32>
      %171 = vector.shape_cast %170 : vector<32xf32> to vector<32x1xf32>
      %172 = tpu.reciprocal %171 {approx = true} : vector<32x1xf32> -> vector<32x1xf32>
      %173 = vector.broadcast %172 : vector<32x1xf32> to vector<32x32xf32>
      %174 = arith.mulf %169, %173 : vector<32x32xf32>
      %175 = arith.truncf %174 : vector<32x32xf32> to vector<32x32xbf16>
      %cst_85 = arith.constant dense<0.000000e+00> : vector<32x8xf32>
      %176 = tpu.matmul %175, %163, %cst_85 {dimension_numbers = #tpu.dot_dimension_numbers<[1], [0], [0], [1], [0, 0, 1, 1], [], []>} : vector<32x32xbf16>, vector<32x8xbf16>, vector<32x8xf32> -> vector<32x8xf32>
      %c0_86 = arith.constant 0 : index
      %c0_87 = arith.constant 0 : index
      %177 = vector.load %arg16[%c0_86, %c0_87] : memref<32x16xf32, #tpu.memory_space<vmem>>, vector<32x16xf32>
      %178 = arith.truncf %176 : vector<32x8xf32> to vector<32x8xbf16>
      %179 = arith.index_cast %arg17 : i32 to index
      %c0_88 = arith.constant 0 : index
      %c0_89 = arith.constant 0 : index
      %180 = vector.load %arg6[%179, %c0_88, %c0_89] : memref<2x8x16xbf16, #tpu.memory_space<vmem>>, vector<1x8x16xbf16>
      %181 = vector.shape_cast %180 : vector<1x8x16xbf16> to vector<8x16xbf16>
      %cst_90 = arith.constant dense<0.000000e+00> : vector<32x16xf32>
      %182 = tpu.matmul %178, %181, %cst_90 {dimension_numbers = #tpu.dot_dimension_numbers<[1], [0], [0], [1], [0, 0, 1, 1], [], []>} : vector<32x8xbf16>, vector<8x16xbf16>, vector<32x16xf32> -> vector<32x16xf32>
      %183 = arith.addf %177, %182 : vector<32x16xf32>
      %c0_91 = arith.constant 0 : index
      %c0_92 = arith.constant 0 : index
      %184 = vector.load %arg16[%c0_91, %c0_92] : memref<32x16xf32, #tpu.memory_space<vmem>>, vector<32x16xf32>
      tpu.vector_store %arg16[%c0_91, %c0_92], %183 {strides = array<i32>} : memref<32x16xf32, #tpu.memory_space<vmem>>, vector<32x16xf32>,
    }
    %c2_i32_33 = arith.constant 2 : i32
    %c0_34 = arith.constant 0 : index
    %c0_35 = arith.constant 0 : index
    %69 = vector.load %arg16[%c0_34, %c0_35] : memref<32x16xf32, #tpu.memory_space<vmem>>, vector<32x16xf32>
    %70 = arith.addf %1, %69 : vector<32x16xf32>
    %c0_36 = arith.constant 0 : index
    %c0_37 = arith.constant 0 : index
    %71 = vector.load %arg7[%c0_36, %c0_37] : memref<1x16xf32, #tpu.memory_space<vmem>>, vector<1x16xf32>
    %72 = vector.broadcast %71 : vector<1x16xf32> to vector<32x16xf32>
    %73 = arith.addf %70, %72 : vector<32x16xf32>
    %c0_38 = arith.constant 0 : index
    %c0_39 = arith.constant 0 : index
    %74 = vector.load %arg8[%c0_38, %c0_39] : memref<1x16xf32, #tpu.memory_space<vmem>>, vector<1x16xf32>
    %c0_40 = arith.constant 0 : index
    %c0_41 = arith.constant 0 : index
    %75 = vector.load %arg9[%c0_40, %c0_41] : memref<1x16xf32, #tpu.memory_space<vmem>>, vector<1x16xf32>
    %cst_42 = arith.constant dense<0.000000e+00> : vector<32xf32>
    %76 = vector.multi_reduction <add>, %73, %cst_42 [1] : vector<32x16xf32> to vector<32xf32>
    %77 = vector.shape_cast %76 : vector<32xf32> to vector<32x1xf32>
    %cst_43 = arith.constant 1.600000e+01 : f32
    %78 = vector.broadcast %cst_43 : f32 to vector<32x1xf32>
    %79 = arith.divf %77, %78 : vector<32x1xf32>
    %80 = vector.broadcast %79 : vector<32x1xf32> to vector<32x16xf32>
    %81 = arith.subf %73, %80 : vector<32x16xf32>
    %82 = arith.mulf %81, %81 : vector<32x16xf32>
    %cst_44 = arith.constant dense<0.000000e+00> : vector<32xf32>
    %83 = vector.multi_reduction <add>, %82, %cst_44 [1] : vector<32x16xf32> to vector<32xf32>
    %84 = vector.shape_cast %83 : vector<32xf32> to vector<32x1xf32>
    %cst_45 = arith.constant 1.600000e+01 : f32
    %85 = vector.broadcast %cst_45 : f32 to vector<32x1xf32>
    %86 = arith.divf %84, %85 : vector<32x1xf32>
    %87 = vector.broadcast %79 : vector<32x1xf32> to vector<32x16xf32>
    %88 = arith.subf %73, %87 : vector<32x16xf32>
    %cst_46 = arith.constant 9.99999996E-13 : f32
    %89 = vector.broadcast %cst_46 : f32 to vector<32x1xf32>
    %90 = arith.addf %86, %89 : vector<32x1xf32>
    %91 = math.rsqrt %90 : vector<32x1xf32>
    %92 = vector.broadcast %91 : vector<32x1xf32> to vector<32x16xf32>
    %93 = arith.mulf %88, %92 : vector<32x16xf32>
    %94 = vector.broadcast %74 : vector<1x16xf32> to vector<32x16xf32>
    %95 = arith.mulf %93, %94 : vector<32x16xf32>
    %96 = vector.broadcast %75 : vector<1x16xf32> to vector<32x16xf32>
    %97 = arith.addf %95, %96 : vector<32x16xf32>
    %98 = arith.truncf %97 : vector<32x16xf32> to vector<32x16xbf16>
    %c0_47 = arith.constant 0 : index
    %c0_48 = arith.constant 0 : index
    %99 = vector.load %arg10[%c0_47, %c0_48] : memref<16x32xbf16, #tpu.memory_space<vmem>>, vector<16x32xbf16>
    %cst_49 = arith.constant dense<0.000000e+00> : vector<32x32xf32>
    %100 = tpu.matmul %98, %99, %cst_49 {dimension_numbers = #tpu.dot_dimension_numbers<[1], [0], [0], [1], [0, 0, 1, 1], [], []>} : vector<32x16xbf16>, vector<16x32xbf16>, vector<32x32xf32> -> vector<32x32xf32>
    %c0_50 = arith.constant 0 : index
    %c0_51 = arith.constant 0 : index
    %101 = vector.load %arg11[%c0_50, %c0_51] : memref<1x32xf32, #tpu.memory_space<vmem>>, vector<1x32xf32>
    %102 = vector.broadcast %101 : vector<1x32xf32> to vector<32x32xf32>
    %103 = arith.addf %100, %102 : vector<32x32xf32>
    %cst_52 = arith.constant 5.000000e-01 : f32
    %104 = vector.broadcast %cst_52 : f32 to vector<32x32xf32>
    %105 = arith.mulf %104, %103 : vector<32x32xf32>
    %cst_53 = arith.constant 0.707106769 : f32
    %106 = vector.broadcast %cst_53 : f32 to vector<32x32xf32>
    %107 = arith.mulf %103, %106 : vector<32x32xf32>
    %108 = math.absf %107 : vector<32x32xf32>
    %cst_54 = arith.constant 0.327591091 : f32
    %109 = vector.broadcast %cst_54 : f32 to vector<32x32xf32>
    %110 = arith.mulf %109, %108 : vector<32x32xf32>
    %cst_55 = arith.constant 1.000000e+00 : f32
    %111 = vector.broadcast %cst_55 : f32 to vector<32x32xf32>
    %112 = arith.addf %111, %110 : vector<32x32xf32>
    %cst_56 = arith.constant 1.000000e+00 : f32
    %113 = vector.broadcast %cst_56 : f32 to vector<32x32xf32>
    %114 = arith.divf %113, %112 : vector<32x32xf32>
    %cst_57 = arith.constant 1.06140542 : f32
    %115 = vector.broadcast %cst_57 : f32 to vector<32x32xf32>
    %116 = arith.mulf %114, %115 : vector<32x32xf32>
    %cst_58 = arith.constant -1.45315206 : f32
    %117 = vector.broadcast %cst_58 : f32 to vector<32x32xf32>
    %118 = arith.addf %117, %116 : vector<32x32xf32>
    %119 = arith.mulf %114, %118 : vector<32x32xf32>
    %cst_59 = arith.constant 1.42141378 : f32
    %120 = vector.broadcast %cst_59 : f32 to vector<32x32xf32>
    %121 = arith.addf %120, %119 : vector<32x32xf32>
    %122 = arith.mulf %114, %121 : vector<32x32xf32>
    %cst_60 = arith.constant -0.284496725 : f32
    %123 = vector.broadcast %cst_60 : f32 to vector<32x32xf32>
    %124 = arith.addf %123, %122 : vector<32x32xf32>
    %125 = arith.mulf %114, %124 : vector<32x32xf32>
    %cst_61 = arith.constant 0.254829586 : f32
    %126 = vector.broadcast %cst_61 : f32 to vector<32x32xf32>
    %127 = arith.addf %126, %125 : vector<32x32xf32>
    %128 = arith.mulf %114, %127 : vector<32x32xf32>
    %129 = arith.mulf %108, %108 : vector<32x32xf32>
    %cst_62 = arith.constant 0.000000e+00 : f32
    %130 = vector.broadcast %cst_62 : f32 to vector<32x32xf32>
    %131 = arith.subf %130, %129 : vector<32x32xf32>
    %132 = math.exp %131 : vector<32x32xf32>
    %133 = arith.mulf %128, %132 : vector<32x32xf32>
    %cst_63 = arith.constant 1.000000e+00 : f32
    %134 = vector.broadcast %cst_63 : f32 to vector<32x32xf32>
    %135 = arith.subf %134, %133 : vector<32x32xf32>
    %cst_64 = arith.constant 0.000000e+00 : f32
    %136 = vector.broadcast %cst_64 : f32 to vector<32x32xf32>
    %137 = arith.cmpf oge, %107, %136 : vector<32x32xf32>
    %cst_65 = arith.constant 0.000000e+00 : f32
    %138 = vector.broadcast %cst_65 : f32 to vector<32x32xf32>
    %139 = arith.subf %138, %135 : vector<32x32xf32>
    %140 = arith.select %137, %135, %139 : vector<32x32xi1>, vector<32x32xf32>
    %cst_66 = arith.constant 1.000000e+00 : f32
    %141 = vector.broadcast %cst_66 : f32 to vector<32x32xf32>
    %142 = arith.addf %141, %140 : vector<32x32xf32>
    %143 = arith.mulf %105, %142 : vector<32x32xf32>
    %144 = arith.truncf %143 : vector<32x32xf32> to vector<32x32xbf16>
    %c0_67 = arith.constant 0 : index
    %c0_68 = arith.constant 0 : index
    %145 = vector.load %arg12[%c0_67, %c0_68] : memref<32x16xbf16, #tpu.memory_space<vmem>>, vector<32x16xbf16>
    %cst_69 = arith.constant dense<0.000000e+00> : vector<32x16xf32>
    %146 = tpu.matmul %144, %145, %cst_69 {dimension_numbers = #tpu.dot_dimension_numbers<[1], [0], [0], [1], [0, 0, 1, 1], [], []>} : vector<32x32xbf16>, vector<32x16xbf16>, vector<32x16xf32> -> vector<32x16xf32>
    %c0_70 = arith.constant 0 : index
    %c0_71 = arith.constant 0 : index
    %147 = vector.load %arg13[%c0_70, %c0_71] : memref<1x16xf32, #tpu.memory_space<vmem>>, vector<1x16xf32>
    %148 = vector.broadcast %147 : vector<1x16xf32> to vector<32x16xf32>
    %149 = arith.addf %146, %148 : vector<32x16xf32>
    %150 = arith.addf %73, %149 : vector<32x16xf32>
    %151 = vector.shape_cast %150 : vector<32x16xf32> to vector<1x32x16xf32>
    %c0_72 = arith.constant 0 : index
    %c0_73 = arith.constant 0 : index
    %c0_74 = arith.constant 0 : index
    %152 = vector.load %arg14[%c0_72, %c0_73, %c0_74] : memref<1x32x16xf32, #tpu.memory_space<vmem>>, vector<1x32x16xf32>
    tpu.vector_store %arg14[%c0_72, %c0_73, %c0_74], %151 {strides = array<i32>} : memref<1x32x16xf32, #tpu.memory_space<vmem>>, vector<1x32x16xf32>,
    return
  }
  func.func @transform_0(%arg0: i32) -> (i32, i32, i32) {
    %c0_i32 = arith.constant 0 : i32
    %c0_i32_0 = arith.constant 0 : i32
    %c0_i32_1 = arith.constant 0 : i32
    return %arg0, %c0_i32, %c0_i32_0 : i32, i32, i32
  }
  func.func @transform_1(%arg0: i32) -> (i32, i32) {
    %c0_i32 = arith.constant 0 : i32
    %c0_i32_0 = arith.constant 0 : i32
    %c0_i32_1 = arith.constant 0 : i32
    return %c0_i32, %c0_i32_0 : i32, i32
  }
  func.func @transform_2(%arg0: i32) -> (i32, i32) {
    %c0_i32 = arith.constant 0 : i32
    %c0_i32_0 = arith.constant 0 : i32
    %c0_i32_1 = arith.constant 0 : i32
    return %c0_i32, %c0_i32_0 : i32, i32
  }
  func.func @transform_3(%arg0: i32) -> (i32, i32) {
    %c0_i32 = arith.constant 0 : i32
    %c0_i32_0 = arith.constant 0 : i32
    %c0_i32_1 = arith.constant 0 : i32
    return %c0_i32, %c0_i32_0 : i32, i32
  }
  func.func @transform_4(%arg0: i32) -> (i32, i32) {
    %c0_i32 = arith.constant 0 : i32
    %c0_i32_0 = arith.constant 0 : i32
    %c0_i32_1 = arith.constant 0 : i32
    return %c0_i32, %c0_i32_0 : i32, i32
  }
  func.func @transform_5(%arg0: i32) -> (i32, i32, i32) {
    %c0_i32 = arith.constant 0 : i32
    %c0_i32_0 = arith.constant 0 : i32
    %c0_i32_1 = arith.constant 0 : i32
    %c0_i32_2 = arith.constant 0 : i32
    return %c0_i32, %c0_i32_0, %c0_i32_1 : i32, i32, i32
  }
  func.func @transform_6(%arg0: i32) -> (i32, i32) {
    %c0_i32 = arith.constant 0 : i32
    %c0_i32_0 = arith.constant 0 : i32
    %c0_i32_1 = arith.constant 0 : i32
    return %c0_i32, %c0_i32_0 : i32, i32
  }
  func.func @transform_7(%arg0: i32) -> (i32, i32) {
    %c0_i32 = arith.constant 0 : i32
    %c0_i32_0 = arith.constant 0 : i32
    %c0_i32_1 = arith.constant 0 : i32
    return %c0_i32, %c0_i32_0 : i32, i32
  }
  func.func @transform_8(%arg0: i32) -> (i32, i32) {
    %c0_i32 = arith.constant 0 : i32
    %c0_i32_0 = arith.constant 0 : i32
    %c0_i32_1 = arith.constant 0 : i32
    return %c0_i32, %c0_i32_0 : i32, i32
  }
  func.func @transform_9(%arg0: i32) -> (i32, i32) {
    %c0_i32 = arith.constant 0 : i32
    %c0_i32_0 = arith.constant 0 : i32
    %c0_i32_1 = arith.constant 0 : i32
    return %c0_i32, %c0_i32_0 : i32, i32
  }
  func.func @transform_10(%arg0: i32) -> (i32, i32) {
    %c0_i32 = arith.constant 0 : i32
    %c0_i32_0 = arith.constant 0 : i32
    %c0_i32_1 = arith.constant 0 : i32
    return %c0_i32, %c0_i32_0 : i32, i32
  }
  func.func @transform_11(%arg0: i32) -> (i32, i32) {
    %c0_i32 = arith.constant 0 : i32
    %c0_i32_0 = arith.constant 0 : i32
    %c0_i32_1 = arith.constant 0 : i32
    return %c0_i32, %c0_i32_0 : i32, i32
  }
  func.func @transform_12(%arg0: i32) -> (i32, i32) {
    %c0_i32 = arith.constant 0 : i32
    %c0_i32_0 = arith.constant 0 : i32
    %c0_i32_1 = arith.constant 0 : i32
    return %c0_i32, %c0_i32_0 : i32, i32
  }
  func.func @transform_13(%arg0: i32) -> (i32, i32, i32) {
    %c0_i32 = arith.constant 0 : i32
    %c0_i32_0 = arith.constant 0 : i32
    %c0_i32_1 = arith.constant 0 : i32
    return %arg0, %c0_i32, %c0_i32_0 : i32, i32, i32
  }
}

module attributes {stable_mosaic.version = 11 : i64} {
  func.func @_head_loss_kernel(%arg0: i32, %arg1: memref<1x8x16xf32, #tpu.memory_space<vmem>>, %arg2: memref<1x16xf32, #tpu.memory_space<vmem>>, %arg3: memref<1x16xf32, #tpu.memory_space<vmem>>, %arg4: memref<16x384xbf16, #tpu.memory_space<vmem>>, %arg5: memref<1x384xf32, #tpu.memory_space<vmem>>, %arg6: memref<1x8x384xf32, #tpu.memory_space<vmem>>, %arg7: memref<1x1x1xf32, #tpu.memory_space<vmem>>) attributes {dimension_semantics = [#tpu.dimension_semantics<parallel>], iteration_bounds = array<i64: 2>, scalar_prefetch = 0 : i64, scratch_operands = 0 : i64, tpu.core_type = #tpu.core_type<tc>, window_params = [{transform_indices = @transform_0, window_bounds = array<i64: 1, 8, 16>}, {pipeline_mode = #tpu.pipeline_mode<synchronous>, transform_indices = @transform_1, window_bounds = array<i64: 1, 16>}, {pipeline_mode = #tpu.pipeline_mode<synchronous>, transform_indices = @transform_2, window_bounds = array<i64: 1, 16>}, {pipeline_mode = #tpu.pipeline_mode<synchronous>, transform_indices = @transform_3, window_bounds = array<i64: 16, 384>}, {pipeline_mode = #tpu.pipeline_mode<synchronous>, transform_indices = @transform_4, window_bounds = array<i64: 1, 384>}, {transform_indices = @transform_5, window_bounds = array<i64: 1, 8, 384>}, {transform_indices = @transform_6, window_bounds = array<i64: 1, 1, 1>}]} {
    %c0 = arith.constant 0 : index
    %c0_0 = arith.constant 0 : index
    %c0_1 = arith.constant 0 : index
    %0 = vector.load %arg1[%c0, %c0_0, %c0_1] : memref<1x8x16xf32, #tpu.memory_space<vmem>>, vector<1x8x16xf32>
    %1 = vector.shape_cast %0 : vector<1x8x16xf32> to vector<8x16xf32>
    %c0_2 = arith.constant 0 : index
    %c0_3 = arith.constant 0 : index
    %2 = vector.load %arg2[%c0_2, %c0_3] : memref<1x16xf32, #tpu.memory_space<vmem>>, vector<1x16xf32>
    %c0_4 = arith.constant 0 : index
    %c0_5 = arith.constant 0 : index
    %3 = vector.load %arg3[%c0_4, %c0_5] : memref<1x16xf32, #tpu.memory_space<vmem>>, vector<1x16xf32>
    %cst = arith.constant dense<0.000000e+00> : vector<8xf32>
    %4 = vector.multi_reduction <add>, %1, %cst [1] : vector<8x16xf32> to vector<8xf32>
    %5 = vector.shape_cast %4 : vector<8xf32> to vector<8x1xf32>
    %cst_6 = arith.constant 1.600000e+01 : f32
    %6 = vector.broadcast %cst_6 : f32 to vector<8x1xf32>
    %7 = arith.divf %5, %6 : vector<8x1xf32>
    %8 = vector.broadcast %7 : vector<8x1xf32> to vector<8x16xf32>
    %9 = arith.subf %1, %8 : vector<8x16xf32>
    %10 = arith.mulf %9, %9 : vector<8x16xf32>
    %cst_7 = arith.constant dense<0.000000e+00> : vector<8xf32>
    %11 = vector.multi_reduction <add>, %10, %cst_7 [1] : vector<8x16xf32> to vector<8xf32>
    %12 = vector.shape_cast %11 : vector<8xf32> to vector<8x1xf32>
    %cst_8 = arith.constant 1.600000e+01 : f32
    %13 = vector.broadcast %cst_8 : f32 to vector<8x1xf32>
    %14 = arith.divf %12, %13 : vector<8x1xf32>
    %15 = vector.broadcast %7 : vector<8x1xf32> to vector<8x16xf32>
    %16 = arith.subf %1, %15 : vector<8x16xf32>
    %cst_9 = arith.constant 9.99999996E-13 : f32
    %17 = vector.broadcast %cst_9 : f32 to vector<8x1xf32>
    %18 = arith.addf %14, %17 : vector<8x1xf32>
    %19 = math.rsqrt %18 : vector<8x1xf32>
    %20 = vector.broadcast %19 : vector<8x1xf32> to vector<8x16xf32>
    %21 = arith.mulf %16, %20 : vector<8x16xf32>
    %22 = vector.broadcast %2 : vector<1x16xf32> to vector<8x16xf32>
    %23 = arith.mulf %21, %22 : vector<8x16xf32>
    %24 = vector.broadcast %3 : vector<1x16xf32> to vector<8x16xf32>
    %25 = arith.addf %23, %24 : vector<8x16xf32>
    %26 = arith.truncf %25 : vector<8x16xf32> to vector<8x16xbf16>
    %c0_10 = arith.constant 0 : index
    %c0_11 = arith.constant 0 : index
    %27 = vector.load %arg4[%c0_10, %c0_11] : memref<16x384xbf16, #tpu.memory_space<vmem>>, vector<16x384xbf16>
    %cst_12 = arith.constant dense<0.000000e+00> : vector<8x384xf32>
    %28 = tpu.matmul %26, %27, %cst_12 {dimension_numbers = #tpu.dot_dimension_numbers<[1], [0], [0], [1], [0, 0, 1, 1], [], []>} : vector<8x16xbf16>, vector<16x384xbf16>, vector<8x384xf32> -> vector<8x384xf32>
    %c0_13 = arith.constant 0 : index
    %c0_14 = arith.constant 0 : index
    %29 = vector.load %arg5[%c0_13, %c0_14] : memref<1x384xf32, #tpu.memory_space<vmem>>, vector<1x384xf32>
    %30 = vector.broadcast %29 : vector<1x384xf32> to vector<8x384xf32>
    %31 = arith.addf %28, %30 : vector<8x384xf32>
    %c0_15 = arith.constant 0 : index
    %c0_16 = arith.constant 0 : index
    %c0_17 = arith.constant 0 : index
    %32 = vector.load %arg6[%c0_15, %c0_16, %c0_17] : memref<1x8x384xf32, #tpu.memory_space<vmem>>, vector<1x8x384xf32>
    %33 = vector.shape_cast %32 : vector<1x8x384xf32> to vector<8x384xf32>
    %34 = arith.subf %31, %33 : vector<8x384xf32>
    %35 = arith.mulf %34, %34 : vector<8x384xf32>
    %cst_18 = arith.constant dense<0.000000e+00> : vector<8xf32>
    %36 = vector.multi_reduction <add>, %35, %cst_18 [1] : vector<8x384xf32> to vector<8xf32>
    %37 = vector.shape_cast %36 : vector<8xf32> to vector<8x1xf32>
    %cst_19 = arith.constant dense<0.000000e+00> : vector<1xf32>
    %38 = vector.multi_reduction <add>, %37, %cst_19 [0] : vector<8x1xf32> to vector<1xf32>
    %39 = vector.shape_cast %38 : vector<1xf32> to vector<1x1xf32>
    %40 = vector.shape_cast %39 : vector<1x1xf32> to vector<1x1x1xf32>
    %c0_20 = arith.constant 0 : index
    %c0_21 = arith.constant 0 : index
    %c0_22 = arith.constant 0 : index
    %41 = vector.load %arg7[%c0_20, %c0_21, %c0_22] : memref<1x1x1xf32, #tpu.memory_space<vmem>>, vector<1x1x1xf32>
    tpu.vector_store %arg7[%c0_20, %c0_21, %c0_22], %40 {strides = array<i32>} : memref<1x1x1xf32, #tpu.memory_space<vmem>>, vector<1x1x1xf32>,
    return
  }
  func.func @transform_0(%arg0: i32) -> (i32, i32, i32) {
    %c0_i32 = arith.constant 0 : i32
    %c0_i32_0 = arith.constant 0 : i32
    %c0_i32_1 = arith.constant 0 : i32
    return %arg0, %c0_i32, %c0_i32_0 : i32, i32, i32
  }
  func.func @transform_1(%arg0: i32) -> (i32, i32) {
    %c0_i32 = arith.constant 0 : i32
    %c0_i32_0 = arith.constant 0 : i32
    %c0_i32_1 = arith.constant 0 : i32
    return %c0_i32, %c0_i32_0 : i32, i32
  }
  func.func @transform_2(%arg0: i32) -> (i32, i32) {
    %c0_i32 = arith.constant 0 : i32
    %c0_i32_0 = arith.constant 0 : i32
    %c0_i32_1 = arith.constant 0 : i32
    return %c0_i32, %c0_i32_0 : i32, i32
  }
  func.func @transform_3(%arg0: i32) -> (i32, i32) {
    %c0_i32 = arith.constant 0 : i32
    %c0_i32_0 = arith.constant 0 : i32
    %c0_i32_1 = arith.constant 0 : i32
    return %c0_i32, %c0_i32_0 : i32, i32
  }
  func.func @transform_4(%arg0: i32) -> (i32, i32) {
    %c0_i32 = arith.constant 0 : i32
    %c0_i32_0 = arith.constant 0 : i32
    %c0_i32_1 = arith.constant 0 : i32
    return %c0_i32, %c0_i32_0 : i32, i32
  }
  func.func @transform_5(%arg0: i32) -> (i32, i32, i32) {
    %c0_i32 = arith.constant 0 : i32
    %c0_i32_0 = arith.constant 0 : i32
    %c0_i32_1 = arith.constant 0 : i32
    return %arg0, %c0_i32, %c0_i32_0 : i32, i32, i32
  }
  func.func @transform_6(%arg0: i32) -> (i32, i32, i32) {
    %c0_i32 = arith.constant 0 : i32
    %c0_i32_0 = arith.constant 0 : i32
    %c0_i32_1 = arith.constant 0 : i32
    return %arg0, %c0_i32, %c0_i32_0 : i32, i32, i32
  }
}

</mosaic_0001>

<bundles_post_ra>
// kernel: tpu_custom_call.1
= control target key start
LH: loop header
LB: loop body
LE: loop exit
PB: predicated region body
PF: predicated region fallthrough
CT: control target
= control target key end

     0   :  { %6 = vsyncpa [#allocation3], 0  ;;  %s305_s0 = inlined_call_operand.hbm [shape: f32[8,128], index: 0, kind: input, shape index: {}]   ;;  %s306_s1 = inlined_call_operand.hbm [shape: f32[8,128], index: 1, kind: output, shape index: {}]  }
   0x1   :  { %7 = vsyncpa [#allocation4], 0  ;;  %s258_s6 = smov 0  }
   0x2 LB: > { %s145_s7 = sadd.s32 4294967295, %s244_s6   ;;  %p146_p0 = scmp.ge.s32.totalorder %s244_s6, 1  ;;  %s244_s6 = sphi %s258_s6, %s13_s6  }
   0x3   : > { %p60_p1 = scmp.lt.s32.totalorder %s244_s6, 3  ;;  %p270_p3 = scmp.eq.s32.totalorder %s145_s7, 0 }
   0x4   : > { %s246_s10 = smov [#allocation2]  }
   0x5   : > { %p266_p2 = pnand %p146_p0, %p60_p1  ;;  %s73_s11 = sshll.u32 %s246_s10, 4  ;;  %s74_s11 = int_to_ptr.vmem [resolvable:$true] %s73_s11 }
   0x6   : > { %s191_s12 = scalar_lea.vmem %s74_s11, 128  ;;  %p199_p10 = scmp.lt.s32.totalorder %s74_s11, %s74_s11 }
   0x7   : > { %p162_p4 = pneg %p266_p2  ;;  %p192_p7 = scmp.ne.s32.totalorder %s74_s11, %s191_s12 }
   0x8   : > { %p200_p11 = scmp.lt.s32.totalorder %s191_s12, %s191_s12 }
   0x9   : > { %p163_p5 = pnand %p270_p3, %p162_p4 }
   0xa   : > { %p201_p12 = por %p200_p11, %p199_p10 }
   0xb   : > { %p182_p6 = pneg %p163_p5 }
   0xd   : > { %p194_p8 = pnand %p192_p7, %p182_p6 }
   0xf   : > { %p195_p9 = pneg %p194_p8 }
  0x11   : > { %p202_p13 = pnand %p201_p12, %p195_p9 }
  0x13   : > { %205 = shalt.err (!%p202_p13)
}
  0x14   : > { %165 = dma.hbm_to_vmem [thread:$0]  (!%p163_p5), %s305_s0, 128, %s74_s11, [#allocation3]  }
  0x15   : > { %86 = sbr.rel (%p266_p2) target bundleno = 42 (0x2a), region = 24 }
  0x1a   : > { %235 = dma.done.wait (%p270_p3), [#allocation3], 128  }
  0x1b   : > { %237 = vsyncadd (%p270_p3), [#allocation3], 4294967168  ;;  %s247_s15 = smov [#allocation5]   ;;  %v96_v0 = vld [vmem:[#allocation2] sm:$0xff]  ;;  %p287_p0 = scmp.eq.s32.totalorder %s145_s7, 1 }
  0x1c   : > { %s106_s16 = sshll.u32 %s247_s15, 4  ;;  %v97_v1 = vadd.f32 1.0, %v96_v0  ;;  %s107_s16 = int_to_ptr.vmem [resolvable:$true] %s106_s16 }
  0x1d   : > { %s206_s18 = scalar_lea.vmem %s107_s16, 128  ;;  %p213_p5 = scmp.lt.s32.totalorder %s107_s16, %s107_s16 }
  0x1e   : > { %98 = vst [vmem:[#allocation5] sm:$0xff] %v97_v1  ;;  %p207_p1 = scmp.ne.s32.totalorder %s107_s16, %s206_s18  ;;  %p214_p6 = scmp.lt.s32.totalorder %s206_s18, %s206_s18 }
  0x20   : > { %p208_p2 = pnand %p207_p1, %p287_p0  ;;  %p215_p7 = por %p214_p6, %p213_p5 }
  0x22   : > { %p209_p4 = pneg %p208_p2 }
  0x24   : > { %p216_p3 = pnand %p215_p7, %p209_p4 }
  0x26   : > { %219 = shalt.err (!%p216_p3)
}
  0x27   : > { %159 = dma.vmem_to_hbm [thread:$0]  (%p287_p0), %s107_s16, 128, %s306_s1, [#allocation4]  }
  0x28   : > { %239 = dma.done.wait (%p287_p0), [#allocation4], 128  }
  0x29   : > { %241 = vsyncadd (%p287_p0), [#allocation4], 4294967168 }
  0x2a PF: > { %s13_s6 = sadd.s32 1, %s244_s6  }
  0x2b   : > { %p10_p8 = scmp.ge.s32.totalorder %s13_s6, 4  }
  0x2d   :  { %12 = sbr.rel (!%p10_p8) target bundleno = 2 (0x2), region = 53 }
  0x32   :  { %119 = vsyncpa [#allocation3], 1 }
  0x33   :  { %121 = vsyncpa [#allocation3 + $0x1], 1 }
  0x34   :  { %122 = vsyncpa [#allocation4], 1 }
  0x35   :  { %124 = vsyncpa [#allocation4 + $0x1], 1 }

// kernel: videomae_pretrain_forward.6
= control target key start
LH: loop header
LB: loop body
LE: loop exit
PB: predicated region body
PF: predicated region fallthrough
CT: control target
= control target key end

     0   :  { %s797_s15 = smov 0   ;;  %s903_s0 = inlined_call_operand.vmem [shape: bf16[2,24,384], index: 0, kind: input, shape index: {}]   ;;  %s904_s1 = inlined_call_operand.vmem [shape: bf16[384,32], index: 1, kind: input, shape index: {}]   ;;  %s905_s2 = inlined_call_operand.vmem [shape: f32[1,32], index: 2, kind: input, shape index: {}]   ;;  %s906_s3 = inlined_call_operand.vmem [shape: f32[2,24,32], index: 3, kind: input, shape index: {}]   ;;  %s907_s4 = inlined_call_operand.vmem [shape: f32[2,24,32], index: 4, kind: output, shape index: {}]  }
   0x1 LB: > { %s624_s16 = sadd.s32 4294967295, %s770_s15   ;;  %p628_p0 = scmp.ge.s32.totalorder %s770_s15, 1  ;;  %s770_s15 = sphi %s797_s15, %s14_s15  }
   0x2   : > { %p172_p1 = scmp.lt.s32.totalorder %s770_s15, 3 }
   0x4   : > { %p173_p2 = pnand %p628_p0, %p172_p1 }
   0x5   : > { %p203_p3 = scmp.lt.s32.totalorder (!%p173_p2), %s624_s16, 1 }
   0x6   : > { %176 = sbr.rel (%p173_p2) target bundleno = 256 (0x100), region = 36 }
   0xb   : > { %v733_v0 = vld [vmem:[%s904_s1 + $0x78] sm:$0xff]   ;;  %v736_v3 = vld [vmem:[%s904_s1 + $0x70] sm:$0xff]   ;;  %v739_v6 = vld [vmem:[%s904_s1 + $0x68] sm:$0xff]   ;;  %s909_s16 = smov (!%p203_p3, %s624_s16), 1  ;;  %vm553_vm0 = vcmask 261120  }
   0xc   : > { %v734_v1 = vld [vmem:[%s904_s1 + $0x38] sm:$0xff]   ;;  %665 = vmatprep.subr.bf16.mxu0 %v733_v0  ;;  %v737_v4 = vld [vmem:[%s904_s1 + $0x30] sm:$0xff]   ;;  %v740_v7 = vld [vmem:[%s904_s1 + $0x28] sm:$0xff]   ;;  %s723_s27 = smul.u32 36, %s909_s16 }
   0xd   : > { %v735_v2 = vld [vmem:[%s904_s1 + $0xb8] sm:$0xff]   ;;  %666 = vmatpush3.bf16.msra.mxu0 %v734_v1  ;;  %v738_v5 = vld [vmem:[%s904_s1 + $0xb0] sm:$0xff]   ;;  %v741_v8 = vld [vmem:[%s904_s1 + $0xa8] sm:$0xff]   ;;  %s724_s21 = smul.u32 24, %s909_s16 }
   0xe   : > { %703 = vmatprep.subr.bf16.mxu1 %v735_v2  ;;  %667 = vmatprep.subr.bf16.mxu0 %v736_v3  ;;  %v742_v9 = vld [vmem:[%s904_s1 + $0x60] sm:$0xff]   ;;  %v745_v12 = vld [vmem:[%s904_s1 + $0x58] sm:$0xff]   ;;  %v748_v15 = vld [vmem:[%s904_s1 + $0x50] sm:$0xff]   ;;  %s207_s10 = scalar_lea.vmem %s903_s0, %s723_s27 }
   0xf   : > { %704 = vmatpush3.bf16.msra.mxu1 %v735_v2  ;;  %v743_v10 = vld [vmem:[%s904_s1 + $0x20] sm:$0xff]   ;;  %v747_v13 = vld [vmem:[%s904_s1 + $0x98] sm:$0xff]   ;;  %v750_v16 = vld [vmem:[%s904_s1 + $0x90] sm:$0xff]   ;;  %s212_s26 = scalar_lea.vmem %s906_s3, %s724_s21  ;;  %s217_s28 = scalar_lea.vmem %s907_s4, %s724_s21 }
  0x10   : > { %705 = vmatprep.subr.bf16.mxu1 %v738_v5  ;;  %v744_v11 = vld [vmem:[%s904_s1 + $0xa0] sm:$0xff]   ;;  %v746_v14 = vld [vmem:[%s904_s1 + $0x18] sm:$0xff]   ;;  %v749_v17 = vld [vmem:[%s904_s1 + $0x10] sm:$0xff]  }
  0x11   : > { %668 = vmatpush3.bf16.msra.mxu0 %v737_v4  ;;  %v751_v18 = vld [vmem:[%s904_s1 + $0x48] sm:$0xff]   ;;  %v754_v21 = vld [vmem:[%s904_s1 + $0x40] sm:$0xff]   ;;  %v223_v26 = vld [vmem:[%s207_s10 + $0x18] sm:$0xff] }
  0x12   : > { %669 = vmatprep.subr.bf16.mxu0 %v739_v6  ;;  %v753_v19 = vld [vmem:[%s904_s1 + $0x88] sm:$0xff]   ;;  %v759_v22 = vld [vmem:[%s207_s10 + $0x4] ss:$12 sps:$4 sm:$0xff]   ;;  %v637_v28 = vcombine.high %v223_v26, %v223_v26  ;;  %v761_v29 = vld [vmem:[%s207_s10 + $0x20] ss:$0 sps:$4 sm:$0xff]   ;;  %v636_v30 = vcombine.low %v223_v26, %v223_v26 }
  0x13   : > { %706 = vmatpush3.bf16.msra.mxu1 %v738_v5  ;;  %v752_v20 = vld [vmem:[%s904_s1 + $0x8] sm:$0xff]   ;;  %v756_v23 = vld [vmem:[%s904_s1 + $0x80] sm:$0xff]   ;;  %483 = vmatprep.mubr.bf16.mxu0 %v759_v22  ;;  %v549_v55 = vld [vmem:[%s212_s26 + $0x10] sm:$0xff] }
  0x14   : > { %707 = vmatprep.subr.bf16.mxu1 %v741_v8  ;;  %v760_v24 = vld [vmem:[%s207_s10 + $0x8] ss:$12 sps:$4 sm:$0xff]   ;;  %v755_v25 = vld [vmem:[%s904_s1] sm:$0xff]  }
  0x15   : > { %670 = vmatpush3.bf16.msra.mxu0 %v740_v7  ;;  %719 = vmatprep.mubr.bf16.mxu1 %v760_v24  ;;  %v757_v27 = vld [vmem:[%s207_s10] ss:$12 sps:$4 sm:$0xff]  }
  0x16   : > { %671 = vmatprep.subr.bf16.mxu0 %v742_v9  ;;  %v632_v34 = vld [vmem:[%s905_s2] ss:$0 sm:$0xff]  ;;  %v548_v48 = vld [vmem:[%s212_s26 + $0x8] sm:$0xff] }
  0x17   : > { %708 = vmatpush3.bf16.msra.mxu1 %v741_v8  ;;  %v547_v39 = vld [vmem:[%s212_s26] sm:$0xff] }
  0x18   : > { %709 = vmatprep.subr.bf16.mxu1 %v744_v11 }
  0x19   : > { %672 = vmatpush3.bf16.msra.mxu0 %v743_v10 }
  0x1a   : > { %673 = vmatprep.subr.bf16.mxu0 %v745_v12 }
  0x1b   : > { %710 = vmatpush3.bf16.msra.mxu1 %v744_v11 }
  0x1c   : > { %711 = vmatprep.subr.bf16.mxu1 %v747_v13 }
  0x1d   : > { %674 = vmatpush3.bf16.msra.mxu0 %v746_v14 }
  0x1e   : > { %675 = vmatprep.subr.bf16.mxu0 %v748_v15 }
  0x1f   : > { %712 = vmatpush3.bf16.msra.mxu1 %v747_v13 }
  0x20   : > { %713 = vmatprep.subr.bf16.mxu1 %v750_v16 }
  0x21   : > { %676 = vmatpush3.bf16.msra.mxu0 %v749_v17 }
  0x22   : > { %677 = vmatprep.subr.bf16.mxu0 %v751_v18 }
  0x23   : > { %714 = vmatpush3.bf16.msra.mxu1 %v750_v16 }
  0x24   : > { %715 = vmatprep.subr.bf16.mxu1 %v753_v19 }
  0x25   : > { %678 = vmatpush3.bf16.msra.mxu0 %v752_v20 }
  0x26   : > { %679 = vmatprep.subr.bf16.mxu0 %v754_v21 }
  0x27   : > { %716 = vmatpush3.bf16.msra.mxu1 %v753_v19 }
  0x28   : > { %717 = vmatprep.subr.bf16.mxu1 %v756_v23 }
  0x29   : > { %680 = vmatpush3.bf16.msra.mxu0 %v755_v25 }
  0x2b   : > { %718 = vmatpush3.bf16.msra.mxu1 %v756_v23 }
  0x2c   : > { %484 = vmatmul.mubr.bf16.vlgmr.msra.gmra.mxu0 %v757_v27 }
  0x2d   : > { %491 = vmatprep.mubr.bf16.mxu0 %v637_v28 }
  0x2e   : > { %720 = vmatmul.mubr.bf16.vlgmr.msra.gmra.mxu1 %v761_v29 }
  0x34   : > { %492 = vmatmul.mubr.bf16.gmra.mxu0 %v636_v30 }
  0xec   : > { %v681_v31 = vpop.f32.mrf.mxu0 }
  0xee   : > { %v682_v32 = vpop.f32.mrf.mxu0  ;;  %v721_v33 = vpop.f32.mrf.mxu1 }
  0xef   : > { %v683_v35 = vadd.f32 %v682_v32, %v681_v31 }
  0xf0   : > { %v684_v36 = vpop.f32.mrf.mxu0  ;;  %v533_v37 = vpop.f32.mrf.mxu1 }
  0xf1   : > { %v486_v38 = vadd.f32 %v683_v35, %v632_v34 }
  0xf2   : > { %v685_v40 = vpop.f32.mrf.mxu0  ;;  %v722_v41 = vpop.f32.mrf.mxu1 }
  0xf3   : > { %v534_v42 = vadd.f32 %v533_v37, %v486_v38  ;;  %v686_v43 = vadd.f32 %v685_v40, %v684_v36 }
  0xf4   : > { %v687_v44 = vpop.f32.mrf.mxu0  ;;  %v536_v47 = vpop.f32.mrf.mxu1 }
  0xf5   : > { %v550_v45 = vadd.f32 %v547_v39, %v534_v42  ;;  %v489_v46 = vadd.f32 %v686_v43, %v632_v34 }
  0xf6   : > { %v688_v49 = vpop.f32.mrf.mxu0 }
  0xf7   : > { %554 = vst.msk [vmem:[%s217_s28] sm:$0xff] %vm553_vm0, %v550_v45  ;;  %v537_v50 = vadd.f32 %v536_v47, %v489_v46  ;;  %v689_v51 = vadd.f32 %v688_v49, %v687_v44 }
  0xf8   : > { %v690_v52 = vpop.f32.mrf.mxu0 }
  0xf9   : > { %v551_v53 = vadd.f32 %v548_v48, %v537_v50  ;;  %v494_v54 = vadd.f32 %v689_v51, %v632_v34 }
  0xfa   : > { %v691_v56 = vpop.f32.mrf.mxu0 }
  0xfb   : > { %555 = vst.msk [vmem:[%s217_s28 + $0x8] sm:$0xff] %vm553_vm0, %v551_v53  ;;  %v542_v57 = vadd.f32 %v721_v33, %v494_v54 }
  0xfd   : > { %v552_v58 = vadd.f32 %v549_v55, %v542_v57 }
  0xff   : > { %556 = vst.msk [vmem:[%s217_s28 + $0x10] sm:$0xff] %vm553_vm0, %v552_v58 }
 0x100 PF: > { %s14_s15 = sadd.s32 1, %s770_s15  }
 0x101   : > { %p11_p4 = scmp.ge.s32.totalorder %s14_s15, 4  }
 0x103   :  { %13 = sbr.rel (!%p11_p4) target bundleno = 1 (0x1), region = 69 }

// kernel: videomae_pretrain_forward.9
= control target key start
LH: loop header
LB: loop body
LE: loop exit
PB: predicated region body
PF: predicated region fallthrough
CT: control target
= control target key end

     0   :  { %s418_s12 = smov 0   ;;  %s444_s0 = inlined_call_operand.vmem [shape: bf16[2,24,32], index: 0, kind: input, shape index: {}]   ;;  %s445_s1 = inlined_call_operand.vmem [shape: bf16[32,16], index: 1, kind: input, shape index: {}]   ;;  %s446_s2 = inlined_call_operand.vmem [shape: f32[2,24,16], index: 2, kind: input, shape index: {}]   ;;  %s447_s3 = inlined_call_operand.vmem [shape: f32[2,24,16], index: 3, kind: output, shape index: {}]  }
   0x1 LB: > { %s348_s13 = sadd.s32 4294967295, %s396_s12   ;;  %p352_p0 = scmp.ge.s32.totalorder %s396_s12, 1  ;;  %s396_s12 = sphi %s418_s12, %s13_s12  }
   0x2   : > { %p147_p1 = scmp.lt.s32.totalorder %s396_s12, 3 }
   0x4   : > { %p148_p2 = pnand %p352_p0, %p147_p1 }
   0x5   : > { %p176_p3 = scmp.lt.s32.totalorder (!%p148_p2), %s348_s13, 1 }
   0x6   : > { %151 = sbr.rel (%p148_p2) target bundleno = 222 (0xde), region = 32 }
   0xb   : > { %v386_v0 = vld [vmem:[%s445_s1 + $0x8] sm:$0xff]   ;;  %v387_v1 = vld [vmem:[%s445_s1] sm:$0xff]   ;;  %s449_s13 = smov (!%p176_p3, %s348_s13), 1  ;;  %vm222_vm0 = vcmask 261120   ;;  %vm277_vm1 = vcmask 130048  }
   0xc   : > { %368 = vmatprep.subr.bf16.mxu0 %v386_v0  ;;  %s376_s18 = smul.u32 12, %s449_s13 }
   0xd   : > { %369 = vmatpush3.bf16.msra.mxu0 %v386_v0  ;;  %s377_s22 = smul.u32 24, %s449_s13 }
   0xe   : > { %370 = vmatprep.subr.bf16.mxu0 %v387_v1  ;;  %s180_s21 = scalar_lea.vmem %s444_s0, %s376_s18 }
   0xf   : > { %v388_v2 = vld [vmem:[%s180_s21] sm:$0xff]   ;;  %v389_v3 = vld [vmem:[%s180_s21 + $0x8] ss:$0 sps:$4 sm:$0xff]   ;;  %s185_s25 = scalar_lea.vmem %s446_s2, %s377_s22  ;;  %s190_s28 = scalar_lea.vmem %s447_s3, %s377_s22 }
  0x10   : > { %372 = vmatprep.mubr.msk.bf16.mxu0 %vm222_vm0, %v388_v2  ;;  %v201_v4 = vld [vmem:[%s185_s25 + $0x10] sm:$0xff]  ;;  %v199_v6 = vld [vmem:[%s185_s25] sm:$0xff]  ;;  %v200_v11 = vld [vmem:[%s185_s25 + $0x8] sm:$0xff] }
  0x11   : > { %371 = vmatpush3.bf16.msra.mxu0 %v387_v1 }
  0x14   : > { %373 = vmatmul.mubr.msk.bf16.vlgmr.msra.gmra.mxu0 %vm222_vm0, %v389_v3 }
  0xd4   : > { %v374_v5 = vpop.f32.mrf.mxu0 }
  0xd5   : > { %v272_v7 = vadd.f32 %v374_v5, %v201_v4 }
  0xd6   : > { %v263_v8 = vpop.f32.mrf.mxu0 }
  0xd7   : > { %280 = vst.msk [vmem:[%s190_s28 + $0x10] sm:$0xff] %vm277_vm1, %v272_v7  ;;  %v264_v9 = vadd.f32 %v263_v8, %v199_v6 }
  0xd8   : > { %v375_v10 = vpop.f32.mrf.mxu0 }
  0xd9   : > { %278 = vst.msk [vmem:[%s190_s28] sm:$0xff] %vm277_vm1, %v264_v9 }
  0xda   : > { %v266_v12 = vpop.f32.mrf.mxu0 }
  0xdb   : > { %v267_v13 = vadd.f32 %v266_v12, %v200_v11 }
  0xdd   : > { %279 = vst.msk [vmem:[%s190_s28 + $0x8] sm:$0xff] %vm277_vm1, %v267_v13 }
  0xde PF: > { %s13_s12 = sadd.s32 1, %s396_s12  }
  0xdf   : > { %p10_p4 = scmp.ge.s32.totalorder %s13_s12, 4  }
  0xe1   :  { %12 = sbr.rel (!%p10_p4) target bundleno = 1 (0x1), region = 65 }

// kernel: videomae_pretrain_forward.7
= control target key start
LH: loop header
LB: loop body
LE: loop exit
PB: predicated region body
PF: predicated region fallthrough
CT: control target
= control target key end

     0   :  { %s1765_s25 = smov 0   ;;  %s2003_s0 = inlined_call_operand.vmem [shape: f32[2,24,32], index: 0, kind: input, shape index: {}]   ;;  %s2004_s1 = inlined_call_operand.vmem [shape: f32[1,32], index: 1, kind: input, shape index: {}, may-alias: {1,7}]   ;;  %s2005_s2 = inlined_call_operand.vmem [shape: f32[1,32], index: 2, kind: input, shape index: {}, may-alias: {2,6,8,12}]   ;;  %s2006_s3 = inlined_call_operand.vmem [shape: bf16[32,96], index: 3, kind: input, shape index: {}]   ;;  %s2007_s4 = inlined_call_operand.vmem [shape: f32[1,96], index: 4, kind: input, shape index: {}]   ;;  %s2008_s5 = inlined_call_operand.vmem [shape: bf16[4,8,32], index: 5, kind: input, shape index: {}]   ;;  %s2009_s6 = inlined_call_operand.vmem [shape: f32[1,32], index: 6, kind: input, shape index: {}, may-alias: {2,6,8,12}]   ;;  %s2010_s7 = inlined_call_operand.vmem [shape: f32[1,32], index: 7, kind: input, shape index: {}, may-alias: {1,7}]   ;;  %s2011_s8 = inlined_call_operand.vmem [shape: f32[1,32], index: 8, kind: input, shape index: {}, may-alias: {2,6,8,12}]   ;;  %s2012_s9 = inlined_call_operand.vmem [shape: bf16[32,64], index: 9, kind: input, shape index: {}]   ;;  %s2013_s10 = inlined_call_operand.vmem [shape: f32[1,64], index: 10, kind: input, shape index: {}]   ;;  %s2014_s11 = inlined_call_operand.vmem [shape: bf16[64,32], index: 11, kind: input, shape index: {}]   ;;  %s2015_s12 = inlined_call_operand.vmem [shape: f32[1,32], index: 12, kind: input, shape index: {}, may-alias: {2,6,8,12}]   ;;  %s2016_s13 = inlined_call_operand.vmem [shape: f32[2,24,32], index: 13, kind: output, shape index: {}]  }
   0x1 LB: > { %s1445_s26 = sadd.s32 4294967295, %s1677_s25   ;;  %p1449_p0 = scmp.ge.s32.totalorder %s1677_s25, 1  ;;  %s1677_s25 = sphi %s1765_s25, %s23_s25  }
   0x2   : > { %p387_p1 = scmp.lt.s32.totalorder %s1677_s25, 3 }
   0x4   : > { %p388_p2 = pnand %p1449_p0, %p387_p1 }
   0x5   : > { %p431_p3 = scmp.lt.s32.totalorder (!%p388_p2), %s1445_s26, 1  ;;  %s1684_s28 = smov (!%p388_p2), 56  }
   0x6   : > { %391 = sbr.rel (%p388_p2) target bundleno = 2433 (0x981), region = 72  ;;  %s1685_s29 = smov (!%p388_p2), 96  }
   0x7   : > { %s1687_s14 = smov (!%p388_p2), 64   ;;  %s1688_s15 = smov (!%p388_p2), 88  }
   0x8   : > { %s1689_s17 = smov (!%p388_p2), 48   ;;  %s1690_s18 = smov (!%p388_p2), 120  }
   0x9   : > { %s1691_s19 = smov (!%p388_p2), 72   ;;  %s1692_s20 = smov (!%p388_p2), 104  }
   0xa   : > { %s1693_s21 = smov (!%p388_p2), 112   ;;  %s1694_s22 = smov (!%p388_p2), 40  }
   0xb   : > { %vm447_vm0 = vcmask 261120   ;;  %v1683_v0 = vmov 0.0   ;;  %s2018_s26 = smov (!%p431_p3, %s1445_s26), 1  ;;  %v1617_v22 = vld [vmem:[%s2006_s3 + $0x8] sm:$0xff]   ;;  %v1618_v23 = vld [vmem:[%s2006_s3] sm:$0xff]   ;;  %vm601_vm1 = vcmask 60416  }
   0xc   : > { %758 = vst.msk [vmem:[#allocation3] sm:$0xff] %vm447_vm0, %v1683_v0  ;;  %759 = vst.msk [vmem:[#allocation3 + $0x8] sm:$0xff] %vm447_vm0, %v1683_v0  ;;  %s1588_s27 = smul.u32 24, %s2018_s26  ;;  %1534 = vmatprep.subr.bf16.mxu0 %v1617_v22  ;;  %v1452_v35 = vld [vmem:[%s2004_s1] ss:$0 sm:$0xff]  ;;  %s1867_s23 = smov 0  }
   0xd   : > { %760 = vst.msk [vmem:[#allocation3 + $0x10] sm:$0xff] %vm447_vm0, %v1683_v0  ;;  %1535 = vmatpush3.bf16.msra.mxu0 %v1617_v22  ;;  %v1453_v41 = vld [vmem:[%s2005_s2] ss:$0 sm:$0xff] }
   0xe   : > { %s435_s30 = scalar_lea.vmem %s2003_s0, %s1588_s27  ;;  %s1782_s16 = scalar_lea.vmem %s2016_s13, %s1588_s27  ;;  %1536 = vmatprep.subr.bf16.mxu0 %v1618_v23  ;;  %v1454_v49 = vld [vmem:[%s2007_s4] ss:$0 sm:$0xff] }
   0xf   : > { %v1784_v1 = vld [vmem:[%s435_s30] sm:$0xff]  ;;  %v1786_v2 = vld [vmem:[%s435_s30 + $0x10] sm:$0xff]  ;;  %v1788_v3 = vld [vmem:[%s435_s30 + $0x8] sm:$0xff]  ;;  %s1686_s30 = smov 80  }
  0x10   : > { %v448_v4 = vsel %vm447_vm0, %v1784_v1, 0.0  ;;  %v454_v5 = vsel %vm447_vm0, %v1786_v2, 0.0  ;;  %v451_v6 = vsel %vm447_vm0, %v1788_v3, 0.0 }
  0x11   : > { %449 = vadd.xlane.f32.xlu0 %v448_v4  ;;  %455 = vadd.xlane.f32.xlu1 %v454_v5 }
  0x12   : > { %1537 = vmatpush3.bf16.msra.mxu0 %v1618_v23 }
  0x15   : > { %452 = vadd.xlane.f32.xlu0 %v451_v6 }
  0x9a   : > { %v450_v7 = vpop.xlane.xlu0 %449  ;;  %v456_v8 = vpop.xlane.xlu1 %455 }
  0x9b   : > { %v458_v9 = vmul.f32 0.03125, %v450_v7  ;;  %v460_v10 = vmul.f32 0.03125, %v456_v8 }
  0x9d   : > { %v461_v11 = vsub.f32 %v1784_v1, %v458_v9  ;;  %v463_v12 = vsub.f32 %v1786_v2, %v460_v10 }
  0x9e   : > { %v453_v13 = vpop.xlane.xlu0 %452 }
  0x9f   : > { %v459_v14 = vmul.f32 0.03125, %v453_v13  ;;  %v464_v15 = vmul.f32 %v461_v11, %v461_v11  ;;  %v466_v16 = vmul.f32 %v463_v12, %v463_v12 }
  0xa1   : > { %v462_v17 = vsub.f32 %v1788_v3, %v459_v14  ;;  %v467_v18 = vsel %vm447_vm0, %v464_v15, 0.0  ;;  %v473_v19 = vsel %vm447_vm0, %v466_v16, 0.0 }
  0xa2   : > { %468 = vadd.xlane.f32.xlu1 %v467_v18 }
  0xa3   : > { %v465_v20 = vmul.f32 %v462_v17, %v462_v17 }
  0xa5   : > { %v470_v21 = vsel %vm447_vm0, %v465_v20, 0.0 }
  0xa6   : > { %474 = vadd.xlane.f32.xlu1 %v473_v19  ;;  %471 = vadd.xlane.f32.xlu0 %v470_v21 }
 0x12b   : > { %v469_v24 = vpop.xlane.xlu1 %468 }
 0x12c   : > { %v476_v25 = vmul.f32 0.03125, %v469_v24 }
 0x12e   : > { %v479_v26 = vadd.f32 1e-12, %v476_v25 }
 0x12f   : > { %v475_v27 = vpop.xlane.xlu1 %474  ;;  %v472_v28 = vpop.xlane.xlu0 %471 }
 0x130   : > { %1619 = vrsqrt.f32 %v479_v26  ;;  %v478_v29 = vmul.f32 0.03125, %v475_v27  ;;  %v477_v30 = vmul.f32 0.03125, %v472_v28 }
 0x132   : > { %v481_v31 = vadd.f32 1e-12, %v478_v29  ;;  %v480_v32 = vadd.f32 1e-12, %v477_v30 }
 0x134   : > { %1621 = vrsqrt.f32 %v481_v31 }
 0x135   : > { %1623 = vrsqrt.f32 %v480_v32 }
 0x13d   : > { %v1620_v33 = vpop.eup %1619 }
 0x13e   : > { %v485_v34 = vmul.f32 %v1620_v33, %v461_v11 }
 0x140   : > { %v494_v40 = vmul.f32 %v1452_v35, %v485_v34 }
 0x141   : > { %v1622_v36 = vpop.eup %1621 }
 0x142   : > { %v1624_v37 = vpop.eup %1623  ;;  %v487_v38 = vmul.f32 %v1622_v36, %v463_v12  ;;  %v503_v45 = vadd.f32 %v1453_v41, %v494_v40 }
 0x143   : > { %v486_v39 = vmul.f32 %v1624_v37, %v462_v17 }
 0x144   : > { %v496_v42 = vmul.f32 %v1452_v35, %v487_v38 }
 0x145   : > { %v495_v43 = vmul.f32 %v1452_v35, %v486_v39 }
 0x146   : > { %v505_v44 = vadd.f32 %v1453_v41, %v496_v42 }
 0x147   : > { %v504_v46 = vadd.f32 %v1453_v41, %v495_v43 }
 0x148   : > { %v507_v47 = vpack.c.bf16 %v505_v44, %v505_v44 }
 0x149   : > { %v506_v48 = vpack.c.bf16 %v504_v46, %v503_v45 }
 0x14b   : > { %1538 = vmatprep.mubr.msk.bf16.mxu0 %vm447_vm0, %v506_v48 }
 0x14c   : > { %1539 = vmatmul.mubr.msk.bf16.vlgmr.msra.gmra.mxu0 %vm447_vm0, %v507_v47 }
 0x20c   : > { %v1540_v50 = vpop.f32.mrf.mxu0 }
 0x20d   : > { %v580_v51 = vadd.f32 %v1540_v50, %v1454_v49 }
 0x20e   : > { %v571_v52 = vpop.f32.mrf.mxu0 }
 0x20f   : > { %v587_v53 = vmul.f32 0.35355338, %v580_v51  ;;  %v1507_v54 = vpack.c.bf16 %v580_v51, %v580_v51  ;;  %v572_v55 = vadd.f32 %v1454_v49, %v571_v52 }
 0x210   : > { %v1541_v56 = vpop.f32.mrf.mxu0 }
 0x211   : > { %v1504_v57 = vpack.c.bf16 %v587_v53, %v587_v53  ;;  %v585_v58 = vmul.f32 0.35355338, %v572_v55  ;;  %671 = vrot.lane.b32.xlu0 %v1507_v54, %s1684_s28  ;;  %619 = vrot.lane.b32.xlu1 %v1507_v54, %s1685_s29  ;;  %v1505_v63 = vpack.c.bf16 %v572_v55, %v572_v55 }
 0x212   : > { %v574_v59 = vpop.f32.mrf.mxu0 }
 0x213   : > { %604 = vst.msk [vmem:[#allocation2 + $0x8] sm:$0xf] %vm601_vm1, %v1504_v57  ;;  %v1502_v60 = vpack.c.bf16 %v585_v58, %v585_v58  ;;  %v575_v61 = vadd.f32 %v1454_v49, %v574_v59 }
 0x215   : > { %602 = vst.msk [vmem:[#allocation2] sm:$0xf] %vm601_vm1, %v1502_v60  ;;  %v586_v62 = vmul.f32 0.35355338, %v575_v61  ;;  %697 = vrot.lane.b32.xlu0 %v1507_v54, %s1686_s30  ;;  %632 = vrot.lane.b32.xlu1 %v1507_v54, %s1687_s14  ;;  %v1506_v4 = vpack.c.bf16 %v575_v61, %v575_v61 }
 0x217   : > { %v1503_v0 = vpack.c.bf16 %v586_v62, %v586_v62 }
 0x219   : > { %603 = vst.msk [vmem:[#allocation2 + $0x4] sm:$0xf] %vm601_vm1, %v1503_v0  ;;  %658 = vrot.lane.b32.xlu1 %v1507_v54, %s1688_s15  ;;  %615 = vrot.lane.b32.xlu0 %v1505_v63, %s1685_s29 }
 0x21d   : > { %710 = vrot.lane.b32.xlu1 %v1507_v54, %s1689_s17  ;;  %645 = vrot.lane.b32.xlu0 %v1504_v57, %s1690_s18 }
 0x221   : > { %736 = vrot.lane.b32.xlu1 %v1507_v54, %s1691_s19  ;;  %667 = vrot.lane.b32.xlu0 %v1505_v63, %s1684_s28 }
 0x225   : > { %628 = vrot.lane.b32.xlu1 %v1505_v63, %s1687_s14  ;;  %693 = vrot.lane.b32.xlu0 %v1505_v63, %s1686_s30 }
 0x229   : > { %654 = vrot.lane.b32.xlu1 %v1505_v63, %s1688_s15  ;;  %723 = vrot.lane.b32.xlu0 %v1504_v57, %s1692_s20 }
 0x22d   : > { %684 = vrot.lane.b32.xlu1 %v1504_v57, %s1693_s21  ;;  %745 = vrot.lane.b32.xlu0 %v1505_v63, %s1694_s22 }
 0x231   : > { %706 = vrot.lane.b32.xlu1 %v1505_v63, %s1689_s17  ;;  %641 = vrot.lane.b32.xlu0 %v1502_v60, %s1690_s18 }
 0x235   : > { %732 = vrot.lane.b32.xlu1 %v1505_v63, %s1691_s19  ;;  %719 = vrot.lane.b32.xlu0 %v1502_v60, %s1692_s20 }
 0x239   : > { %680 = vrot.lane.b32.xlu1 %v1502_v60, %s1693_s21  ;;  %630 = vrot.lane.b32.xlu0 %v1506_v4, %s1687_s14 }
 0x23d   : > { %617 = vrot.lane.b32.xlu1 %v1506_v4, %s1685_s29  ;;  %656 = vrot.lane.b32.xlu0 %v1506_v4, %s1688_s15 }
 0x241   : > { %669 = vrot.lane.b32.xlu1 %v1506_v4, %s1684_s28  ;;  %708 = vrot.lane.b32.xlu0 %v1506_v4, %s1689_s17 }
 0x245   : > { %695 = vrot.lane.b32.xlu1 %v1506_v4, %s1686_s30  ;;  %734 = vrot.lane.b32.xlu0 %v1506_v4, %s1691_s19 }
 0x249   : > { %643 = vrot.lane.b32.xlu1 %v1503_v0, %s1690_s18  ;;  %682 = vrot.lane.b32.xlu0 %v1503_v0, %s1693_s21 }
 0x24d   : > { %721 = vrot.lane.b32.xlu1 %v1503_v0, %s1692_s20  ;;  %749 = vrot.lane.b32.xlu0 %v1507_v54, %s1694_s22 }
 0x251   : > { %747 = vrot.lane.b32.xlu1 %v1506_v4, %s1694_s22 }
 0x283   : > { %v672_v5 = vpop.permute.xlu0 %671  ;;  %v620_v6 = vpop.permute.xlu1 %619 }
 0x284   : > { %679 = vst.msk [vmem:[#allocation2 + $0x74] sm:$0xf] %vm601_vm1, %v672_v5  ;;  %627 = vst.msk [vmem:[#allocation2 + $0x38] sm:$0xf] %vm601_vm1, %v620_v6 }
 0x287   : > { %v698_v7 = vpop.permute.xlu0 %697  ;;  %v633_v8 = vpop.permute.xlu1 %632 }
 0x288   : > { %705 = vst.msk [vmem:[#allocation2 + $0x50] sm:$0xf] %vm601_vm1, %v698_v7  ;;  %640 = vst.msk [vmem:[#allocation2 + $0x68] sm:$0xf] %vm601_vm1, %v633_v8 }
 0x28b   : > { %v659_v9 = vpop.permute.xlu1 %658  ;;  %v616_v10 = vpop.permute.xlu0 %615 }
 0x28c   : > { %666 = vst.msk [vmem:[#allocation2 + $0x44] sm:$0xf] %vm601_vm1, %v659_v9  ;;  %625 = vst.msk [vmem:[#allocation2 + $0x30] sm:$0xf] %vm601_vm1, %v616_v10 }
 0x28f   : > { %v711_v11 = vpop.permute.xlu1 %710  ;;  %v646_v12 = vpop.permute.xlu0 %645 }
 0x290   : > { %718 = vst.msk [vmem:[#allocation2 + $0x80] sm:$0xf] %vm601_vm1, %v711_v11  ;;  %653 = vst.msk [vmem:[#allocation2 + $0x14] sm:$0xf] %vm601_vm1, %v646_v12 }
 0x293   : > { %v737_v13 = vpop.permute.xlu1 %736  ;;  %v668_v14 = vpop.permute.xlu0 %667 }
 0x294   : > { %744 = vst.msk [vmem:[#allocation2 + $0x5c] sm:$0xf] %vm601_vm1, %v737_v13  ;;  %677 = vst.msk [vmem:[#allocation2 + $0x6c] sm:$0xf] %vm601_vm1, %v668_v14 }
 0x297   : > { %v629_v15 = vpop.permute.xlu1 %628  ;;  %v694_v16 = vpop.permute.xlu0 %693 }
 0x298   : > { %638 = vst.msk [vmem:[#allocation2 + $0x60] sm:$0xf] %vm601_vm1, %v629_v15  ;;  %703 = vst.msk [vmem:[#allocation2 + $0x48] sm:$0xf] %vm601_vm1, %v694_v16 }
 0x29b   : > { %v655_v17 = vpop.permute.xlu1 %654  ;;  %v724_v18 = vpop.permute.xlu0 %723 }
 0x29c   : > { %664 = vst.msk [vmem:[#allocation2 + $0x3c] sm:$0xf] %vm601_vm1, %v655_v17  ;;  %731 = vst.msk [vmem:[#allocation2 + $0x2c] sm:$0xf] %vm601_vm1, %v724_v18 }
 0x29f   : > { %v685_v19 = vpop.permute.xlu1 %684  ;;  %v746_v20 = vpop.permute.xlu0 %745 }
 0x2a0   : > { %692 = vst.msk [vmem:[#allocation2 + $0x20] sm:$0xf] %vm601_vm1, %v685_v19  ;;  %755 = vst.msk [vmem:[#allocation2 + $0x84] sm:$0xf] %vm601_vm1, %v746_v20 }
 0x2a3   : > { %v707_v21 = vpop.permute.xlu1 %706  ;;  %v642_v22 = vpop.permute.xlu0 %641 }
 0x2a4   : > { %716 = vst.msk [vmem:[#allocation2 + $0x78] sm:$0xf] %vm601_vm1, %v707_v21  ;;  %651 = vst.msk [vmem:[#allocation2 + $0xc] sm:$0xf] %vm601_vm1, %v642_v22 }
 0x2a7   : > { %v733_v23 = vpop.permute.xlu1 %732  ;;  %v720_v24 = vpop.permute.xlu0 %719 }
 0x2a8   : > { %742 = vst.msk [vmem:[#allocation2 + $0x54] sm:$0xf] %vm601_vm1, %v733_v23  ;;  %729 = vst.msk [vmem:[#allocation2 + $0x24] sm:$0xf] %vm601_vm1, %v720_v24 }
 0x2ab   : > { %v681_v25 = vpop.permute.xlu1 %680  ;;  %v631_v26 = vpop.permute.xlu0 %630 }
 0x2ac   : > { %690 = vst.msk [vmem:[#allocation2 + $0x18] sm:$0xf] %vm601_vm1, %v681_v25  ;;  %639 = vst.msk [vmem:[#allocation2 + $0x64] sm:$0xf] %vm601_vm1, %v631_v26 }
 0x2af   : > { %v618_v27 = vpop.permute.xlu1 %617  ;;  %v657_v28 = vpop.permute.xlu0 %656 }
 0x2b0   : > { %626 = vst.msk [vmem:[#allocation2 + $0x34] sm:$0xf] %vm601_vm1, %v618_v27  ;;  %665 = vst.msk [vmem:[#allocation2 + $0x40] sm:$0xf] %vm601_vm1, %v657_v28 }
 0x2b3   : > { %v670_v29 = vpop.permute.xlu1 %669  ;;  %v709_v30 = vpop.permute.xlu0 %708 }
 0x2b4   : > { %678 = vst.msk [vmem:[#allocation2 + $0x70] sm:$0xf] %vm601_vm1, %v670_v29  ;;  %717 = vst.msk [vmem:[#allocation2 + $0x7c] sm:$0xf] %vm601_vm1, %v709_v30 }
 0x2b7   : > { %v696_v31 = vpop.permute.xlu1 %695  ;;  %v735_v32 = vpop.permute.xlu0 %734 }
 0x2b8   : > { %704 = vst.msk [vmem:[#allocation2 + $0x4c] sm:$0xf] %vm601_vm1, %v696_v31  ;;  %743 = vst.msk [vmem:[#allocation2 + $0x58] sm:$0xf] %vm601_vm1, %v735_v32 }
 0x2bb   : > { %v644_v33 = vpop.permute.xlu1 %643  ;;  %v683_v34 = vpop.permute.xlu0 %682 }
 0x2bc   : > { %652 = vst.msk [vmem:[#allocation2 + $0x10] sm:$0xf] %vm601_vm1, %v644_v33  ;;  %691 = vst.msk [vmem:[#allocation2 + $0x1c] sm:$0xf] %vm601_vm1, %v683_v34 }
 0x2bf   : > { %v722_v35 = vpop.permute.xlu1 %721  ;;  %v750_v36 = vpop.permute.xlu0 %749 }
 0x2c0   : > { %730 = vst.msk [vmem:[#allocation2 + $0x28] sm:$0xf] %vm601_vm1, %v722_v35  ;;  %757 = vst.msk [vmem:[#allocation2 + $0x8c] sm:$0xf] %vm601_vm1, %v750_v36 }
 0x2c3   : > { %v748_v37 = vpop.permute.xlu1 %747 }
 0x2c4   : > { %756 = vst.msk [vmem:[#allocation2 + $0x88] sm:$0xf] %vm601_vm1, %v748_v37 }
 0x2c5 LB: >> { %s1508_s24 = smul.u32 12, %s1681_s23  ;;  %vm803_vm2 = vcmask 64512   ;;  %vm864_vm3 = vcmask 195584   ;;  %vm915_vm4 = vcmask 1043456   ;;  %s1482_s27 = sshll.u32 %s1681_s23, 2  ;;  %v969_v27 = vld [vmem:[#allocation3 + $0x10] sm:$0xff]  ;;  %s1681_s23 = sphi %s1867_s23, %s766_s23  }
 0x2c6   : >> { %s973_s30 = scalar_lea.vmem %s2008_s5, %s1482_s27  ;;  %v967_v29 = vld [vmem:[#allocation3] sm:$0xff]  ;;  %v968_v34 = vld [vmem:[#allocation3 + $0x8] sm:$0xff]  ;;  %s766_s23 = sadd.s32 1, %s1681_s23  }
 0x2c7   : >> { %s1873_s26 = scalar_lea.vmem [#allocation2], %s1508_s24  ;;  %v974_v19 = vld [vmem:[%s973_s30] sm:$0xf]  ;;  %p763_p4 = scmp.ge.s32.totalorder %s766_s23, 4  }
 0x2c8   : >> { %v982_v20 = vsel %vm915_vm4, %v974_v19, 0  ;;  %vm1314_vm8 = vcmask (%p763_p4), 523264  }
 0x2cb   : >> { %v1625_v38 = vld [vmem:[%s1873_s26 + $0x38] ss:$0 sps:$4 sm:$0xff]   ;;  %v1626_v39 = vld [vmem:[%s1873_s26 + $0x30] sm:$0xff]   ;;  %v1627_v41 = vld [vmem:[%s1873_s26] sm:$0xff]  }
 0x2cc   : >> { %1584 = vmatprep.subr.msk.bf16.mxu0 %vm803_vm2, %v1625_v38  ;;  %v814_v40 = vsel %vm803_vm2, %v1625_v38, 0  ;;  %1546 = vmatprep.mubr.msk.bf16.mxu0 %vm803_vm2, %v1627_v41  ;;  %v811_v42 = vsel %vm803_vm2, %v1626_v39, 0  ;;  %v1628_v43 = vld [vmem:[%s1873_s26 + $0x8] ss:$0 sps:$4 sm:$0xff]   ;;  %v1630_v6 = vld [vmem:[%s1873_s26 + $0x60] sm:$0xff]  }
 0x2cd   : >> { %1543 = vmatpush3.bf16.xpose.msra.mxu0 %v814_v40  ;;  %v1629_v5 = vld [vmem:[%s1873_s26 + $0x68] ss:$0 sps:$4 sm:$0xff]   ;;  %v1485_v38 = vld [vmem:[%s2009_s6] ss:$0 sm:$0xff] (%p763_p4) }
 0x2ce   : >> { %1585 = vmatprep.subr.msk.bf16.mxu0 %vm803_vm2, %v1626_v39  ;;  %1586 = vmatprep.subr.msk.bf16.mxu1 %vm915_vm4, %v1629_v5  ;;  %v917_v7 = vsel %vm915_vm4, %v1629_v5, 0 }
 0x2cf   : >> { %1551 = vmatpush3.bf16.msra.mxu1 %v917_v7 }
 0x2d0   : >> { %1552 = vmatprep.subr.bf16.mxu1 %v1630_v6 }
 0x2d3   : >> { %1553 = vmatpush3.bf16.msra.mxu1 %v1630_v6 }
 0x2d4   : >> { %1587 = vmatprep.subr.msk.bf16.mxu1 %vm915_vm4, %v974_v19 }
 0x2d5   : >> { %1545 = vmatpush3.bf16.xpose.msra.mxu0 %v811_v42 }
 0x2dc   : >> { %1547 = vmatmul.mubr.msk.bf16.vlgmr.msra.gmra.mxu0 %vm803_vm2, %v1628_v43 }
 0x39c   : >> { %v1548_v44 = vpop.f32.mrf.mxu0 }
 0x39d   : >> { %v871_v45 = vsel %vm864_vm3, %v1548_v44, -inf }
 0x39e   : >> { %872 = vmax.xlane.f32.xlu1 %v871_v45  ;;  %v850_v46 = vpop.f32.mrf.mxu0 }
 0x39f   : >> { %v865_v47 = vsel %vm864_vm3, %v850_v46, -inf }
 0x3a0   : >> { %866 = vmax.xlane.f32.xlu0 %v865_v47  ;;  %v1549_v48 = vpop.f32.mrf.mxu0 }
 0x3a2   : >> { %v853_v49 = vpop.f32.mrf.mxu0 }
 0x3a3   : >> { %v868_v50 = vsel %vm864_vm3, %v853_v49, -inf }
 0x3a4   : >> { %869 = vmax.xlane.f32.xlu0 %v868_v50 }
 0x427   : >> { %v873_v51 = vpop.xlane.xlu1 %872 }
 0x428   : >> { %v876_v52 = vsub.f32 %v1548_v44, %v873_v51 }
 0x429   : >> { %v867_v53 = vpop.xlane.xlu0 %866 }
 0x42a   : >> { %v874_v54 = vsub.f32 %v850_v46, %v867_v53  ;;  %v881_v55 = vmul.f32 1.442695, %v876_v52 }
 0x42c   : >> { %v877_v56 = vmul.f32 1.442695, %v874_v54 }
 0x42d   : >> { %v870_v57 = vpop.xlane.xlu0 %869 }
 0x42e   : >> { %1631 = vpow2.f32 %v877_v56  ;;  %v875_v58 = vsub.f32 %v853_v49, %v870_v57 }
 0x42f   : >> { %1633 = vpow2.f32 %v881_v55 }
 0x430   : >> { %v879_v59 = vmul.f32 1.442695, %v875_v58 }
 0x432   : >> { %1635 = vpow2.f32 %v879_v59 }
 0x43b   : >> { %v1632_v60 = vpop.eup %1631 }
 0x43c   : >> { %v883_v61 = vsel %vm864_vm3, %v1632_v60, 0.0  ;;  %v1634_v62 = vpop.eup %1633 }
 0x43d   : >> { %884 = vadd.xlane.f32.xlu1 %v883_v61  ;;  %v889_v0 = vsel %vm864_vm3, %v1634_v62, 0.0 }
 0x43f   : >> { %v1636_v63 = vpop.eup %1635 }
 0x440   : >> { %v886_v4 = vsel %vm864_vm3, %v1636_v63, 0.0 }
 0x441   : >> { %890 = vadd.xlane.f32.xlu1 %v889_v0  ;;  %887 = vadd.xlane.f32.xlu0 %v886_v4 }
 0x4c6   : >> { %v885_v8 = vpop.xlane.xlu1 %884 }
 0x4c7   : >> { %1637 = vrcp.f32 %v885_v8 }
 0x4ca   : >> { %v891_v9 = vpop.xlane.xlu1 %890  ;;  %v888_v10 = vpop.xlane.xlu0 %887 }
 0x4cb   : >> { %1639 = vrcp.f32 %v891_v9 }
 0x4cc   : >> { %1641 = vrcp.f32 %v888_v10 }
 0x4d4   : >> { %v1638_v11 = vpop.eup %1637 }
 0x4d5   : >> { %v895_v15 = vmul.f32 %v1638_v11, %v1632_v60 }
 0x4d8   : >> { %v1640_v12 = vpop.eup %1639 }
 0x4d9   : >> { %v1642_v13 = vpop.eup %1641  ;;  %v897_v14 = vmul.f32 %v1640_v12, %v1634_v62  ;;  %v1643_v62 = vld [vmem:[%s2012_s9 + $0x8] sm:$0xff] (%p763_p4)  }
 0x4da   : >> { %v896_v16 = vmul.f32 %v1642_v13, %v1636_v63  ;;  %v1644_v63 = vld [vmem:[%s2012_s9] sm:$0xff] (%p763_p4)   ;;  %1564 = vmatprep.subr.bf16.mxu0 (%p763_p4), %v1643_v62 }
 0x4db   : >> { %v899_v17 = vpack.c.bf16 %v897_v14, %v897_v14  ;;  %1565 = vmatpush3.bf16.msra.mxu0 (%p763_p4), %v1643_v62  ;;  %v1486_v14 = vld [vmem:[%s2010_s7] ss:$0 sm:$0xff] (%p763_p4) }
 0x4dc   : >> { %v898_v18 = vpack.c.bf16 %v896_v16, %v895_v15  ;;  %1566 = vmatprep.subr.bf16.mxu0 (%p763_p4), %v1644_v63 }
 0x4de   : >> { %1554 = vmatprep.mubr.msk.bf16.mxu1 %vm864_vm3, %v898_v18 }
 0x4df   : >> { %1555 = vmatmul.mubr.msk.bf16.vlgmr.msra.gmra.mxu1 %vm864_vm3, %v899_v17  ;;  %1567 = vmatpush3.bf16.msra.mxu0 (%p763_p4), %v1644_v63 }
 0x4e0   : >> { %1559 = vmatpush3.bf16.msra.mxu1 %v982_v20  ;;  %v1487_v20 = vld [vmem:[%s2011_s8] ss:$0 sm:$0xff] (%p763_p4) }
 0x59f   : >> { %v1556_v21 = vpop.f32.mrf.mxu1 }
 0x5a0   : >> { %v971_v26 = vpack.c.bf16 %v1556_v21, %v1556_v21 }
 0x5a1   : >> { %v953_v22 = vpop.f32.mrf.mxu1 }
 0x5a3   : >> { %v1557_v23 = vpop.f32.mrf.mxu1 }
 0x5a5   : >> { %v956_v24 = vpop.f32.mrf.mxu1 }
 0x5a6   : >> { %v970_v25 = vpack.c.bf16 %v956_v24, %v953_v22 }
 0x5a8   : >> { %1560 = vmatprep.mubr.msk.bf16.mxu1 %vm803_vm2, %v970_v25 }
 0x5a9   : >> { %1561 = vmatmul.mubr.msk.bf16.vlgmr.msra.gmra.mxu1 %vm803_vm2, %v971_v26 }
 0x669   : >> { %v1562_v28 = vpop.f32.mrf.mxu1 }
 0x66a   : >> { %v1034_v30 = vadd.f32 %v1562_v28, %v969_v27  ;;  %v1645_v28 = vld [vmem:[%s2014_s11 + $0x18] sm:$0xff] (%p763_p4)  }
 0x66b   : >> { %v1018_v31 = vpop.f32.mrf.mxu1  ;;  %1572 = vmatprep.subr.bf16.mxu1 (%p763_p4), %v1645_v28 }
 0x66c   : >> { %1037 = vst.msk [vmem:[#allocation3 + $0x10] sm:$0xff] %vm447_vm0, %v1034_v30  ;;  %v1032_v32 = vadd.f32 %v1018_v31, %v967_v29  ;;  %1573 = vmatpush3.bf16.msra.mxu1 (%p763_p4), %v1645_v28  ;;  %v1646_v29 = vld [vmem:[%s2014_s11 + $0x10] sm:$0xff] (%p763_p4)   ;;  %v1647_v30 = vld [vmem:[%s2014_s11 + $0x8] sm:$0xff] (%p763_p4)   ;;  %v1648_v31 = vld [vmem:[%s2014_s11] sm:$0xff] (%p763_p4)  }
 0x66d   : >> { %v1563_v33 = vpop.f32.mrf.mxu1  ;;  %1574 = vmatprep.subr.bf16.mxu1 (%p763_p4), %v1646_v29 }
 0x66e   : >> { %1035 = vst.msk [vmem:[#allocation3] sm:$0xff] %vm447_vm0, %v1032_v32  ;;  %v1488_v32 = vld [vmem:[%s2013_s10] ss:$0 sm:$0xff] (%p763_p4) }
 0x66f   : >> { %v1021_v35 = vpop.f32.mrf.mxu1 }
 0x670   : >> { %v1033_v36 = vadd.f32 %v1021_v35, %v968_v34  ;;  %1575 = vmatpush3.bf16.msra.mxu1 (%p763_p4), %v1646_v29 }
 0x671   : > { %1576 = vmatprep.subr.bf16.mxu1 (%p763_p4), %v1647_v30 }
 0x672   : >> { %1036 = vst.msk [vmem:[#allocation3 + $0x8] sm:$0xff] %vm447_vm0, %v1033_v36  ;;  %765 = sbr.rel (!%p763_p4) target bundleno = 709 (0x2c5), region = 124 }
 0x673   : > { %v1040_v39 = vld [vmem:[#allocation3 + $0x10] sm:$0xff] (%p763_p4) }
 0x674   : > { %v1043_v41 = vadd.f32 (%p763_p4), %v1040_v39, %v1786_v2  ;;  %1577 = vmatpush3.bf16.msra.mxu1 (%p763_p4), %v1647_v30 }
 0x675   : > { %v1038_v37 = vld [vmem:[#allocation3] sm:$0xff] (%p763_p4)  ;;  %1578 = vmatprep.subr.bf16.mxu1 (%p763_p4), %v1648_v31 }
 0x676   : > { %v1041_v40 = vadd.f32 (%p763_p4), %v1038_v37, %v1784_v1  ;;  %v1919_v45 = vadd.f32 (%p763_p4), %v1485_v38, %v1043_v41 }
 0x678   : > { %v1917_v44 = vadd.f32 %v1485_v38, %v1041_v40  ;;  %v1062_v48 = vsel %vm447_vm0, %v1919_v45, 0.0  ;;  %1579 = vmatpush3.bf16.msra.mxu1 %v1648_v31 }
 0x679   : > { %v1039_v42 = vld [vmem:[#allocation3 + $0x8] sm:$0xff]  ;;  %1063 = vadd.xlane.f32.xlu1 %v1062_v48 }
 0x67a   : > { %v1042_v43 = vadd.f32 %v1039_v42, %v1788_v3  ;;  %v1056_v47 = vsel %vm447_vm0, %v1917_v44, 0.0 }
 0x67b   : > { %1057 = vadd.xlane.f32.xlu0 %v1056_v47 }
 0x67c   : > { %v1921_v46 = vadd.f32 %v1485_v38, %v1042_v43 }
 0x67e   : > { %v1059_v1 = vsel %vm447_vm0, %v1921_v46, 0.0 }
 0x67f   : > { %1060 = vadd.xlane.f32.xlu0 %v1059_v1 }
 0x702   : > { %v1064_v3 = vpop.xlane.xlu1 %1063 }
 0x703   : > { %v1067_v50 = vmul.f32 0.03125, %v1064_v3 }
 0x704   : > { %v1058_v2 = vpop.xlane.xlu0 %1057 }
 0x705   : > { %v1065_v49 = vmul.f32 0.03125, %v1058_v2  ;;  %v1070_v52 = vsub.f32 %v1919_v45, %v1067_v50 }
 0x707   : > { %v1068_v51 = vsub.f32 %v1917_v44, %v1065_v49  ;;  %v1073_v56 = vmul.f32 %v1070_v52, %v1070_v52 }
 0x708   : > { %v1061_v53 = vpop.xlane.xlu0 %1060 }
 0x709   : > { %v1066_v54 = vmul.f32 0.03125, %v1061_v53  ;;  %v1071_v55 = vmul.f32 %v1068_v51, %v1068_v51  ;;  %v1080_v59 = vsel %vm447_vm0, %v1073_v56, 0.0 }
 0x70b   : > { %v1069_v57 = vsub.f32 %v1921_v46, %v1066_v54  ;;  %v1074_v58 = vsel %vm447_vm0, %v1071_v55, 0.0 }
 0x70c   : > { %1075 = vadd.xlane.f32.xlu1 %v1074_v58 }
 0x70d   : > { %v1072_v60 = vmul.f32 %v1069_v57, %v1069_v57 }
 0x70f   : > { %v1077_v61 = vsel %vm447_vm0, %v1072_v60, 0.0 }
 0x710   : > { %1081 = vadd.xlane.f32.xlu1 %v1080_v59  ;;  %1078 = vadd.xlane.f32.xlu0 %v1077_v61 }
 0x795   : > { %v1076_v0 = vpop.xlane.xlu1 %1075 }
 0x796   : > { %v1083_v4 = vmul.f32 0.03125, %v1076_v0 }
 0x798   : > { %v1086_v5 = vadd.f32 1e-12, %v1083_v4 }
 0x799   : > { %v1082_v6 = vpop.xlane.xlu1 %1081  ;;  %v1079_v7 = vpop.xlane.xlu0 %1078 }
 0x79a   : > { %1649 = vrsqrt.f32 %v1086_v5  ;;  %v1085_v8 = vmul.f32 0.03125, %v1082_v6  ;;  %v1084_v9 = vmul.f32 0.03125, %v1079_v7 }
 0x79c   : > { %v1088_v10 = vadd.f32 1e-12, %v1085_v8  ;;  %v1087_v11 = vadd.f32 1e-12, %v1084_v9 }
 0x79e   : > { %1651 = vrsqrt.f32 %v1088_v10 }
 0x79f   : > { %1653 = vrsqrt.f32 %v1087_v11 }
 0x7a7   : > { %v1650_v12 = vpop.eup %1649 }
 0x7a8   : > { %v1092_v13 = vmul.f32 %v1650_v12, %v1068_v51 }
 0x7aa   : > { %v1101_v19 = vmul.f32 %v1486_v14, %v1092_v13 }
 0x7ab   : > { %v1652_v15 = vpop.eup %1651 }
 0x7ac   : > { %v1654_v16 = vpop.eup %1653  ;;  %v1094_v17 = vmul.f32 %v1652_v15, %v1070_v52  ;;  %v1110_v24 = vadd.f32 %v1487_v20, %v1101_v19 }
 0x7ad   : > { %v1093_v18 = vmul.f32 %v1654_v16, %v1069_v57 }
 0x7ae   : > { %v1103_v21 = vmul.f32 %v1486_v14, %v1094_v17 }
 0x7af   : > { %v1102_v22 = vmul.f32 %v1486_v14, %v1093_v18 }
 0x7b0   : > { %v1112_v23 = vadd.f32 %v1487_v20, %v1103_v21 }
 0x7b1   : > { %v1111_v25 = vadd.f32 %v1487_v20, %v1102_v22 }
 0x7b2   : > { %v1114_v26 = vpack.c.bf16 %v1112_v23, %v1112_v23 }
 0x7b3   : > { %v1113_v27 = vpack.c.bf16 %v1111_v25, %v1110_v24 }
 0x7b5   : > { %1568 = vmatprep.mubr.msk.bf16.mxu0 %vm447_vm0, %v1113_v27 }
 0x7b6   : > { %1569 = vmatmul.mubr.msk.bf16.vlgmr.msra.gmra.mxu0 %vm447_vm0, %v1114_v26 }
 0x876   : > { %v1570_v33 = vpop.f32.mrf.mxu0 }
 0x877   : > { %v1964_v34 = vadd.f32 %v1570_v33, %v1488_v32 }
 0x878   : > { %v1178_v35 = vpop.f32.mrf.mxu0 }
 0x879   : > { %v1967_v36 = vmul.f32 0.70710677, %v1964_v34  ;;  %v1969_v37 = vadd.f32 %v1488_v32, %v1178_v35 }
 0x87a   : > { %v1571_v38 = vpop.f32.mrf.mxu0 }
 0x87b   : > { %v1200_v39 = vand.u32 2147483647, %v1967_v36  ;;  %v1973_v40 = vmul.f32 0.70710677, %v1969_v37  ;;  %vm1260_vm5 = vcmp.ge.f32.partialorder %v1967_v36, 0.0 }
 0x87c   : > { %v1181_v41 = vpop.f32.mrf.mxu0 }
 0x87d   : > { %v1203_v42 = vmul.f32 0.3275911, %v1200_v39  ;;  %v1198_v43 = vand.u32 2147483647, %v1973_v40  ;;  %v1976_v47 = vadd.f32 %v1488_v32, %v1181_v41  ;;  %v1242_v52 = vmul.f32 %v1200_v39, %v1200_v39 }
 0x87e   : > { %vm1258_vm6 = vcmp.ge.f32.partialorder %v1973_v40, 0.0 }
 0x87f   : > { %v1206_v48 = vadd.f32 1.0, %v1203_v42  ;;  %v1201_v1 = vmul.f32 0.3275911, %v1198_v43  ;;  %v1979_v2 = vmul.f32 0.70710677, %v1976_v47  ;;  %v1240_v53 = vmul.f32 %v1198_v43, %v1198_v43 }
 0x880   : > { %v1245_v54 = vsub.f32 0.0, %v1242_v52  ;;  %v1194_v52 = vmul.f32 0.5, %v1964_v34  ;;  %v1493_v34 = vld [vmem:[%s2015_s12] ss:$0 sm:$0xff] }
 0x881   : > { %1655 = vrcp.f32 %v1206_v48  ;;  %v1204_v3 = vadd.f32 1.0, %v1201_v1  ;;  %v1199_v49 = vand.u32 2147483647, %v1979_v2  ;;  %v1243_v56 = vsub.f32 0.0, %v1240_v53 }
 0x882   : > { %v1250_v59 = vmul.f32 1.442695, %v1245_v54  ;;  %vm1259_vm7 = vcmp.ge.f32.partialorder %v1979_v2, 0.0  ;;  %v1192_v54 = vmul.f32 0.5, %v1969_v37 }
 0x883   : > { %1657 = vrcp.f32 %v1204_v3  ;;  %v1202_v50 = vmul.f32 0.3275911, %v1199_v49  ;;  %v1241_v57 = vmul.f32 %v1199_v49, %v1199_v49  ;;  %v1246_v62 = vmul.f32 1.442695, %v1243_v56 }
 0x885   : > { %v1205_v51 = vadd.f32 1.0, %v1202_v50  ;;  %v1244_v63 = vsub.f32 0.0, %v1241_v57 }
 0x887   : > { %1659 = vrcp.f32 %v1205_v51  ;;  %v1248_v8 = vmul.f32 1.442695, %v1244_v63 }
 0x888   : > { %1661 = vpow2.f32 %v1250_v59 }
 0x889   : > { %1663 = vpow2.f32 %v1246_v62 }
 0x88a   : > { %1665 = vpow2.f32 %v1248_v8 }
 0x88e   : > { %v1656_v55 = vpop.eup %1655 }
 0x88f   : > { %v1215_v58 = vmul.f32 1.0614054, %v1656_v55 }
 0x890   : > { %v1658_v60 = vpop.eup %1657 }
 0x891   : > { %v1218_v61 = vadd.f32 -1.4531521, %v1215_v58  ;;  %v1213_v0 = vmul.f32 1.0614054, %v1658_v60 }
 0x893   : > { %v1221_v4 = vmul.f32 %v1656_v55, %v1218_v61  ;;  %v1216_v5 = vadd.f32 -1.4531521, %v1213_v0 }
 0x894   : > { %v1660_v6 = vpop.eup %1659 }
 0x895   : > { %v1224_v7 = vadd.f32 1.4214138, %v1221_v4  ;;  %v1214_v9 = vmul.f32 1.0614054, %v1660_v6  ;;  %v1219_v10 = vmul.f32 %v1658_v60, %v1216_v5  ;;  %v1662_v24 = vpop.eup %1661 }
 0x896   : > { %v1664_v30 = vpop.eup %1663 }
 0x897   : > { %v1227_v11 = vmul.f32 %v1656_v55, %v1224_v7  ;;  %v1217_v12 = vadd.f32 -1.4531521, %v1214_v9  ;;  %v1222_v13 = vadd.f32 1.4214138, %v1219_v10  ;;  %v1666_v41 = vpop.eup %1665 }
 0x899   : > { %v1230_v14 = vadd.f32 -0.28449672, %v1227_v11  ;;  %v1220_v15 = vmul.f32 %v1660_v6, %v1217_v12  ;;  %v1225_v16 = vmul.f32 %v1658_v60, %v1222_v13 }
 0x89b   : > { %v1233_v17 = vmul.f32 %v1656_v55, %v1230_v14  ;;  %v1223_v18 = vadd.f32 1.4214138, %v1220_v15  ;;  %v1228_v19 = vadd.f32 -0.28449672, %v1225_v16 }
 0x89d   : > { %v1236_v20 = vadd.f32 0.2548296, %v1233_v17  ;;  %v1226_v21 = vmul.f32 %v1660_v6, %v1223_v18  ;;  %v1231_v22 = vmul.f32 %v1658_v60, %v1228_v19 }
 0x89f   : > { %v1239_v23 = vmul.f32 %v1656_v55, %v1236_v20  ;;  %v1229_v25 = vadd.f32 -0.28449672, %v1226_v21  ;;  %v1234_v26 = vadd.f32 0.2548296, %v1231_v22  ;;  %v1193_v55 = vmul.f32 0.5, %v1976_v47 }
 0x8a1   : > { %v1254_v27 = vmul.f32 %v1662_v24, %v1239_v23  ;;  %v1232_v28 = vmul.f32 %v1660_v6, %v1229_v25  ;;  %v1237_v29 = vmul.f32 %v1658_v60, %v1234_v26 }
 0x8a3   : > { %v1257_v31 = vsub.f32 1.0, %v1254_v27  ;;  %v1235_v32 = vadd.f32 0.2548296, %v1232_v28  ;;  %v1252_v33 = vmul.f32 %v1664_v30, %v1237_v29 }
 0x8a5   : > { %v1263_v35 = vsub.f32 0.0, %v1257_v31  ;;  %v1238_v38 = vmul.f32 %v1660_v6, %v1235_v32  ;;  %v1255_v39 = vsub.f32 1.0, %v1252_v33 }
 0x8a7   : > { %v1253_v42 = vmul.f32 %v1666_v41, %v1238_v38  ;;  %v1261_v43 = vsub.f32 0.0, %v1255_v39  ;;  %v1266_v48 = vsel %vm1260_vm5, %v1257_v31, %v1263_v35 }
 0x8a8   : > { %v1269_v49 = vadd.f32 1.0, %v1266_v48 }
 0x8a9   : > { %v1256_v1 = vsub.f32 1.0, %v1253_v42  ;;  %v1264_v3 = vsel %vm1258_vm6, %v1255_v39, %v1261_v43 }
 0x8aa   : > { %v1267_v51 = vadd.f32 1.0, %v1264_v3  ;;  %v1272_v56 = vmul.f32 %v1269_v49, %v1194_v52 }
 0x8ab   : > { %v1262_v50 = vsub.f32 0.0, %v1256_v1 }
 0x8ac   : > { %v1270_v57 = vmul.f32 %v1267_v51, %v1192_v54  ;;  %v1274_v59 = vpack.c.bf16 %v1272_v56, %v1272_v56 }
 0x8ad   : > { %v1265_v53 = vsel %vm1259_vm7, %v1256_v1, %v1262_v50 }
 0x8ae   : > { %v1268_v36 = vadd.f32 1.0, %v1265_v53 }
 0x8b0   : > { %v1271_v58 = vmul.f32 %v1268_v36, %v1193_v55 }
 0x8b2   : > { %v1273_v40 = vpack.c.bf16 %v1271_v58, %v1270_v57 }
 0x8b4   : > { %1580 = vmatprep.mubr.msk.bf16.mxu1 %vm1314_vm8, %v1273_v40 }
 0x8b5   : > { %1581 = vmatmul.mubr.msk.bf16.vlgmr.msra.gmra.mxu1 %vm1314_vm8, %v1274_v59 }
 0x975   : > { %v1582_v2 = vpop.f32.mrf.mxu1 }
 0x976   : > { %v1364_v37 = vadd.f32 %v1582_v2, %v1493_v34 }
 0x977   : > { %v1355_v60 = vpop.f32.mrf.mxu1 }
 0x978   : > { %v1371_v47 = vadd.f32 %v1364_v37, %v1919_v45  ;;  %v1356_v61 = vadd.f32 %v1493_v34, %v1355_v60 }
 0x979   : > { %v1583_v62 = vpop.f32.mrf.mxu1 }
 0x97a   : > { %1374 = vst.msk [vmem:[%s1782_s16 + $0x10] sm:$0xff] %vm447_vm0, %v1371_v47  ;;  %v1369_v63 = vadd.f32 %v1356_v61, %v1917_v44 }
 0x97b   : > { %v1358_v0 = vpop.f32.mrf.mxu1 }
 0x97c   : > { %1372 = vst.msk [vmem:[%s1782_s16] sm:$0xff] %vm447_vm0, %v1369_v63  ;;  %v1359_v4 = vadd.f32 %v1493_v34, %v1358_v0 }
 0x97e   : > { %v1370_v5 = vadd.f32 %v1359_v4, %v1921_v46 }
 0x980   : > { %1373 = vst.msk [vmem:[%s1782_s16 + $0x8] sm:$0xff] %vm447_vm0, %v1370_v5 }
 0x981 PF: > { %s23_s25 = sadd.s32 1, %s1677_s25  }
 0x982   : > { %p20_p5 = scmp.ge.s32.totalorder %s23_s25, 4  }
 0x984   :  { %22 = sbr.rel (!%p20_p5) target bundleno = 1 (0x1), region = 135 }

// kernel: videomae_pretrain_forward.10
= control target key start
LH: loop header
LB: loop body
LE: loop exit
PB: predicated region body
PF: predicated region fallthrough
CT: control target
= control target key end

     0   :  { %s1764_s25 = smov 0   ;;  %s1992_s0 = inlined_call_operand.vmem [shape: f32[2,32,16], index: 0, kind: input, shape index: {}]   ;;  %s1993_s1 = inlined_call_operand.vmem [shape: f32[1,16], index: 1, kind: input, shape index: {}, may-alias: {1,7}]   ;;  %s1994_s2 = inlined_call_operand.vmem [shape: f32[1,16], index: 2, kind: input, shape index: {}, may-alias: {2,6,8,12}]   ;;  %s1995_s3 = inlined_call_operand.vmem [shape: bf16[16,48], index: 3, kind: input, shape index: {}]   ;;  %s1996_s4 = inlined_call_operand.vmem [shape: f32[1,48], index: 4, kind: input, shape index: {}]   ;;  %s1997_s5 = inlined_call_operand.vmem [shape: bf16[2,8,16], index: 5, kind: input, shape index: {}]   ;;  %s1998_s6 = inlined_call_operand.vmem [shape: f32[1,16], index: 6, kind: input, shape index: {}, may-alias: {2,6,8,12}]   ;;  %s1999_s7 = inlined_call_operand.vmem [shape: f32[1,16], index: 7, kind: input, shape index: {}, may-alias: {1,7}]   ;;  %s2000_s8 = inlined_call_operand.vmem [shape: f32[1,16], index: 8, kind: input, shape index: {}, may-alias: {2,6,8,12}]   ;;  %s2001_s9 = inlined_call_operand.vmem [shape: bf16[16,32], index: 9, kind: input, shape index: {}]   ;;  %s2002_s10 = inlined_call_operand.vmem [shape: f32[1,32], index: 10, kind: input, shape index: {}]   ;;  %s2003_s11 = inlined_call_operand.vmem [shape: bf16[32,16], index: 11, kind: input, shape index: {}]   ;;  %s2004_s12 = inlined_call_operand.vmem [shape: f32[1,16], index: 12, kind: input, shape index: {}, may-alias: {2,6,8,12}]   ;;  %s2005_s13 = inlined_call_operand.vmem [shape: f32[2,32,16], index: 13, kind: output, shape index: {}]  }
   0x1 LB: > { %s1453_s26 = sadd.s32 4294967295, %s1682_s25   ;;  %p1457_p0 = scmp.ge.s32.totalorder %s1682_s25, 1  ;;  %s1682_s25 = sphi %s1764_s25, %s23_s25  }
   0x2   : > { %p387_p1 = scmp.lt.s32.totalorder %s1682_s25, 3 }
   0x4   : > { %p388_p2 = pnand %p1457_p0, %p387_p1 }
   0x5   : > { %p431_p3 = scmp.lt.s32.totalorder (!%p388_p2), %s1453_s26, 1  ;;  %s1691_s28 = smov (!%p388_p2), 104  }
   0x6   : > { %391 = sbr.rel (%p388_p2) target bundleno = 2415 (0x96f), region = 72  ;;  %s1692_s29 = smov (!%p388_p2), 120  }
   0x7   : > { %s1846_s14 = smov (!%p388_p2), 0  }
   0xb   : > { %vm448_vm0 = vcmask 130048   ;;  %v1688_v0 = vmov 0.0   ;;  %s2007_s26 = smov (!%p431_p3, %s1453_s26), 1  ;;  %v1614_v29 = vld [vmem:[%s1995_s3] sm:$0xff]   ;;  %vm614_vm1 = vcmask 60416  }
   0xc   : > { %716 = vst.msk [vmem:[#allocation3] sm:$0xff] %vm448_vm0, %v1688_v0  ;;  %717 = vst.msk [vmem:[#allocation3 + $0x8] sm:$0xff] %vm448_vm0, %v1688_v0  ;;  %s1515_s27 = sshll.u32 %s2007_s26, 5  ;;  %1547 = vmatprep.subr.bf16.mxu0 %v1614_v29  ;;  %v1462_v44 = vld [vmem:[%s1993_s1] ss:$0 sm:$0xff]  ;;  %s1689_s26 = smov 96  }
   0xd   : > { %718 = vst.msk [vmem:[#allocation3 + $0x10] sm:$0xff] %vm448_vm0, %v1688_v0  ;;  %719 = vst.msk [vmem:[#allocation3 + $0x18] sm:$0xff] %vm448_vm0, %v1688_v0  ;;  %s435_s30 = scalar_lea.vmem %s1992_s0, %s1515_s27  ;;  %s1782_s16 = scalar_lea.vmem %s2005_s13, %s1515_s27  ;;  %1548 = vmatpush3.bf16.msra.mxu0 %v1614_v29  ;;  %v1463_v49 = vld [vmem:[%s1994_s2] ss:$0 sm:$0xff] }
   0xe   : > { %v1784_v1 = vld [vmem:[%s435_s30] sm:$0xff]  ;;  %v1786_v2 = vld [vmem:[%s435_s30 + $0x10] sm:$0xff]  ;;  %v1788_v3 = vld [vmem:[%s435_s30 + $0x8] sm:$0xff]  ;;  %s1690_s27 = smov 112  }
   0xf   : > { %v449_v4 = vsel %vm448_vm0, %v1784_v1, 0.0  ;;  %v455_v5 = vsel %vm448_vm0, %v1786_v2, 0.0  ;;  %v1794_v6 = vld [vmem:[%s435_s30 + $0x18] sm:$0xff]  ;;  %v452_v7 = vsel %vm448_vm0, %v1788_v3, 0.0  ;;  %v1464_v62 = vld [vmem:[%s1996_s4] ss:$0 sm:$0xff] }
  0x10   : > { %450 = vadd.xlane.f32.xlu0 %v449_v4  ;;  %456 = vadd.xlane.f32.xlu1 %v455_v5  ;;  %v458_v8 = vsel %vm448_vm0, %v1794_v6, 0.0  ;;  %s1693_s30 = smov 88  }
  0x14   : > { %453 = vadd.xlane.f32.xlu0 %v452_v7  ;;  %459 = vadd.xlane.f32.xlu1 %v458_v8 }
  0x99   : > { %v451_v9 = vpop.xlane.xlu0 %450  ;;  %v457_v10 = vpop.xlane.xlu1 %456 }
  0x9a   : > { %v462_v11 = vmul.f32 0.0625, %v451_v9  ;;  %v464_v12 = vmul.f32 0.0625, %v457_v10 }
  0x9c   : > { %v466_v13 = vsub.f32 %v1784_v1, %v462_v11  ;;  %v468_v14 = vsub.f32 %v1786_v2, %v464_v12 }
  0x9d   : > { %v454_v15 = vpop.xlane.xlu0 %453  ;;  %v460_v16 = vpop.xlane.xlu1 %459 }
  0x9e   : > { %v463_v17 = vmul.f32 0.0625, %v454_v15  ;;  %v465_v18 = vmul.f32 0.0625, %v460_v16  ;;  %v470_v19 = vmul.f32 %v466_v13, %v466_v13  ;;  %v472_v20 = vmul.f32 %v468_v14, %v468_v14 }
  0xa0   : > { %v467_v21 = vsub.f32 %v1788_v3, %v463_v17  ;;  %v469_v22 = vsub.f32 %v1794_v6, %v465_v18  ;;  %v474_v23 = vsel %vm448_vm0, %v470_v19, 0.0  ;;  %v480_v24 = vsel %vm448_vm0, %v472_v20, 0.0 }
  0xa1   : > { %475 = vadd.xlane.f32.xlu0 %v474_v23 }
  0xa2   : > { %v471_v25 = vmul.f32 %v467_v21, %v467_v21  ;;  %v473_v26 = vmul.f32 %v469_v22, %v469_v22 }
  0xa4   : > { %v477_v27 = vsel %vm448_vm0, %v471_v25, 0.0  ;;  %v483_v28 = vsel %vm448_vm0, %v473_v26, 0.0 }
  0xa5   : > { %481 = vadd.xlane.f32.xlu0 %v480_v24  ;;  %478 = vadd.xlane.f32.xlu1 %v477_v27 }
  0xa9   : > { %484 = vadd.xlane.f32.xlu1 %v483_v28 }
 0x12a   : > { %v476_v30 = vpop.xlane.xlu0 %475 }
 0x12b   : > { %v486_v31 = vmul.f32 0.0625, %v476_v30 }
 0x12d   : > { %v490_v32 = vadd.f32 1e-12, %v486_v31 }
 0x12e   : > { %v479_v33 = vpop.xlane.xlu1 %478  ;;  %v482_v34 = vpop.xlane.xlu0 %481 }
 0x12f   : > { %1615 = vrsqrt.f32 %v490_v32  ;;  %v487_v35 = vmul.f32 0.0625, %v479_v33  ;;  %v488_v36 = vmul.f32 0.0625, %v482_v34 }
 0x131   : > { %v491_v37 = vadd.f32 1e-12, %v487_v35  ;;  %v492_v38 = vadd.f32 1e-12, %v488_v36 }
 0x132   : > { %v485_v39 = vpop.xlane.xlu1 %484 }
 0x133   : > { %1617 = vrsqrt.f32 %v491_v37  ;;  %v489_v40 = vmul.f32 0.0625, %v485_v39 }
 0x134   : > { %1619 = vrsqrt.f32 %v492_v38 }
 0x135   : > { %v493_v41 = vadd.f32 1e-12, %v489_v40 }
 0x137   : > { %1621 = vrsqrt.f32 %v493_v41 }
 0x13c   : > { %v1616_v42 = vpop.eup %1615 }
 0x13d   : > { %v498_v43 = vmul.f32 %v1616_v42, %v466_v13 }
 0x13f   : > { %v508_v48 = vmul.f32 %v1462_v44, %v498_v43 }
 0x140   : > { %v1618_v45 = vpop.eup %1617 }
 0x141   : > { %v1620_v46 = vpop.eup %1619  ;;  %v499_v47 = vmul.f32 %v1618_v45, %v467_v21  ;;  %v518_v53 = vadd.f32 %v1463_v49, %v508_v48 }
 0x142   : > { %v500_v50 = vmul.f32 %v1620_v46, %v468_v14 }
 0x143   : > { %v509_v51 = vmul.f32 %v1462_v44, %v499_v47 }
 0x144   : > { %v1622_v52 = vpop.eup %1621  ;;  %v510_v56 = vmul.f32 %v1462_v44, %v500_v50 }
 0x145   : > { %v519_v54 = vadd.f32 %v1463_v49, %v509_v51  ;;  %v501_v55 = vmul.f32 %v1622_v52, %v469_v22 }
 0x146   : > { %v520_v59 = vadd.f32 %v1463_v49, %v510_v56 }
 0x147   : > { %v522_v57 = vpack.c.bf16 %v519_v54, %v518_v53  ;;  %v511_v58 = vmul.f32 %v1462_v44, %v501_v55 }
 0x149   : > { %1549 = vmatprep.mubr.msk.bf16.mxu0 %vm448_vm0, %v522_v57  ;;  %v521_v60 = vadd.f32 %v1463_v49, %v511_v58 }
 0x14b   : > { %v523_v61 = vpack.c.bf16 %v521_v60, %v520_v59 }
 0x14d   : > { %1550 = vmatmul.mubr.msk.bf16.vlgmr.msra.gmra.mxu0 %vm448_vm0, %v523_v61 }
 0x20d   : > { %v1551_v63 = vpop.f32.mrf.mxu0 }
 0x20e   : > { %v588_v0 = vadd.f32 %v1551_v63, %v1464_v62 }
 0x20f   : > { %v579_v4 = vpop.f32.mrf.mxu0 }
 0x210   : > { %v596_v5 = vmul.f32 0.35355338, %v588_v0  ;;  %v1523_v7 = vpack.c.bf16 %v588_v0, %v588_v0  ;;  %v580_v8 = vadd.f32 %v1464_v62, %v579_v4 }
 0x211   : > { %v1552_v9 = vpop.f32.mrf.mxu0 }
 0x212   : > { %v1519_v10 = vpack.c.bf16 %v596_v5, %v596_v5  ;;  %v594_v11 = vmul.f32 0.35355338, %v580_v8  ;;  %v591_v12 = vadd.f32 %v1552_v9, %v1464_v62  ;;  %652 = vrot.lane.b32.xlu0 %v1523_v7, %s1689_s26  ;;  %635 = vrot.lane.b32.xlu1 %v1523_v7, %s1690_s27  ;;  %v1521_v20 = vpack.c.bf16 %v580_v8, %v580_v8 }
 0x213   : > { %v582_v13 = vpop.f32.mrf.mxu0 }
 0x214   : > { %617 = vst.msk [vmem:[#allocation2 + $0x8] sm:$0xf] %vm614_vm1, %v1519_v10  ;;  %v1517_v14 = vpack.c.bf16 %v594_v11, %v594_v11  ;;  %v597_v15 = vmul.f32 0.35355338, %v591_v12  ;;  %v1524_v16 = vpack.c.bf16 %v591_v12, %v591_v12  ;;  %v583_v17 = vadd.f32 %v1464_v62, %v582_v13 }
 0x216   : > { %615 = vst.msk [vmem:[#allocation2] sm:$0xf] %vm614_vm1, %v1517_v14  ;;  %v1520_v18 = vpack.c.bf16 %v597_v15, %v597_v15  ;;  %v595_v19 = vmul.f32 0.35355338, %v583_v17  ;;  %686 = vrot.lane.b32.xlu0 %v1523_v7, %s1691_s28  ;;  %637 = vrot.lane.b32.xlu1 %v1524_v16, %s1690_s27  ;;  %v1522_v22 = vpack.c.bf16 %v583_v17, %v583_v17 }
 0x218   : > { %618 = vst.msk [vmem:[#allocation2 + $0xc] sm:$0xf] %vm614_vm1, %v1520_v18  ;;  %v1518_v21 = vpack.c.bf16 %v595_v19, %v595_v19 }
 0x21a   : > { %616 = vst.msk [vmem:[#allocation2 + $0x4] sm:$0xf] %vm614_vm1, %v1518_v21  ;;  %654 = vrot.lane.b32.xlu1 %v1524_v16, %s1689_s26  ;;  %631 = vrot.lane.b32.xlu0 %v1521_v20, %s1690_s27 }
 0x21e   : > { %688 = vrot.lane.b32.xlu1 %v1524_v16, %s1691_s28  ;;  %648 = vrot.lane.b32.xlu0 %v1521_v20, %s1689_s26 }
 0x222   : > { %633 = vrot.lane.b32.xlu1 %v1522_v22, %s1690_s27  ;;  %669 = vrot.lane.b32.xlu0 %v1519_v10, %s1692_s29 }
 0x226   : > { %650 = vrot.lane.b32.xlu1 %v1522_v22, %s1689_s26  ;;  %682 = vrot.lane.b32.xlu0 %v1521_v20, %s1691_s28 }
 0x22a   : > { %671 = vrot.lane.b32.xlu1 %v1520_v18, %s1692_s29  ;;  %699 = vrot.lane.b32.xlu0 %v1521_v20, %s1693_s30 }
 0x22e   : > { %684 = vrot.lane.b32.xlu1 %v1522_v22, %s1691_s28  ;;  %665 = vrot.lane.b32.xlu0 %v1517_v14, %s1692_s29 }
 0x232   : > { %701 = vrot.lane.b32.xlu1 %v1522_v22, %s1693_s30  ;;  %703 = vrot.lane.b32.xlu0 %v1523_v7, %s1693_s30 }
 0x236   : > { %667 = vrot.lane.b32.xlu1 %v1518_v21, %s1692_s29 }
 0x23a   : > { %705 = vrot.lane.b32.xlu1 %v1524_v16, %s1693_s30 }
 0x284   : > { %v653_v23 = vpop.permute.xlu0 %652  ;;  %v636_v24 = vpop.permute.xlu1 %635 }
 0x285   : > { %663 = vst.msk [vmem:[#allocation2 + $0x48] sm:$0xf] %vm614_vm1, %v653_v23  ;;  %646 = vst.msk [vmem:[#allocation2 + $0x28] sm:$0xf] %vm614_vm1, %v636_v24 }
 0x288   : > { %v687_v25 = vpop.permute.xlu0 %686  ;;  %v638_v26 = vpop.permute.xlu1 %637 }
 0x289   : > { %697 = vst.msk [vmem:[#allocation2 + $0x38] sm:$0xf] %vm614_vm1, %v687_v25  ;;  %647 = vst.msk [vmem:[#allocation2 + $0x2c] sm:$0xf] %vm614_vm1, %v638_v26 }
 0x28c   : > { %v655_v27 = vpop.permute.xlu1 %654  ;;  %v632_v28 = vpop.permute.xlu0 %631 }
 0x28d   : > { %664 = vst.msk [vmem:[#allocation2 + $0x4c] sm:$0xf] %vm614_vm1, %v655_v27  ;;  %644 = vst.msk [vmem:[#allocation2 + $0x20] sm:$0xf] %vm614_vm1, %v632_v28 }
 0x290   : > { %v689_v29 = vpop.permute.xlu1 %688  ;;  %v649_v30 = vpop.permute.xlu0 %648 }
 0x291   : > { %698 = vst.msk [vmem:[#allocation2 + $0x3c] sm:$0xf] %vm614_vm1, %v689_v29  ;;  %661 = vst.msk [vmem:[#allocation2 + $0x40] sm:$0xf] %vm614_vm1, %v649_v30 }
 0x294   : > { %v634_v31 = vpop.permute.xlu1 %633  ;;  %v670_v32 = vpop.permute.xlu0 %669 }
 0x295   : > { %645 = vst.msk [vmem:[#allocation2 + $0x24] sm:$0xf] %vm614_vm1, %v634_v31  ;;  %680 = vst.msk [vmem:[#allocation2 + $0x18] sm:$0xf] %vm614_vm1, %v670_v32 }
 0x298   : > { %v651_v33 = vpop.permute.xlu1 %650  ;;  %v683_v34 = vpop.permute.xlu0 %682 }
 0x299   : > { %662 = vst.msk [vmem:[#allocation2 + $0x44] sm:$0xf] %vm614_vm1, %v651_v33  ;;  %695 = vst.msk [vmem:[#allocation2 + $0x30] sm:$0xf] %vm614_vm1, %v683_v34 }
 0x29c   : > { %v672_v35 = vpop.permute.xlu1 %671  ;;  %v700_v36 = vpop.permute.xlu0 %699 }
 0x29d   : > { %681 = vst.msk [vmem:[#allocation2 + $0x1c] sm:$0xf] %vm614_vm1, %v672_v35  ;;  %712 = vst.msk [vmem:[#allocation2 + $0x50] sm:$0xf] %vm614_vm1, %v700_v36 }
 0x2a0   : > { %v685_v37 = vpop.permute.xlu1 %684  ;;  %v666_v38 = vpop.permute.xlu0 %665 }
 0x2a1   : > { %696 = vst.msk [vmem:[#allocation2 + $0x34] sm:$0xf] %vm614_vm1, %v685_v37  ;;  %678 = vst.msk [vmem:[#allocation2 + $0x10] sm:$0xf] %vm614_vm1, %v666_v38 }
 0x2a4   : > { %v702_v39 = vpop.permute.xlu1 %701  ;;  %v704_v40 = vpop.permute.xlu0 %703 }
 0x2a5   : > { %713 = vst.msk [vmem:[#allocation2 + $0x54] sm:$0xf] %vm614_vm1, %v702_v39  ;;  %714 = vst.msk [vmem:[#allocation2 + $0x58] sm:$0xf] %vm614_vm1, %v704_v40 }
 0x2a8   : > { %v668_v41 = vpop.permute.xlu1 %667 }
 0x2a9   : > { %679 = vst.msk [vmem:[#allocation2 + $0x14] sm:$0xf] %vm614_vm1, %v668_v41 }
 0x2ac   : > { %v706_v42 = vpop.permute.xlu1 %705 }
 0x2ad   : > { %715 = vst.msk [vmem:[#allocation2 + $0x5c] sm:$0xf] %vm614_vm1, %v706_v42 }
 0x2ae LB: >> { %s1525_s15 = sshll.u32 %s1686_s14, 4  ;;  %vm769_vm2 = vcmask 64512   ;;  %vm831_vm3 = vcmask 261120   ;;  %s1498_s18 = sshll.u32 %s1686_s14, 2  ;;  %vm960_vm4 = vcmask 1043456   ;;  %v947_v41 = vld [vmem:[#allocation3 + $0x10] sm:$0xff]  ;;  %s1686_s14 = sphi %s1846_s14, %s725_s14  }
 0x2af   : >> { %s1852_s17 = scalar_lea.vmem [#allocation2], %s1525_s15  ;;  %s952_s21 = scalar_lea.vmem %s1997_s5, %s1498_s18 }
 0x2b0   : >> { %v953_v33 = vld [vmem:[%s952_s21] sm:$0xf]  ;;  %s725_s14 = sadd.s32 1, %s1686_s14  }
 0x2b1   : >> { %v962_v34 = vsel %vm960_vm4, %v953_v33, 0  ;;  %p722_p4 = scmp.ge.s32.totalorder %s725_s14, 2  }
 0x2b4   : >> { %v1623_v43 = vld [vmem:[%s1852_s17 + $0x28] sm:$0xff]   ;;  %v1624_v44 = vld [vmem:[%s1852_s17 + $0x20] sm:$0xff]  }
 0x2b5   : >> { %1589 = vmatprep.subr.msk.bf16.mxu0 %vm769_vm2, %v1623_v43  ;;  %v780_v45 = vsel %vm769_vm2, %v1623_v43, 0  ;;  %v1625_v46 = vld [vmem:[%s1852_s17] sm:$0xff]   ;;  %v777_v47 = vsel %vm769_vm2, %v1624_v44, 0  ;;  %v1626_v48 = vld [vmem:[%s1852_s17 + $0x8] sm:$0xff]  }
 0x2b6   : >> { %1554 = vmatpush3.bf16.xpose.msra.mxu0 %v780_v45  ;;  %1557 = vmatprep.mubr.msk.bf16.mxu0 %vm769_vm2, %v1625_v46  ;;  %v1627_v17 = vld [vmem:[%s1852_s17 + $0x48] sm:$0xff]   ;;  %v1628_v18 = vld [vmem:[%s1852_s17 + $0x40] sm:$0xff]   ;;  %v948_v46 = vld [vmem:[#allocation3 + $0x18] sm:$0xff] }
 0x2b7   : >> { %1590 = vmatprep.subr.msk.bf16.mxu0 %vm769_vm2, %v1624_v44  ;;  %1561 = vmatprep.subr.bf16.mxu1 %v1627_v17  ;;  %v945_v43 = vld [vmem:[#allocation3] sm:$0xff] }
 0x2b8   : >> { %1562 = vmatpush3.bf16.msra.mxu1 %v1627_v17 }
 0x2b9   : >> { %1563 = vmatprep.subr.bf16.mxu1 %v1628_v18 }
 0x2bc   : >> { %1564 = vmatpush3.bf16.msra.mxu1 %v1628_v18 }
 0x2bd   : >> { %1591 = vmatprep.subr.msk.bf16.mxu1 %vm960_vm4, %v953_v33 }
 0x2be   : >> { %1556 = vmatpush3.bf16.xpose.msra.mxu0 %v777_v47 }
 0x2c5   : >> { %1558 = vmatmul.mubr.msk.bf16.vlgmr.msra.gmra.mxu0 %vm769_vm2, %v1626_v48 }
 0x385   : >> { %v1559_v49 = vpop.f32.mrf.mxu0 }
 0x386   : >> { %v838_v50 = vsel %vm831_vm3, %v1559_v49, -inf }
 0x387   : >> { %839 = vmax.xlane.f32.xlu1 %v838_v50  ;;  %v816_v51 = vpop.f32.mrf.mxu0 }
 0x388   : >> { %v832_v52 = vsel %vm831_vm3, %v816_v51, -inf }
 0x389   : >> { %833 = vmax.xlane.f32.xlu0 %v832_v52  ;;  %v1560_v53 = vpop.f32.mrf.mxu0 }
 0x38a   : >> { %v841_v54 = vsel %vm831_vm3, %v1560_v53, -inf }
 0x38b   : >> { %842 = vmax.xlane.f32.xlu1 %v841_v54  ;;  %v819_v55 = vpop.f32.mrf.mxu0  ;;  %v1501_v54 = vld [vmem:[%s1998_s6] ss:$0 sm:$0xff] (%p722_p4) }
 0x38c   : >> { %v835_v56 = vsel %vm831_vm3, %v819_v55, -inf }
 0x38d   : >> { %836 = vmax.xlane.f32.xlu0 %v835_v56 }
 0x410   : >> { %v840_v57 = vpop.xlane.xlu1 %839 }
 0x411   : >> { %v846_v58 = vsub.f32 %v1559_v49, %v840_v57  ;;  %v946_v49 = vld [vmem:[#allocation3 + $0x8] sm:$0xff] }
 0x412   : >> { %v834_v59 = vpop.xlane.xlu0 %833 }
 0x413   : >> { %v844_v60 = vsub.f32 %v816_v51, %v834_v59  ;;  %v852_v62 = vmul.f32 1.442695, %v846_v58 }
 0x414   : >> { %v843_v61 = vpop.xlane.xlu1 %842 }
 0x415   : >> { %v848_v63 = vmul.f32 1.442695, %v844_v60  ;;  %v847_v0 = vsub.f32 %v1560_v53, %v843_v61 }
 0x416   : >> { %v837_v4 = vpop.xlane.xlu0 %836 }
 0x417   : >> { %1629 = vpow2.f32 %v848_v63  ;;  %v845_v5 = vsub.f32 %v819_v55, %v837_v4  ;;  %v854_v7 = vmul.f32 1.442695, %v847_v0 }
 0x418   : >> { %1631 = vpow2.f32 %v852_v62 }
 0x419   : >> { %v850_v8 = vmul.f32 1.442695, %v845_v5 }
 0x41b   : >> { %1633 = vpow2.f32 %v850_v8 }
 0x41c   : >> { %1635 = vpow2.f32 %v854_v7 }
 0x424   : >> { %v1630_v9 = vpop.eup %1629 }
 0x425   : >> { %v856_v10 = vsel %vm831_vm3, %v1630_v9, 0.0  ;;  %v1632_v11 = vpop.eup %1631 }
 0x426   : >> { %857 = vadd.xlane.f32.xlu0 %v856_v10  ;;  %v862_v13 = vsel %vm831_vm3, %v1632_v11, 0.0 }
 0x428   : >> { %v1634_v12 = vpop.eup %1633 }
 0x429   : >> { %v859_v14 = vsel %vm831_vm3, %v1634_v12, 0.0  ;;  %v1636_v15 = vpop.eup %1635 }
 0x42a   : >> { %863 = vadd.xlane.f32.xlu0 %v862_v13  ;;  %860 = vadd.xlane.f32.xlu1 %v859_v14  ;;  %v865_v16 = vsel %vm831_vm3, %v1636_v15, 0.0 }
 0x42e   : >> { %866 = vadd.xlane.f32.xlu1 %v865_v16 }
 0x4af   : >> { %v858_v19 = vpop.xlane.xlu0 %857 }
 0x4b0   : >> { %1637 = vrcp.f32 %v858_v19 }
 0x4b3   : >> { %v861_v20 = vpop.xlane.xlu1 %860  ;;  %v864_v21 = vpop.xlane.xlu0 %863 }
 0x4b4   : >> { %1639 = vrcp.f32 %v861_v20 }
 0x4b5   : >> { %1641 = vrcp.f32 %v864_v21 }
 0x4b7   : >> { %v867_v22 = vpop.xlane.xlu1 %866 }
 0x4b8   : >> { %1643 = vrcp.f32 %v867_v22 }
 0x4bd   : >> { %v1638_v23 = vpop.eup %1637 }
 0x4be   : >> { %v872_v25 = vmul.f32 %v1638_v23, %v1630_v9 }
 0x4c1   : >> { %v1640_v24 = vpop.eup %1639 }
 0x4c2   : >> { %v873_v26 = vmul.f32 %v1640_v24, %v1634_v12  ;;  %v1642_v27 = vpop.eup %1641 }
 0x4c3   : >> { %v874_v30 = vmul.f32 %v1642_v27, %v1632_v11 }
 0x4c4   : >> { %v876_v28 = vpack.c.bf16 %v873_v26, %v872_v25  ;;  %v1645_v26 = vld [vmem:[%s2001_s9] sm:$0xff] (%p722_p4)  }
 0x4c5   : >> { %v1644_v29 = vpop.eup %1643  ;;  %1575 = vmatprep.subr.bf16.mxu0 (%p722_p4), %v1645_v26 }
 0x4c6   : >> { %1565 = vmatprep.mubr.msk.bf16.mxu1 %vm831_vm3, %v876_v28  ;;  %v875_v31 = vmul.f32 %v1644_v29, %v1636_v15  ;;  %1576 = vmatpush3.bf16.msra.mxu0 (%p722_p4), %v1645_v26 }
 0x4c8   : >> { %v877_v32 = vpack.c.bf16 %v875_v31, %v874_v30 }
 0x4ca   : >> { %1566 = vmatmul.mubr.msk.bf16.vlgmr.msra.gmra.mxu1 %vm831_vm3, %v877_v32 }
 0x4cb   : >> { %1570 = vmatpush3.bf16.msra.mxu1 %v962_v34 }
 0x58a   : >> { %v1567_v35 = vpop.f32.mrf.mxu1 }
 0x58c   : >> { %v930_v36 = vpop.f32.mrf.mxu1 }
 0x58e   : >> { %v1568_v37 = vpop.f32.mrf.mxu1 }
 0x58f   : >> { %v950_v40 = vpack.c.bf16 %v1568_v37, %v1567_v35 }
 0x590   : >> { %v933_v38 = vpop.f32.mrf.mxu1 }
 0x591   : >> { %v949_v39 = vpack.c.bf16 %v933_v38, %v930_v36 }
 0x593   : >> { %1571 = vmatprep.mubr.msk.bf16.mxu1 %vm769_vm2, %v949_v39 }
 0x594   : >> { %1572 = vmatmul.mubr.msk.bf16.vlgmr.msra.gmra.mxu1 %vm769_vm2, %v950_v40 }
 0x654   : >> { %v1573_v42 = vpop.f32.mrf.mxu1 }
 0x655   : >> { %v1015_v44 = vadd.f32 %v1573_v42, %v947_v41  ;;  %v1502_v41 = vld [vmem:[%s1999_s7] ss:$0 sm:$0xff] (%p722_p4) }
 0x656   : >> { %v998_v45 = vpop.f32.mrf.mxu1 }
 0x657   : >> { %1019 = vst.msk [vmem:[#allocation3 + $0x10] sm:$0xff] %vm448_vm0, %v1015_v44  ;;  %v1013_v47 = vadd.f32 %v998_v45, %v945_v43 }
 0x658   : >> { %v1574_v48 = vpop.f32.mrf.mxu1 }
 0x659   : >> { %1017 = vst.msk [vmem:[#allocation3] sm:$0xff] %vm448_vm0, %v1013_v47  ;;  %v1016_v50 = vadd.f32 %v1574_v48, %v948_v46  ;;  %v1503_v46 = vld [vmem:[%s2000_s8] ss:$0 sm:$0xff] (%p722_p4) }
 0x65a   : >> { %v1001_v51 = vpop.f32.mrf.mxu1 }
 0x65b   : >> { %1020 = vst.msk [vmem:[#allocation3 + $0x18] sm:$0xff] %vm448_vm0, %v1016_v50  ;;  %v1014_v52 = vadd.f32 %v1001_v51, %v946_v49 }
 0x65c   : > { %724 = sbr.rel (!%p722_p4) target bundleno = 686 (0x2ae), region = 118 }
 0x65d   : >> { %1018 = vst.msk [vmem:[#allocation3 + $0x8] sm:$0xff] %vm448_vm0, %v1014_v52 }
 0x65e   : > { %v1023_v55 = vld [vmem:[#allocation3 + $0x10] sm:$0xff] (%p722_p4) }
 0x65f   : > { %v1027_v57 = vadd.f32 (%p722_p4), %v1023_v55, %v1786_v2 }
 0x660   : > { %v1021_v53 = vld [vmem:[#allocation3] sm:$0xff] (%p722_p4) }
 0x661   : > { %v1025_v56 = vadd.f32 %v1021_v53, %v1784_v1  ;;  %v1898_v63 = vadd.f32 %v1501_v54, %v1027_v57 }
 0x662   : > { %v1024_v59 = vld [vmem:[#allocation3 + $0x18] sm:$0xff] }
 0x663   : > { %v1028_v61 = vadd.f32 %v1024_v59, %v1794_v6  ;;  %v1896_v62 = vadd.f32 %v1501_v54, %v1025_v56  ;;  %v1048_v1 = vsel %vm448_vm0, %v1898_v63, 0.0  ;;  %v1646_v59 = vld [vmem:[%s2003_s11 + $0x8] sm:$0xff]  }
 0x664   : > { %v1022_v58 = vld [vmem:[#allocation3 + $0x8] sm:$0xff]  ;;  %1049 = vadd.xlane.f32.xlu1 %v1048_v1  ;;  %1581 = vmatprep.subr.bf16.mxu1 %v1646_v59 }
 0x665   : > { %v1026_v60 = vadd.f32 %v1022_v58, %v1788_v3  ;;  %v1902_v4 = vadd.f32 %v1501_v54, %v1028_v61  ;;  %v1042_v5 = vsel %vm448_vm0, %v1896_v62, 0.0  ;;  %1582 = vmatpush3.bf16.msra.mxu1 %v1646_v59  ;;  %v1504_v61 = vld [vmem:[%s2002_s10] ss:$0 sm:$0xff] }
 0x666   : > { %1043 = vadd.xlane.f32.xlu0 %v1042_v5 }
 0x667   : > { %v1900_v0 = vadd.f32 %v1501_v54, %v1026_v60  ;;  %v1051_v3 = vsel %vm448_vm0, %v1902_v4, 0.0  ;;  %v1647_v60 = vld [vmem:[%s2003_s11] sm:$0xff]  }
 0x668   : > { %1052 = vadd.xlane.f32.xlu1 %v1051_v3  ;;  %1583 = vmatprep.subr.bf16.mxu1 %v1647_v60 }
 0x669   : > { %v1045_v2 = vsel %vm448_vm0, %v1900_v0, 0.0  ;;  %1584 = vmatpush3.bf16.msra.mxu1 %v1647_v60 }
 0x66a   : > { %1046 = vadd.xlane.f32.xlu0 %v1045_v2 }
 0x6ed   : > { %v1050_v7 = vpop.xlane.xlu1 %1049 }
 0x6ee   : > { %v1056_v9 = vmul.f32 0.0625, %v1050_v7 }
 0x6ef   : > { %v1044_v6 = vpop.xlane.xlu0 %1043 }
 0x6f0   : > { %v1054_v8 = vmul.f32 0.0625, %v1044_v6  ;;  %v1060_v11 = vsub.f32 %v1898_v63, %v1056_v9 }
 0x6f1   : > { %v1053_v13 = vpop.xlane.xlu1 %1052 }
 0x6f2   : > { %v1058_v10 = vsub.f32 %v1896_v62, %v1054_v8  ;;  %v1057_v15 = vmul.f32 0.0625, %v1053_v13  ;;  %v1064_v17 = vmul.f32 %v1060_v11, %v1060_v11 }
 0x6f3   : > { %v1047_v12 = vpop.xlane.xlu0 %1046 }
 0x6f4   : > { %v1055_v14 = vmul.f32 0.0625, %v1047_v12  ;;  %v1062_v16 = vmul.f32 %v1058_v10, %v1058_v10  ;;  %v1061_v19 = vsub.f32 %v1902_v4, %v1057_v15  ;;  %v1072_v21 = vsel %vm448_vm0, %v1064_v17, 0.0 }
 0x6f6   : > { %v1059_v18 = vsub.f32 %v1900_v0, %v1055_v14  ;;  %v1066_v20 = vsel %vm448_vm0, %v1062_v16, 0.0  ;;  %v1065_v23 = vmul.f32 %v1061_v19, %v1061_v19 }
 0x6f7   : > { %1067 = vadd.xlane.f32.xlu0 %v1066_v20 }
 0x6f8   : > { %v1063_v22 = vmul.f32 %v1059_v18, %v1059_v18  ;;  %v1075_v25 = vsel %vm448_vm0, %v1065_v23, 0.0 }
 0x6fa   : > { %v1069_v24 = vsel %vm448_vm0, %v1063_v22, 0.0 }
 0x6fb   : > { %1073 = vadd.xlane.f32.xlu0 %v1072_v21  ;;  %1070 = vadd.xlane.f32.xlu1 %v1069_v24 }
 0x6ff   : > { %1076 = vadd.xlane.f32.xlu1 %v1075_v25 }
 0x780   : > { %v1068_v27 = vpop.xlane.xlu0 %1067 }
 0x781   : > { %v1078_v28 = vmul.f32 0.0625, %v1068_v27 }
 0x783   : > { %v1082_v29 = vadd.f32 1e-12, %v1078_v28 }
 0x784   : > { %v1071_v30 = vpop.xlane.xlu1 %1070  ;;  %v1074_v31 = vpop.xlane.xlu0 %1073 }
 0x785   : > { %1648 = vrsqrt.f32 %v1082_v29  ;;  %v1079_v32 = vmul.f32 0.0625, %v1071_v30  ;;  %v1080_v33 = vmul.f32 0.0625, %v1074_v31 }
 0x787   : > { %v1083_v34 = vadd.f32 1e-12, %v1079_v32  ;;  %v1084_v35 = vadd.f32 1e-12, %v1080_v33 }
 0x788   : > { %v1077_v36 = vpop.xlane.xlu1 %1076 }
 0x789   : > { %1650 = vrsqrt.f32 %v1083_v34  ;;  %v1081_v37 = vmul.f32 0.0625, %v1077_v36 }
 0x78a   : > { %1652 = vrsqrt.f32 %v1084_v35 }
 0x78b   : > { %v1085_v38 = vadd.f32 1e-12, %v1081_v37 }
 0x78d   : > { %1654 = vrsqrt.f32 %v1085_v38 }
 0x792   : > { %v1649_v39 = vpop.eup %1648 }
 0x793   : > { %v1090_v40 = vmul.f32 %v1649_v39, %v1058_v10 }
 0x795   : > { %v1100_v45 = vmul.f32 %v1502_v41, %v1090_v40 }
 0x796   : > { %v1651_v42 = vpop.eup %1650 }
 0x797   : > { %v1653_v43 = vpop.eup %1652  ;;  %v1091_v44 = vmul.f32 %v1651_v42, %v1059_v18  ;;  %v1110_v50 = vadd.f32 %v1503_v46, %v1100_v45 }
 0x798   : > { %v1092_v47 = vmul.f32 %v1653_v43, %v1060_v11 }
 0x799   : > { %v1101_v48 = vmul.f32 %v1502_v41, %v1091_v44 }
 0x79a   : > { %v1655_v49 = vpop.eup %1654  ;;  %v1102_v53 = vmul.f32 %v1502_v41, %v1092_v47 }
 0x79b   : > { %v1111_v51 = vadd.f32 %v1503_v46, %v1101_v48  ;;  %v1093_v52 = vmul.f32 %v1655_v49, %v1061_v19 }
 0x79c   : > { %v1112_v56 = vadd.f32 %v1503_v46, %v1102_v53 }
 0x79d   : > { %v1114_v54 = vpack.c.bf16 %v1111_v51, %v1110_v50  ;;  %v1103_v55 = vmul.f32 %v1502_v41, %v1093_v52 }
 0x79f   : > { %1577 = vmatprep.mubr.msk.bf16.mxu0 %vm448_vm0, %v1114_v54  ;;  %v1113_v57 = vadd.f32 %v1503_v46, %v1103_v55 }
 0x7a1   : > { %v1115_v58 = vpack.c.bf16 %v1113_v57, %v1112_v56 }
 0x7a3   : > { %1578 = vmatmul.mubr.msk.bf16.vlgmr.msra.gmra.mxu0 %vm448_vm0, %v1115_v58 }
 0x863   : > { %v1579_v5 = vpop.f32.mrf.mxu0 }
 0x864   : > { %v1940_v1 = vadd.f32 %v1579_v5, %v1504_v61 }
 0x865   : > { %v1171_v2 = vpop.f32.mrf.mxu0 }
 0x866   : > { %v1943_v3 = vmul.f32 0.70710677, %v1940_v1  ;;  %v1945_v6 = vadd.f32 %v1504_v61, %v1171_v2 }
 0x867   : > { %v1580_v7 = vpop.f32.mrf.mxu0 }
 0x868   : > { %v1196_v8 = vand.u32 2147483647, %v1943_v3  ;;  %v1949_v9 = vmul.f32 0.70710677, %v1945_v6  ;;  %v1951_v10 = vadd.f32 %v1580_v7, %v1504_v61  ;;  %vm1276_vm6 = vcmp.ge.f32.partialorder %v1943_v3, 0.0 }
 0x869   : > { %v1174_v11 = vpop.f32.mrf.mxu0 }
 0x86a   : > { %v1200_v12 = vmul.f32 0.3275911, %v1196_v8  ;;  %v1194_v13 = vand.u32 2147483647, %v1949_v9  ;;  %v1955_v14 = vmul.f32 0.70710677, %v1951_v10  ;;  %v1957_v15 = vadd.f32 %v1504_v61, %v1174_v11 }
 0x86b   : > { %v1252_v26 = vmul.f32 %v1196_v8, %v1196_v8  ;;  %vm1274_vm5 = vcmp.ge.f32.partialorder %v1949_v9, 0.0  ;;  %v1186_v9 = vmul.f32 0.5, %v1945_v6  ;;  %v1508_v6 = vld [vmem:[%s2004_s12] ss:$0 sm:$0xff] }
 0x86c   : > { %v1204_v16 = vadd.f32 1.0, %v1200_v12  ;;  %v1198_v17 = vmul.f32 0.3275911, %v1194_v13  ;;  %v1197_v18 = vand.u32 2147483647, %v1955_v14  ;;  %v1250_v27 = vmul.f32 %v1194_v13, %v1194_v13 }
 0x86d   : > { %v1961_v19 = vmul.f32 0.70710677, %v1957_v15  ;;  %v1256_v28 = vsub.f32 0.0, %v1252_v26  ;;  %vm1277_vm7 = vcmp.ge.f32.partialorder %v1955_v14, 0.0  ;;  %v1188_v14 = vmul.f32 0.5, %v1940_v1 }
 0x86e   : > { %1656 = vrcp.f32 %v1204_v16  ;;  %v1202_v20 = vadd.f32 1.0, %v1198_v17  ;;  %v1201_v21 = vmul.f32 0.3275911, %v1197_v18  ;;  %v1253_v29 = vmul.f32 %v1197_v18, %v1197_v18 }
 0x86f   : > { %v1195_v22 = vand.u32 2147483647, %v1961_v19  ;;  %v1254_v31 = vsub.f32 0.0, %v1250_v27  ;;  %v1262_v33 = vmul.f32 1.442695, %v1256_v28  ;;  %vm1275_vm8 = vcmp.ge.f32.partialorder %v1961_v19, 0.0 }
 0x870   : > { %1658 = vrcp.f32 %v1202_v20  ;;  %v1205_v23 = vadd.f32 1.0, %v1201_v21  ;;  %v1257_v35 = vsub.f32 0.0, %v1253_v29 }
 0x871   : > { %v1199_v24 = vmul.f32 0.3275911, %v1195_v22  ;;  %v1251_v34 = vmul.f32 %v1195_v22, %v1195_v22  ;;  %v1258_v38 = vmul.f32 1.442695, %v1254_v31 }
 0x872   : > { %1660 = vrcp.f32 %v1205_v23  ;;  %v1264_v44 = vmul.f32 1.442695, %v1257_v35 }
 0x873   : > { %v1203_v25 = vadd.f32 1.0, %v1199_v24  ;;  %v1255_v42 = vsub.f32 0.0, %v1251_v34 }
 0x875   : > { %1662 = vrcp.f32 %v1203_v25  ;;  %v1260_v51 = vmul.f32 1.442695, %v1255_v42 }
 0x876   : > { %1664 = vpow2.f32 %v1262_v33 }
 0x877   : > { %1666 = vpow2.f32 %v1258_v38 }
 0x878   : > { %1668 = vpow2.f32 %v1264_v44 }
 0x879   : > { %1670 = vpow2.f32 %v1260_v51 }
 0x87b   : > { %v1657_v30 = vpop.eup %1656 }
 0x87c   : > { %v1216_v32 = vmul.f32 1.0614054, %v1657_v30 }
 0x87d   : > { %v1659_v36 = vpop.eup %1658 }
 0x87e   : > { %v1220_v37 = vadd.f32 -1.4531521, %v1216_v32  ;;  %v1214_v39 = vmul.f32 1.0614054, %v1659_v36 }
 0x87f   : > { %v1661_v40 = vpop.eup %1660 }
 0x880   : > { %v1224_v41 = vmul.f32 %v1657_v30, %v1220_v37  ;;  %v1217_v43 = vmul.f32 1.0614054, %v1661_v40  ;;  %v1218_v45 = vadd.f32 -1.4531521, %v1214_v39 }
 0x882   : > { %v1228_v46 = vadd.f32 1.4214138, %v1224_v41  ;;  %v1663_v47 = vpop.eup %1662  ;;  %v1221_v48 = vadd.f32 -1.4531521, %v1217_v43  ;;  %v1222_v49 = vmul.f32 %v1659_v36, %v1218_v45 }
 0x883   : > { %v1215_v52 = vmul.f32 1.0614054, %v1663_v47  ;;  %v1665_v16 = vpop.eup %1664 }
 0x884   : > { %v1232_v50 = vmul.f32 %v1657_v30, %v1228_v46  ;;  %v1225_v53 = vmul.f32 %v1661_v40, %v1221_v48  ;;  %v1226_v54 = vadd.f32 1.4214138, %v1222_v49  ;;  %v1667_v24 = vpop.eup %1666  ;;  %v1189_v48 = vmul.f32 0.5, %v1951_v10 }
 0x885   : > { %v1219_v56 = vadd.f32 -1.4531521, %v1215_v52  ;;  %v1669_v29 = vpop.eup %1668 }
 0x886   : > { %v1236_v55 = vadd.f32 -0.28449672, %v1232_v50  ;;  %v1229_v57 = vadd.f32 1.4214138, %v1225_v53  ;;  %v1230_v58 = vmul.f32 %v1659_v36, %v1226_v54  ;;  %v1671_v35 = vpop.eup %1670  ;;  %v1187_v50 = vmul.f32 0.5, %v1957_v15 }
 0x887   : > { %v1223_v60 = vmul.f32 %v1663_v47, %v1219_v56 }
 0x888   : > { %v1240_v59 = vmul.f32 %v1657_v30, %v1236_v55  ;;  %v1233_v61 = vmul.f32 %v1661_v40, %v1229_v57  ;;  %v1234_v5 = vadd.f32 -0.28449672, %v1230_v58 }
 0x889   : > { %v1227_v7 = vadd.f32 1.4214138, %v1223_v60 }
 0x88a   : > { %v1244_v2 = vadd.f32 0.2548296, %v1240_v59  ;;  %v1237_v8 = vadd.f32 -0.28449672, %v1233_v61  ;;  %v1238_v11 = vmul.f32 %v1659_v36, %v1234_v5 }
 0x88b   : > { %v1231_v13 = vmul.f32 %v1663_v47, %v1227_v7 }
 0x88c   : > { %v1248_v12 = vmul.f32 %v1657_v30, %v1244_v2  ;;  %v1241_v17 = vmul.f32 %v1661_v40, %v1237_v8  ;;  %v1242_v18 = vadd.f32 0.2548296, %v1238_v11 }
 0x88d   : > { %v1235_v21 = vadd.f32 -0.28449672, %v1231_v13 }
 0x88e   : > { %v1268_v20 = vmul.f32 %v1665_v16, %v1248_v12  ;;  %v1245_v22 = vadd.f32 0.2548296, %v1241_v17  ;;  %v1246_v23 = vmul.f32 %v1659_v36, %v1242_v18 }
 0x88f   : > { %v1239_v25 = vmul.f32 %v1663_v47, %v1235_v21 }
 0x890   : > { %v1272_v26 = vsub.f32 1.0, %v1268_v20  ;;  %v1249_v27 = vmul.f32 %v1661_v40, %v1245_v22  ;;  %v1266_v28 = vmul.f32 %v1667_v24, %v1246_v23 }
 0x891   : > { %v1243_v31 = vadd.f32 0.2548296, %v1239_v25 }
 0x892   : > { %v1269_v32 = vmul.f32 %v1669_v29, %v1249_v27  ;;  %v1270_v33 = vsub.f32 1.0, %v1266_v28  ;;  %v1280_v30 = vsub.f32 0.0, %v1272_v26 }
 0x893   : > { %v1247_v34 = vmul.f32 %v1663_v47, %v1243_v31 }
 0x894   : > { %v1273_v37 = vsub.f32 1.0, %v1269_v32  ;;  %v1278_v38 = vsub.f32 0.0, %v1270_v33  ;;  %v1284_v42 = vsel %vm1276_vm6, %v1272_v26, %v1280_v30 }
 0x895   : > { %v1267_v39 = vmul.f32 %v1671_v35, %v1247_v34  ;;  %v1288_v47 = vadd.f32 1.0, %v1284_v42 }
 0x896   : > { %v1281_v41 = vsub.f32 0.0, %v1273_v37  ;;  %v1282_v40 = vsel %vm1274_vm5, %v1270_v33, %v1278_v38 }
 0x897   : > { %v1271_v36 = vsub.f32 1.0, %v1267_v39  ;;  %v1286_v46 = vadd.f32 1.0, %v1282_v40  ;;  %v1292_v54 = vmul.f32 %v1288_v47, %v1188_v14 }
 0x898   : > { %v1285_v43 = vsel %vm1277_vm7, %v1273_v37, %v1281_v41 }
 0x899   : > { %v1289_v44 = vadd.f32 1.0, %v1285_v43  ;;  %v1279_v45 = vsub.f32 0.0, %v1271_v36  ;;  %v1290_v52 = vmul.f32 %v1286_v46, %v1186_v9 }
 0x89b   : > { %v1283_v49 = vsel %vm1275_vm8, %v1271_v36, %v1279_v45  ;;  %v1293_v51 = vmul.f32 %v1289_v44, %v1189_v48 }
 0x89c   : > { %v1287_v3 = vadd.f32 1.0, %v1283_v49 }
 0x89d   : > { %v1295_v19 = vpack.c.bf16 %v1293_v51, %v1292_v54 }
 0x89e   : > { %v1291_v53 = vmul.f32 %v1287_v3, %v1187_v50 }
 0x8a0   : > { %v1294_v55 = vpack.c.bf16 %v1291_v53, %v1290_v52 }
 0x8a2   : > { %1585 = vmatprep.mubr.msk.bf16.mxu1 %vm831_vm3, %v1294_v55 }
 0x8a3   : > { %1586 = vmatmul.mubr.msk.bf16.vlgmr.msra.gmra.mxu1 %vm831_vm3, %v1295_v19 }
 0x963   : > { %v1587_v10 = vpop.f32.mrf.mxu1 }
 0x964   : > { %v1369_v1 = vadd.f32 %v1587_v10, %v1508_v6 }
 0x965   : > { %v1360_v15 = vpop.f32.mrf.mxu1 }
 0x966   : > { %v1377_v56 = vadd.f32 %v1369_v1, %v1898_v63  ;;  %v1361_v57 = vadd.f32 %v1508_v6, %v1360_v15 }
 0x967   : > { %v1588_v58 = vpop.f32.mrf.mxu1 }
 0x968   : > { %1381 = vst.msk [vmem:[%s1782_s16 + $0x10] sm:$0xff] %vm448_vm0, %v1377_v56  ;;  %v1375_v59 = vadd.f32 %v1361_v57, %v1896_v62  ;;  %v1372_v60 = vadd.f32 %v1588_v58, %v1508_v6 }
 0x969   : > { %v1363_v61 = vpop.f32.mrf.mxu1 }
 0x96a   : > { %1379 = vst.msk [vmem:[%s1782_s16] sm:$0xff] %vm448_vm0, %v1375_v59  ;;  %v1378_v5 = vadd.f32 %v1372_v60, %v1902_v4  ;;  %v1364_v2 = vadd.f32 %v1508_v6, %v1363_v61 }
 0x96c   : > { %1382 = vst.msk [vmem:[%s1782_s16 + $0x18] sm:$0xff] %vm448_vm0, %v1378_v5  ;;  %v1376_v7 = vadd.f32 %v1364_v2, %v1900_v0 }
 0x96e   : > { %1380 = vst.msk [vmem:[%s1782_s16 + $0x8] sm:$0xff] %vm448_vm0, %v1376_v7 }
 0x96f PF: > { %s23_s25 = sadd.s32 1, %s1682_s25  }
 0x970   : > { %p20_p5 = scmp.ge.s32.totalorder %s23_s25, 4  }
 0x972   :  { %22 = sbr.rel (!%p20_p5) target bundleno = 1 (0x1), region = 129 }

// kernel: videomae_pretrain_forward.11
= control target key start
LH: loop header
LB: loop body
LE: loop exit
PB: predicated region body
PF: predicated region fallthrough
CT: control target
= control target key end

     0   :  { %s588_s21 = smov 0   ;;  %s635_s0 = inlined_call_operand.vmem [shape: f32[2,8,16], index: 0, kind: input, shape index: {}]   ;;  %s636_s1 = inlined_call_operand.vmem [shape: f32[1,16], index: 1, kind: input, shape index: {}]   ;;  %s637_s2 = inlined_call_operand.vmem [shape: f32[1,16], index: 2, kind: input, shape index: {}]   ;;  %s638_s3 = inlined_call_operand.vmem [shape: bf16[16,384], index: 3, kind: input, shape index: {}]   ;;  %s639_s4 = inlined_call_operand.vmem [shape: f32[1,384], index: 4, kind: input, shape index: {}]   ;;  %s640_s5 = inlined_call_operand.vmem [shape: f32[2,8,384], index: 5, kind: input, shape index: {}]   ;;  %s641_s6 = inlined_call_operand.vmem [shape: f32[2,1,1], index: 6, kind: output, shape index: {}]  }
   0x1 LB: > { %s500_s22 = sadd.s32 4294967295, %s548_s21   ;;  %p504_p0 = scmp.ge.s32.totalorder %s548_s21, 1  ;;  %s548_s21 = sphi %s588_s21, %s16_s21  }
   0x2   : > { %p221_p1 = scmp.lt.s32.totalorder %s548_s21, 3 }
   0x4   : > { %p222_p2 = pnand %p504_p0, %p221_p1 }
   0x5   : > { %p253_p3 = scmp.lt.s32.totalorder (!%p222_p2), %s500_s22, 1 }
   0x6   : > { %225 = sbr.rel (%p222_p2) target bundleno = 681 (0x2a9), region = 44 }
   0xb   : > { %s643_s22 = smov (!%p253_p3, %s500_s22), 1  ;;  %vm269_vm0 = vcmask 130048   ;;  %v536_v7 = vld [vmem:[%s638_s3 + $0x4] ss:$12 sps:$4 sm:$0xff]   ;;  %v538_v8 = vld [vmem:[%s638_s3] ss:$12 sps:$4 sm:$0xff]   ;;  %v305_v22 = vlaneseq }
   0xc   : > { %s505_s23 = sshll.u32 %s643_s22, 3  ;;  %v550_v9 = vmov 0.0   ;;  %v539_v10 = vld [vmem:[%s638_s3 + $0x8] ss:$12 sps:$4 sm:$0xff]   ;;  %v551_v11 = vmov 0   ;;  %353 = vmatprep.subr.bf16.mxu0 %v536_v7  ;;  %vm552_vm1 = vmmov 0  }
   0xd   : > { %s256_s26 = scalar_lea.vmem %s635_s0, %s505_s23  ;;  %518 = vmatprep.subr.bf16.mxu1 %v550_v9  ;;  %371 = vmatprep.mubr.bf16.mxu0 %v551_v11  ;;  %v507_v16 = vld [vmem:[%s636_s1] ss:$0 sm:$0xff]  ;;  %v306_v23 = vshrl.u32 %v305_v22, 7  ;;  %s524_s13 = smul.u32 24, %s643_s22  ;;  %vm439_vm2 = vcmask 0  }
   0xe   : > { %v266_v0 = vld [vmem:[%s256_s26] sm:$0xff]  ;;  %520 = vmatprep.mubr.msk.bf16.mxu1 %vm552_vm1, %v550_v9  ;;  %354 = vmatpush1.bf16.msra.mxu0 %v538_v8  ;;  %s264_s23 = scalar_lea.vmem %s641_s6, %s643_s22 }
   0xf   : > { %v270_v1 = vsel %vm269_vm0, %v266_v0, 0.0  ;;  %519 = vmatpush3.bf16.msra.mxu1 %v539_v10  ;;  %v508_v18 = vld [vmem:[%s637_s2] ss:$0 sm:$0xff]  ;;  %v307_v24 = vsub.s32 0, %v306_v23  ;;  %v315_v25 = vsub.s32 2, %v306_v23  ;;  %v311_v27 = vsub.s32 1, %v306_v23  ;;  %s261_s18 = scalar_lea.vmem %s640_s5, %s524_s13 }
  0x10   : > { %271 = vadd.xlane.f32.xlu0 %v270_v1  ;;  %v303_v26 = vld [vmem:[%s639_s4] sm:$0x7]  ;;  %v421_v37 = vld [vmem:[%s261_s18 + $0x8] sm:$0xff]  ;;  %v422_v39 = vld [vmem:[%s261_s18 + $0x10] sm:$0xff] }
  0x11   : > { %v308_v28 = vrot.slane %v303_v26, %v307_v24  ;;  %v316_v29 = vrot.slane %v303_v26, %v315_v25  ;;  %v312_v30 = vrot.slane %v303_v26, %v311_v27  ;;  %v420_v32 = vld [vmem:[%s261_s18] sm:$0xff] }
  0x99   : > { %v272_v2 = vpop.xlane.xlu0 %271 }
  0x9a   : > { %v274_v3 = vmul.f32 0.0625, %v272_v2 }
  0x9c   : > { %v275_v4 = vsub.f32 %v266_v0, %v274_v3 }
  0x9e   : > { %v276_v5 = vmul.f32 %v275_v4, %v275_v4 }
  0xa0   : > { %v277_v6 = vsel %vm269_vm0, %v276_v5, 0.0 }
  0xa1   : > { %278 = vadd.xlane.f32.xlu0 %v277_v6 }
 0x12a   : > { %v279_v12 = vpop.xlane.xlu0 %278 }
 0x12b   : > { %v280_v13 = vmul.f32 0.0625, %v279_v12 }
 0x12d   : > { %v281_v14 = vadd.f32 1e-12, %v280_v13 }
 0x12f   : > { %540 = vrsqrt.f32 %v281_v14 }
 0x13c   : > { %v541_v15 = vpop.eup %540 }
 0x13d   : > { %v283_v17 = vmul.f32 %v541_v15, %v275_v4 }
 0x13f   : > { %v290_v19 = vmul.f32 %v507_v16, %v283_v17 }
 0x141   : > { %v297_v20 = vadd.f32 %v508_v18, %v290_v19 }
 0x143   : > { %v298_v21 = vpack.c.bf16 %v297_v20, %v297_v20 }
 0x145   : > { %512 = vmatmul.mubr.msk.bf16.vlgmr.msra.gmra.mxu0 %vm269_vm0, %v298_v21  ;;  %521 = vmatmul.mubr.msk.bf16.vlgmr.msra.gmra.mxu1 %vm269_vm0, %v298_v21 }
 0x205   : > { %v373_v31 = vpop.f32.mrf.mxu0  ;;  %v414_v33 = vpop.f32.mrf.mxu1 }
 0x206   : > { %v374_v34 = vadd.f32 %v373_v31, %v308_v28  ;;  %v415_v35 = vadd.f32 %v414_v33, %v316_v29 }
 0x207   : > { %v375_v36 = vpop.f32.mrf.mxu0  ;;  %v522_v38 = vpop.f32.mrf.mxu1 }
 0x208   : > { %v423_v40 = vsub.f32 %v374_v34, %v420_v32  ;;  %v376_v41 = vadd.f32 %v375_v36, %v312_v30  ;;  %v425_v45 = vsub.f32 %v415_v35, %v422_v39 }
 0x209   : > { %v377_v42 = vpop.f32.mrf.mxu0  ;;  %v417_v43 = vpop.f32.mrf.mxu1 }
 0x20a   : > { %v424_v44 = vsub.f32 %v376_v41, %v421_v37  ;;  %v426_v48 = vmul.f32 %v423_v40, %v423_v40  ;;  %v428_v50 = vmul.f32 %v425_v45, %v425_v45 }
 0x20b   : > { %v378_v46 = vpop.f32.mrf.mxu0  ;;  %v523_v47 = vpop.f32.mrf.mxu1 }
 0x20c   : > { %v427_v49 = vmul.f32 %v424_v44, %v424_v44 }
 0x20e   : > { %v429_v51 = vadd.f32 %v427_v49, %v426_v48 }
 0x210   : > { %v430_v52 = vadd.f32 %v429_v51, %v428_v50 }
 0x212   : > { %431 = vadd.xlane.f32.xlu1 %v430_v52 }
 0x29b   : > { %v432_v53 = vpop.xlane.xlu1 %431 }
 0x29c   : > { %v433_v54 = vrot.slane %v432_v53, 4 }
 0x29e   : > { %v434_v55 = vadd.f32 %v433_v54, %v432_v53 }
 0x2a0   : > { %v435_v56 = vrot.slane %v434_v55, 2 }
 0x2a2   : > { %v436_v57 = vadd.f32 %v435_v56, %v434_v55 }
 0x2a4   : > { %v437_v58 = vrot.slane %v436_v57, 1 }
 0x2a6   : > { %v438_v59 = vadd.f32 %v437_v58, %v436_v57 }
 0x2a8   : > { %440 = vst.msk [vmem:[%s264_s23] sm:$0x1] %vm439_vm2, %v438_v59 }
 0x2a9 PF: > { %s16_s21 = sadd.s32 1, %s548_s21  }
 0x2aa   : > { %p13_p4 = scmp.ge.s32.totalorder %s16_s21, 4  }
 0x2ac   :  { %15 = sbr.rel (!%p13_p4) target bundleno = 1 (0x1), region = 77 }

</bundles_post_ra>
